<compile_context>
chip_gen: v6e
topology: v6e:2x2x1
jax: 0.10.0
libtpu: 0.0.40
codegen_flags: <defaults>
</compile_context>

<pallas_src>
import functools
import math

import jax
import jax.numpy as jnp
from jax.experimental import pallas as pl
from jax.experimental.pallas import tpu as pltpu

HIDDEN = 30      # fixed by the module's forward (h0/c0 hardcode hidden_size=30)
SEQ = 5          # fixed by Linear(hidden_size * 5, 150)
GATE_PAD = 128   # per-gate lane width inside the kernel (padded hidden size)
F1, F2 = 150, 50


def _round_up(n, m):
    return ((n + m - 1) // m) * m


def _bf16_eup_ok():
    """bf16 transcendentals only on v6e / v7x (v5e EUP has no bf16)."""
    try:
        kind = jax.devices()[0].device_kind.lower()
    except Exception:
        return False
    return ("v6" in kind) or ("v7" in kind) or ("7x" in kind)


# --------------------------------------------------------------------------- #
# Kernel
# --------------------------------------------------------------------------- #
def _lstm_numeric_kernel(x_ref,
                         wih0, whh0, b0,
                         wih1, whh1, b1,
                         wih2, whh2, b2,
                         fw1, fb1, fw2, fb2, fw3, fb3,
                         out_ref, hid_ref, *, bf16_act):
    T, B, Din = x_ref.shape          # (SEQ, batch_tile, input_size)
    P = GATE_PAD

    def run_layer(xs_bf16, wih_r, whh_r, b_r):
        # Hoisted input projection (+ fused bias): one well-filled MXU op that is
        # off the serial recurrent chain.  xs_bf16: (T*B, in) bf16.
        xproj = (jnp.dot(xs_bf16, wih_r[...], preferred_element_type=jnp.float32)
                 + b_r[...])                               # (T*B, 4P) f32
        w_hh = whh_r[...]                                  # (P, 4P) bf16
        h = jnp.zeros((B, P), jnp.float32)
        c = jnp.zeros((B, P), jnp.float32)
        for t in range(T):                                 # T=5, static unroll
            gates = xproj[t * B:(t + 1) * B, :] + jnp.dot(
                h.astype(jnp.bfloat16), w_hh, preferred_element_type=jnp.float32)
            # Gate order [i, f, o, g]; each gate owns its own 128-lane block, so
            # these slices are lane-aligned (no relayout).
            gates_a = gates.astype(jnp.bfloat16) if bf16_act else gates
            ifo = jax.nn.sigmoid(gates_a[:, 0:3 * P]).astype(jnp.float32)
            g_g = jnp.tanh(gates_a[:, 3 * P:4 * P]).astype(jnp.float32)
            i_g = ifo[:, 0:P]
            f_g = ifo[:, P:2 * P]
            o_g = ifo[:, 2 * P:3 * P]
            c = f_g * c + i_g * g_g                        # f32 cell update
            h = o_g * jnp.tanh(c)                          # padded cols stay 0
            hid_ref[t * B:(t + 1) * B, :] = h              # store -> bounded live set

    # Layer 0 reads the x tile; layers 1/2 read the previous layer's hidden
    # states from the VMEM scratch (read fully before overwriting per-step).
    run_layer(x_ref[...].reshape(T * B, Din).astype(jnp.bfloat16), wih0, whh0, b0)
    run_layer(hid_ref[...].astype(jnp.bfloat16), wih1, whh1, b1)
    run_layer(hid_ref[...].astype(jnp.bfloat16), wih2, whh2, b2)

    # torch.flatten(lstm_output, start_dim=1) @ fw1 computed as a sum of
    # per-timestep lane-block matmuls (fw1 rows were re-indexed to this blocked,
    # zero-padded layout, so this is numerically the dense flatten + Linear).
    y = fb1[...]                                           # (1, F1p) f32
    for t in range(T):
        h_t = hid_ref[t * B:(t + 1) * B, :].astype(jnp.bfloat16)
        y = y + jnp.dot(h_t, fw1[t * P:(t + 1) * P, :],
                        preferred_element_type=jnp.float32)
    y = jnp.tanh(y)
    # Dropout(0.3) -> identity (eval-mode semantics).
    y = jnp.tanh(jnp.dot(y.astype(jnp.bfloat16), fw2[...],
                         preferred_element_type=jnp.float32) + fb2[...])
    y = jnp.dot(y.astype(jnp.bfloat16), fw3[...],
                preferred_element_type=jnp.float32) + fb3[...]
    out_ref[...] = y.astype(out_ref.dtype)                 # lane-dense (B, 128)


# --------------------------------------------------------------------------- #
# Wrapper
# --------------------------------------------------------------------------- #
def lstm_numeric_forward(x, kernel_params, batch_tile=128):
    """x: (B, SEQ, input_size) float32; kernel_params from pack_params()."""
    B, T, Din = x.shape
    assert T == SEQ, "module implies seq_len == 5"
    P = GATE_PAD

    TB = _round_up(min(batch_tile, _round_up(B, 8)), 8)
    # v7x has 2 TensorCores: keep >= 2 parallel grid steps when the batch allows.
    if _round_up(B, TB) // TB < 2 and TB > 8:
        TB = max(8, _round_up(TB // 2, 8))
    Bp = _round_up(B, TB)

    # Zero-pad only the batch dim; keep Din unpadded in HBM (K pads in VMEM).
    x_p = jnp.zeros((Bp, T, Din), jnp.float32).at[:B].set(x.astype(jnp.float32))
    x_tm = jnp.transpose(x_p, (1, 0, 2))                   # (T, Bp, Din)

    def _resident(w):
        nd = w.ndim                                        # grid-invariant block
        return pl.BlockSpec(w.shape, lambda i, _nd=nd: (0,) * _nd)

    in_specs = [pl.BlockSpec((T, TB, Din), lambda i: (0, i, 0))]
    in_specs += [_resident(w) for w in kernel_params]
    out_spec = pl.BlockSpec((TB, P), lambda i: (i, 0))

    # Advisory cost hint so XLA schedules this small call sensibly.
    F1p, F2p = _round_up(F1, 128), _round_up(F2, 128)
    flops_row = (2 * SEQ * (Din * 4 * P + P * 4 * P)               # layer 0
                 + 2 * 2 * SEQ * (P * 4 * P + P * 4 * P)           # layers 1,2
                 + 2 * (SEQ * P * F1p + F1p * F2p + F2p * P))      # head
    transc_row = 3 * SEQ * (4 * P + P) + F1p + F2p
    bytes_acc = int(x_tm.size * 4
                    + sum(int(w.size) * w.dtype.itemsize for w in kernel_params)
                    + Bp * P * 4)

    kernel = functools.partial(_lstm_numeric_kernel, bf16_act=_bf16_eup_ok())

    out = pl.pallas_call(
        kernel,
        out_shape=jax.ShapeDtypeStruct((Bp, P), jnp.float32),
        grid=(Bp // TB,),
        in_specs=in_specs,
        out_specs=out_spec,
        scratch_shapes=[pltpu.VMEM((SEQ * TB, P), jnp.float32)],
        compiler_params=pltpu.CompilerParams(
            dimension_semantics=("parallel",),
            vmem_limit_bytes=32 * 1024 * 1024),
        cost_estimate=pl.CostEstimate(
            flops=int(Bp * flops_row),
            transcendentals=int(Bp * transc_row),
            bytes_accessed=bytes_acc),
    )(x_tm, *kernel_params)
    return out[:B, 0:1]                                    # (B, 1), column 0


# --------------------------------------------------------------------------- #
# Parameter construction (torch layout) and packing into the padded kernel layout
# --------------------------------------------------------------------------- #
def _uniform(key, shape, bound):
    return jax.random.uniform(key, shape, jnp.float32, minval=-bound, maxval=bound)


def init_torch_params(key, input_size, hidden_size):
    """Deterministic synthetic parameters in PyTorch layouts / gate order."""
    p = {}
    keys = iter(jax.random.split(key, 18))
    k = 1.0 / math.sqrt(hidden_size)
    for layer in range(3):
        in_dim = input_size if layer == 0 else hidden_size
        p[f"w_ih_{layer}"] = _uniform(next(keys), (4 * hidden_size, in_dim), k)
        p[f"w_hh_{layer}"] = _uniform(next(keys), (4 * hidden_size, hidden_size), k)
        p[f"b_ih_{layer}"] = _uniform(next(keys), (4 * hidden_size,), k)
        p[f"b_hh_{layer}"] = _uniform(next(keys), (4 * hidden_size,), k)
    for name, (fi, fo) in zip(("1", "2", "3"),
                              [(hidden_size * 5, F1), (F1, F2), (F2, 1)]):
        kl = 1.0 / math.sqrt(fi)
        p[f"fw{name}"] = _uniform(next(keys), (fo, fi), kl)
        p[f"fb{name}"] = _uniform(next(keys), (fo,), kl)
    return p


def pack_params(tp, input_size, hidden_size):
    """Pad / transpose / gate-reorder torch params into the (bf16) kernel layout."""
    H, P = hidden_size, GATE_PAD
    w_dtype = jnp.bfloat16                                  # MXU operands

    def reorder(m):  # torch gate order [i, f, g, o] -> kernel order [i, f, o, g]
        i, f, g, o = (m[j * H:(j + 1) * H] for j in range(4))
        return [i, f, o, g]

    def pad_w(w, in_rows):           # torch (4H, in) -> (in_rows, 4P) gate blocks
        out = jnp.zeros((in_rows, 4 * P), jnp.float32)
        for gi, gw in enumerate(reorder(w)):
            out = out.at[:gw.shape[1], gi * P:gi * P + H].set(gw.T)
        return out.astype(w_dtype)

    def pad_b(b):                    # torch (4H,) -> (1, 4P), kept f32
        out = jnp.zeros((1, 4 * P), jnp.float32)
        for gi, gb in enumerate(reorder(b)):
            out = out.at[0, gi * P:gi * P + H].set(gb)
        return out

    kp = []
    for layer in range(3):
        in_rows = input_size if layer == 0 else P
        kp += [pad_w(tp[f"w_ih_{layer}"], in_rows),
               pad_w(tp[f"w_hh_{layer}"], P),
               pad_b(tp[f"b_ih_{layer}"] + tp[f"b_hh_{layer}"])]

    F1p, F2p = _round_up(F1, 128), _round_up(F2, 128)
    # fw1 rows re-indexed to the padded, 128-lane-blocked flatten layout.
    fw1_p = jnp.zeros((SEQ * P, F1p), jnp.float32)
    for t in range(SEQ):
        fw1_p = fw1_p.at[t * P:t * P + H, :F1].set(tp["fw1"][:, t * H:(t + 1) * H].T)
    fb1_p = jnp.zeros((1, F1p), jnp.float32).at[0, :F1].set(tp["fb1"])
    fw2_p = jnp.zeros((F1p, F2p), jnp.float32).at[:F1, :F2].set(tp["fw2"].T)
    fb2_p = jnp.zeros((1, F2p), jnp.float32).at[0, :F2].set(tp["fb2"])
    fw3_p = jnp.zeros((F2p, P), jnp.float32).at[:F2, 0:1].set(tp["fw3"].T)
    fb3_p = jnp.zeros((1, P), jnp.float32).at[0, 0:1].set(tp["fb3"])
    kp += [fw1_p.astype(w_dtype), fb1_p, fw2_p.astype(w_dtype), fb2_p,
           fw3_p.astype(w_dtype), fb3_p]
    return kp


# --------------------------------------------------------------------------- #
# Pure-JAX reference (exact PyTorch semantics, f32) for a correctness check
# --------------------------------------------------------------------------- #
def lstm_numeric_reference(x, tp, hidden_size):
    B, T, _ = x.shape
    H = hidden_size
    layer_in = x.astype(jnp.float32)
    for layer in range(3):
        w_ih, w_hh = tp[f"w_ih_{layer}"], tp[f"w_hh_{layer}"]
        bias = tp[f"b_ih_{layer}"] + tp[f"b_hh_{layer}"]
        h = jnp.zeros((B, H), jnp.float32)
        c = jnp.zeros((B, H), jnp.float32)
        outs = []
        for t in range(T):
            gates = layer_in[:, t, :] @ w_ih.T + h @ w_hh.T + bias
            i = jax.nn.sigmoid(gates[:, 0:H])
            f = jax.nn.sigmoid(gates[:, H:2 * H])
            g = jnp.tanh(gates[:, 2 * H:3 * H])
            o = jax.nn.sigmoid(gates[:, 3 * H:4 * H])
            c = f * c + i * g
            h = o * jnp.tanh(c)
            outs.append(h)
        layer_in = jnp.stack(outs, axis=1)
    flat = layer_in.reshape(B, T * H)
    y = jnp.tanh(flat @ tp["fw1"].T + tp["fb1"])
    y = jnp.tanh(y @ tp["fw2"].T + tp["fb2"])
    return y @ tp["fw3"].T + tp["fb3"]


if __name__ == "__main__":
    key = jax.random.PRNGKey(0)
    kx, kp = jax.random.split(key)

    BATCH, INPUT_SIZE = 2, 8
    x = jax.random.normal(kx, (BATCH, SEQ, INPUT_SIZE), dtype=jnp.float32)

    torch_params = init_torch_params(kp, INPUT_SIZE, HIDDEN)
    kernel_params = pack_params(torch_params, INPUT_SIZE, HIDDEN)

    out = lstm_numeric_forward(x, kernel_params)
    out = jax.block_until_ready(out)

    ref = lstm_numeric_reference(x, torch_params, HIDDEN)
    assert out.shape == (BATCH, 1) and out.dtype == jnp.float32
    # bf16 MXU operands (per perf review) => slightly looser tolerance than pure f32.
    assert jnp.allclose(out, ref, atol=2e-2, rtol=2e-2), (out, ref)
    print("KERNEL_OK")
</pallas_src>

<mosaic_0001>
module attributes {stable_mosaic.version = 11 : i64} {
  func.func @_lstm_numeric_kernel(%arg0: i32, %arg1: memref<5x8x8xf32, #tpu.memory_space<vmem>>, %arg2: memref<8x512xbf16, #tpu.memory_space<vmem>>, %arg3: memref<128x512xbf16, #tpu.memory_space<vmem>>, %arg4: memref<1x512xf32, #tpu.memory_space<vmem>>, %arg5: memref<128x512xbf16, #tpu.memory_space<vmem>>, %arg6: memref<128x512xbf16, #tpu.memory_space<vmem>>, %arg7: memref<1x512xf32, #tpu.memory_space<vmem>>, %arg8: memref<128x512xbf16, #tpu.memory_space<vmem>>, %arg9: memref<128x512xbf16, #tpu.memory_space<vmem>>, %arg10: memref<1x512xf32, #tpu.memory_space<vmem>>, %arg11: memref<640x256xbf16, #tpu.memory_space<vmem>>, %arg12: memref<1x256xf32, #tpu.memory_space<vmem>>, %arg13: memref<256x128xbf16, #tpu.memory_space<vmem>>, %arg14: memref<1x128xf32, #tpu.memory_space<vmem>>, %arg15: memref<128x128xbf16, #tpu.memory_space<vmem>>, %arg16: memref<1x128xf32, #tpu.memory_space<vmem>>, %arg17: memref<8x128xf32, #tpu.memory_space<vmem>>, %arg18: memref<40x128xf32, #tpu.memory_space<vmem>>) attributes {dimension_semantics = [#tpu.dimension_semantics<parallel>], iteration_bounds = array<i64: 1>, scalar_prefetch = 0 : i64, scratch_operands = 1 : i64, tpu.core_type = #tpu.core_type<tc>, window_params = [{transform_indices = @transform_0, window_bounds = array<i64: 5, 8, 8>}, {pipeline_mode = #tpu.pipeline_mode<synchronous>, transform_indices = @transform_1, window_bounds = array<i64: 8, 512>}, {pipeline_mode = #tpu.pipeline_mode<synchronous>, transform_indices = @transform_2, window_bounds = array<i64: 128, 512>}, {pipeline_mode = #tpu.pipeline_mode<synchronous>, transform_indices = @transform_3, window_bounds = array<i64: 1, 512>}, {pipeline_mode = #tpu.pipeline_mode<synchronous>, transform_indices = @transform_4, window_bounds = array<i64: 128, 512>}, {pipeline_mode = #tpu.pipeline_mode<synchronous>, transform_indices = @transform_5, window_bounds = array<i64: 128, 512>}, {pipeline_mode = #tpu.pipeline_mode<synchronous>, transform_indices = @transform_6, window_bounds = array<i64: 1, 512>}, {pipeline_mode = #tpu.pipeline_mode<synchronous>, transform_indices = @transform_7, window_bounds = array<i64: 128, 512>}, {pipeline_mode = #tpu.pipeline_mode<synchronous>, transform_indices = @transform_8, window_bounds = array<i64: 128, 512>}, {pipeline_mode = #tpu.pipeline_mode<synchronous>, transform_indices = @transform_9, window_bounds = array<i64: 1, 512>}, {pipeline_mode = #tpu.pipeline_mode<synchronous>, transform_indices = @transform_10, window_bounds = array<i64: 640, 256>}, {pipeline_mode = #tpu.pipeline_mode<synchronous>, transform_indices = @transform_11, window_bounds = array<i64: 1, 256>}, {pipeline_mode = #tpu.pipeline_mode<synchronous>, transform_indices = @transform_12, window_bounds = array<i64: 256, 128>}, {pipeline_mode = #tpu.pipeline_mode<synchronous>, transform_indices = @transform_13, window_bounds = array<i64: 1, 128>}, {pipeline_mode = #tpu.pipeline_mode<synchronous>, transform_indices = @transform_14, window_bounds = array<i64: 128, 128>}, {pipeline_mode = #tpu.pipeline_mode<synchronous>, transform_indices = @transform_15, window_bounds = array<i64: 1, 128>}, {transform_indices = @transform_16, window_bounds = array<i64: 8, 128>}]} {
    %c0 = arith.constant 0 : index
    %c0_0 = arith.constant 0 : index
    %c0_1 = arith.constant 0 : index
    %0 = vector.load %arg1[%c0, %c0_0, %c0_1] : memref<5x8x8xf32, #tpu.memory_space<vmem>>, vector<5x8x8xf32>
    %1 = vector.shape_cast %0 : vector<5x8x8xf32> to vector<40x8xf32>
    %2 = arith.truncf %1 : vector<40x8xf32> to vector<40x8xbf16>
    %c0_2 = arith.constant 0 : index
    %c0_3 = arith.constant 0 : index
    %3 = vector.load %arg2[%c0_2, %c0_3] : memref<8x512xbf16, #tpu.memory_space<vmem>>, vector<8x512xbf16>
    %cst = arith.constant dense<0.000000e+00> : vector<40x512xf32>
    %4 = tpu.matmul %2, %3, %cst {dimension_numbers = #tpu.dot_dimension_numbers<[1], [0], [0], [1], [0, 0, 1, 1], [], []>} : vector<40x8xbf16>, vector<8x512xbf16>, vector<40x512xf32> -> vector<40x512xf32>
    %c0_4 = arith.constant 0 : index
    %c0_5 = arith.constant 0 : index
    %5 = vector.load %arg4[%c0_4, %c0_5] : memref<1x512xf32, #tpu.memory_space<vmem>>, vector<1x512xf32>
    %6 = vector.broadcast %5 : vector<1x512xf32> to vector<40x512xf32>
    %7 = arith.addf %4, %6 : vector<40x512xf32>
    %c0_6 = arith.constant 0 : index
    %c0_7 = arith.constant 0 : index
    %8 = vector.load %arg3[%c0_6, %c0_7] : memref<128x512xbf16, #tpu.memory_space<vmem>>, vector<128x512xbf16>
    %cst_8 = arith.constant 0.000000e+00 : f32
    %9 = vector.broadcast %cst_8 : f32 to vector<8x128xf32>
    %cst_9 = arith.constant 0.000000e+00 : f32
    %10 = vector.broadcast %cst_9 : f32 to vector<8x128xf32>
    %11 = vector.extract_strided_slice %7 {offsets = [0, 0], sizes = [8, 512], strides = [1, 1]} : vector<40x512xf32> to vector<8x512xf32>
    %12 = arith.truncf %9 : vector<8x128xf32> to vector<8x128xbf16>
    %cst_10 = arith.constant dense<0.000000e+00> : vector<8x512xf32>
    %13 = tpu.matmul %12, %8, %cst_10 {dimension_numbers = #tpu.dot_dimension_numbers<[1], [0], [0], [1], [0, 0, 1, 1], [], []>} : vector<8x128xbf16>, vector<128x512xbf16>, vector<8x512xf32> -> vector<8x512xf32>
    %14 = arith.addf %11, %13 : vector<8x512xf32>
    %15 = vector.extract_strided_slice %14 {offsets = [0, 0], sizes = [8, 384], strides = [1, 1]} : vector<8x512xf32> to vector<8x384xf32>
    %16 = arith.negf %15 : vector<8x384xf32>
    %17 = math.exp %16 : vector<8x384xf32>
    %cst_11 = arith.constant 1.000000e+00 : f32
    %18 = vector.broadcast %cst_11 : f32 to vector<8x384xf32>
    %19 = arith.addf %18, %17 : vector<8x384xf32>
    %20 = arith.divf %18, %19 : vector<8x384xf32>
    %21 = vector.extract_strided_slice %14 {offsets = [0, 384], sizes = [8, 128], strides = [1, 1]} : vector<8x512xf32> to vector<8x128xf32>
    %22 = math.tanh %21 : vector<8x128xf32>
    %23 = vector.extract_strided_slice %20 {offsets = [0, 0], sizes = [8, 128], strides = [1, 1]} : vector<8x384xf32> to vector<8x128xf32>
    %24 = vector.extract_strided_slice %20 {offsets = [0, 128], sizes = [8, 128], strides = [1, 1]} : vector<8x384xf32> to vector<8x128xf32>
    %25 = vector.extract_strided_slice %20 {offsets = [0, 256], sizes = [8, 128], strides = [1, 1]} : vector<8x384xf32> to vector<8x128xf32>
    %26 = arith.mulf %24, %10 : vector<8x128xf32>
    %27 = arith.mulf %23, %22 : vector<8x128xf32>
    %28 = arith.addf %26, %27 : vector<8x128xf32>
    %29 = math.tanh %28 : vector<8x128xf32>
    %30 = arith.mulf %25, %29 : vector<8x128xf32>
    %c0_12 = arith.constant 0 : index
    %c0_13 = arith.constant 0 : index
    %31 = vector.load %arg18[%c0_12, %c0_13] : memref<40x128xf32, #tpu.memory_space<vmem>>, vector<8x128xf32>
    tpu.vector_store %arg18[%c0_12, %c0_13], %30 {strides = array<i32>} : memref<40x128xf32, #tpu.memory_space<vmem>>, vector<8x128xf32>,
    %32 = vector.extract_strided_slice %7 {offsets = [8, 0], sizes = [8, 512], strides = [1, 1]} : vector<40x512xf32> to vector<8x512xf32>
    %33 = arith.truncf %30 : vector<8x128xf32> to vector<8x128xbf16>
    %cst_14 = arith.constant dense<0.000000e+00> : vector<8x512xf32>
    %34 = tpu.matmul %33, %8, %cst_14 {dimension_numbers = #tpu.dot_dimension_numbers<[1], [0], [0], [1], [0, 0, 1, 1], [], []>} : vector<8x128xbf16>, vector<128x512xbf16>, vector<8x512xf32> -> vector<8x512xf32>
    %35 = arith.addf %32, %34 : vector<8x512xf32>
    %36 = vector.extract_strided_slice %35 {offsets = [0, 0], sizes = [8, 384], strides = [1, 1]} : vector<8x512xf32> to vector<8x384xf32>
    %37 = arith.negf %36 : vector<8x384xf32>
    %38 = math.exp %37 : vector<8x384xf32>
    %cst_15 = arith.constant 1.000000e+00 : f32
    %39 = vector.broadcast %cst_15 : f32 to vector<8x384xf32>
    %40 = arith.addf %39, %38 : vector<8x384xf32>
    %41 = arith.divf %39, %40 : vector<8x384xf32>
    %42 = vector.extract_strided_slice %35 {offsets = [0, 384], sizes = [8, 128], strides = [1, 1]} : vector<8x512xf32> to vector<8x128xf32>
    %43 = math.tanh %42 : vector<8x128xf32>
    %44 = vector.extract_strided_slice %41 {offsets = [0, 0], sizes = [8, 128], strides = [1, 1]} : vector<8x384xf32> to vector<8x128xf32>
    %45 = vector.extract_strided_slice %41 {offsets = [0, 128], sizes = [8, 128], strides = [1, 1]} : vector<8x384xf32> to vector<8x128xf32>
    %46 = vector.extract_strided_slice %41 {offsets = [0, 256], sizes = [8, 128], strides = [1, 1]} : vector<8x384xf32> to vector<8x128xf32>
    %47 = arith.mulf %45, %28 : vector<8x128xf32>
    %48 = arith.mulf %44, %43 : vector<8x128xf32>
    %49 = arith.addf %47, %48 : vector<8x128xf32>
    %50 = math.tanh %49 : vector<8x128xf32>
    %51 = arith.mulf %46, %50 : vector<8x128xf32>
    %c8 = arith.constant 8 : index
    %c0_16 = arith.constant 0 : index
    %52 = vector.load %arg18[%c8, %c0_16] : memref<40x128xf32, #tpu.memory_space<vmem>>, vector<8x128xf32>
    tpu.vector_store %arg18[%c8, %c0_16], %51 {strides = array<i32>} : memref<40x128xf32, #tpu.memory_space<vmem>>, vector<8x128xf32>,
    %53 = vector.extract_strided_slice %7 {offsets = [16, 0], sizes = [8, 512], strides = [1, 1]} : vector<40x512xf32> to vector<8x512xf32>
    %54 = arith.truncf %51 : vector<8x128xf32> to vector<8x128xbf16>
    %cst_17 = arith.constant dense<0.000000e+00> : vector<8x512xf32>
    %55 = tpu.matmul %54, %8, %cst_17 {dimension_numbers = #tpu.dot_dimension_numbers<[1], [0], [0], [1], [0, 0, 1, 1], [], []>} : vector<8x128xbf16>, vector<128x512xbf16>, vector<8x512xf32> -> vector<8x512xf32>
    %56 = arith.addf %53, %55 : vector<8x512xf32>
    %57 = vector.extract_strided_slice %56 {offsets = [0, 0], sizes = [8, 384], strides = [1, 1]} : vector<8x512xf32> to vector<8x384xf32>
    %58 = arith.negf %57 : vector<8x384xf32>
    %59 = math.exp %58 : vector<8x384xf32>
    %cst_18 = arith.constant 1.000000e+00 : f32
    %60 = vector.broadcast %cst_18 : f32 to vector<8x384xf32>
    %61 = arith.addf %60, %59 : vector<8x384xf32>
    %62 = arith.divf %60, %61 : vector<8x384xf32>
    %63 = vector.extract_strided_slice %56 {offsets = [0, 384], sizes = [8, 128], strides = [1, 1]} : vector<8x512xf32> to vector<8x128xf32>
    %64 = math.tanh %63 : vector<8x128xf32>
    %65 = vector.extract_strided_slice %62 {offsets = [0, 0], sizes = [8, 128], strides = [1, 1]} : vector<8x384xf32> to vector<8x128xf32>
    %66 = vector.extract_strided_slice %62 {offsets = [0, 128], sizes = [8, 128], strides = [1, 1]} : vector<8x384xf32> to vector<8x128xf32>
    %67 = vector.extract_strided_slice %62 {offsets = [0, 256], sizes = [8, 128], strides = [1, 1]} : vector<8x384xf32> to vector<8x128xf32>
    %68 = arith.mulf %66, %49 : vector<8x128xf32>
    %69 = arith.mulf %65, %64 : vector<8x128xf32>
    %70 = arith.addf %68, %69 : vector<8x128xf32>
    %71 = math.tanh %70 : vector<8x128xf32>
    %72 = arith.mulf %67, %71 : vector<8x128xf32>
    %c16 = arith.constant 16 : index
    %c0_19 = arith.constant 0 : index
    %73 = vector.load %arg18[%c16, %c0_19] : memref<40x128xf32, #tpu.memory_space<vmem>>, vector<8x128xf32>
    tpu.vector_store %arg18[%c16, %c0_19], %72 {strides = array<i32>} : memref<40x128xf32, #tpu.memory_space<vmem>>, vector<8x128xf32>,
    %74 = vector.extract_strided_slice %7 {offsets = [24, 0], sizes = [8, 512], strides = [1, 1]} : vector<40x512xf32> to vector<8x512xf32>
    %75 = arith.truncf %72 : vector<8x128xf32> to vector<8x128xbf16>
    %cst_20 = arith.constant dense<0.000000e+00> : vector<8x512xf32>
    %76 = tpu.matmul %75, %8, %cst_20 {dimension_numbers = #tpu.dot_dimension_numbers<[1], [0], [0], [1], [0, 0, 1, 1], [], []>} : vector<8x128xbf16>, vector<128x512xbf16>, vector<8x512xf32> -> vector<8x512xf32>
    %77 = arith.addf %74, %76 : vector<8x512xf32>
    %78 = vector.extract_strided_slice %77 {offsets = [0, 0], sizes = [8, 384], strides = [1, 1]} : vector<8x512xf32> to vector<8x384xf32>
    %79 = arith.negf %78 : vector<8x384xf32>
    %80 = math.exp %79 : vector<8x384xf32>
    %cst_21 = arith.constant 1.000000e+00 : f32
    %81 = vector.broadcast %cst_21 : f32 to vector<8x384xf32>
    %82 = arith.addf %81, %80 : vector<8x384xf32>
    %83 = arith.divf %81, %82 : vector<8x384xf32>
    %84 = vector.extract_strided_slice %77 {offsets = [0, 384], sizes = [8, 128], strides = [1, 1]} : vector<8x512xf32> to vector<8x128xf32>
    %85 = math.tanh %84 : vector<8x128xf32>
    %86 = vector.extract_strided_slice %83 {offsets = [0, 0], sizes = [8, 128], strides = [1, 1]} : vector<8x384xf32> to vector<8x128xf32>
    %87 = vector.extract_strided_slice %83 {offsets = [0, 128], sizes = [8, 128], strides = [1, 1]} : vector<8x384xf32> to vector<8x128xf32>
    %88 = vector.extract_strided_slice %83 {offsets = [0, 256], sizes = [8, 128], strides = [1, 1]} : vector<8x384xf32> to vector<8x128xf32>
    %89 = arith.mulf %87, %70 : vector<8x128xf32>
    %90 = arith.mulf %86, %85 : vector<8x128xf32>
    %91 = arith.addf %89, %90 : vector<8x128xf32>
    %92 = math.tanh %91 : vector<8x128xf32>
    %93 = arith.mulf %88, %92 : vector<8x128xf32>
    %c24 = arith.constant 24 : index
    %c0_22 = arith.constant 0 : index
    %94 = vector.load %arg18[%c24, %c0_22] : memref<40x128xf32, #tpu.memory_space<vmem>>, vector<8x128xf32>
    tpu.vector_store %arg18[%c24, %c0_22], %93 {strides = array<i32>} : memref<40x128xf32, #tpu.memory_space<vmem>>, vector<8x128xf32>,
    %95 = vector.extract_strided_slice %7 {offsets = [32, 0], sizes = [8, 512], strides = [1, 1]} : vector<40x512xf32> to vector<8x512xf32>
    %96 = arith.truncf %93 : vector<8x128xf32> to vector<8x128xbf16>
    %cst_23 = arith.constant dense<0.000000e+00> : vector<8x512xf32>
    %97 = tpu.matmul %96, %8, %cst_23 {dimension_numbers = #tpu.dot_dimension_numbers<[1], [0], [0], [1], [0, 0, 1, 1], [], []>} : vector<8x128xbf16>, vector<128x512xbf16>, vector<8x512xf32> -> vector<8x512xf32>
    %98 = arith.addf %95, %97 : vector<8x512xf32>
    %99 = vector.extract_strided_slice %98 {offsets = [0, 0], sizes = [8, 384], strides = [1, 1]} : vector<8x512xf32> to vector<8x384xf32>
    %100 = arith.negf %99 : vector<8x384xf32>
    %101 = math.exp %100 : vector<8x384xf32>
    %cst_24 = arith.constant 1.000000e+00 : f32
    %102 = vector.broadcast %cst_24 : f32 to vector<8x384xf32>
    %103 = arith.addf %102, %101 : vector<8x384xf32>
    %104 = arith.divf %102, %103 : vector<8x384xf32>
    %105 = vector.extract_strided_slice %98 {offsets = [0, 384], sizes = [8, 128], strides = [1, 1]} : vector<8x512xf32> to vector<8x128xf32>
    %106 = math.tanh %105 : vector<8x128xf32>
    %107 = vector.extract_strided_slice %104 {offsets = [0, 0], sizes = [8, 128], strides = [1, 1]} : vector<8x384xf32> to vector<8x128xf32>
    %108 = vector.extract_strided_slice %104 {offsets = [0, 128], sizes = [8, 128], strides = [1, 1]} : vector<8x384xf32> to vector<8x128xf32>
    %109 = vector.extract_strided_slice %104 {offsets = [0, 256], sizes = [8, 128], strides = [1, 1]} : vector<8x384xf32> to vector<8x128xf32>
    %110 = arith.mulf %108, %91 : vector<8x128xf32>
    %111 = arith.mulf %107, %106 : vector<8x128xf32>
    %112 = arith.addf %110, %111 : vector<8x128xf32>
    %113 = math.tanh %112 : vector<8x128xf32>
    %114 = arith.mulf %109, %113 : vector<8x128xf32>
    %c32 = arith.constant 32 : index
    %c0_25 = arith.constant 0 : index
    %115 = vector.load %arg18[%c32, %c0_25] : memref<40x128xf32, #tpu.memory_space<vmem>>, vector<8x128xf32>
    tpu.vector_store %arg18[%c32, %c0_25], %114 {strides = array<i32>} : memref<40x128xf32, #tpu.memory_space<vmem>>, vector<8x128xf32>,
    %c0_26 = arith.constant 0 : index
    %c0_27 = arith.constant 0 : index
    %116 = vector.load %arg18[%c0_26, %c0_27] : memref<40x128xf32, #tpu.memory_space<vmem>>, vector<40x128xf32>
    %117 = arith.truncf %116 : vector<40x128xf32> to vector<40x128xbf16>
    %c0_28 = arith.constant 0 : index
    %c0_29 = arith.constant 0 : index
    %118 = vector.load %arg5[%c0_28, %c0_29] : memref<128x512xbf16, #tpu.memory_space<vmem>>, vector<128x512xbf16>
    %cst_30 = arith.constant dense<0.000000e+00> : vector<40x512xf32>
    %119 = tpu.matmul %117, %118, %cst_30 {dimension_numbers = #tpu.dot_dimension_numbers<[1], [0], [0], [1], [0, 0, 1, 1], [], []>} : vector<40x128xbf16>, vector<128x512xbf16>, vector<40x512xf32> -> vector<40x512xf32>
    %c0_31 = arith.constant 0 : index
    %c0_32 = arith.constant 0 : index
    %120 = vector.load %arg7[%c0_31, %c0_32] : memref<1x512xf32, #tpu.memory_space<vmem>>, vector<1x512xf32>
    %121 = vector.broadcast %120 : vector<1x512xf32> to vector<40x512xf32>
    %122 = arith.addf %119, %121 : vector<40x512xf32>
    %c0_33 = arith.constant 0 : index
    %c0_34 = arith.constant 0 : index
    %123 = vector.load %arg6[%c0_33, %c0_34] : memref<128x512xbf16, #tpu.memory_space<vmem>>, vector<128x512xbf16>
    %cst_35 = arith.constant 0.000000e+00 : f32
    %124 = vector.broadcast %cst_35 : f32 to vector<8x128xf32>
    %cst_36 = arith.constant 0.000000e+00 : f32
    %125 = vector.broadcast %cst_36 : f32 to vector<8x128xf32>
    %126 = vector.extract_strided_slice %122 {offsets = [0, 0], sizes = [8, 512], strides = [1, 1]} : vector<40x512xf32> to vector<8x512xf32>
    %127 = arith.truncf %124 : vector<8x128xf32> to vector<8x128xbf16>
    %cst_37 = arith.constant dense<0.000000e+00> : vector<8x512xf32>
    %128 = tpu.matmul %127, %123, %cst_37 {dimension_numbers = #tpu.dot_dimension_numbers<[1], [0], [0], [1], [0, 0, 1, 1], [], []>} : vector<8x128xbf16>, vector<128x512xbf16>, vector<8x512xf32> -> vector<8x512xf32>
    %129 = arith.addf %126, %128 : vector<8x512xf32>
    %130 = vector.extract_strided_slice %129 {offsets = [0, 0], sizes = [8, 384], strides = [1, 1]} : vector<8x512xf32> to vector<8x384xf32>
    %131 = arith.negf %130 : vector<8x384xf32>
    %132 = math.exp %131 : vector<8x384xf32>
    %cst_38 = arith.constant 1.000000e+00 : f32
    %133 = vector.broadcast %cst_38 : f32 to vector<8x384xf32>
    %134 = arith.addf %133, %132 : vector<8x384xf32>
    %135 = arith.divf %133, %134 : vector<8x384xf32>
    %136 = vector.extract_strided_slice %129 {offsets = [0, 384], sizes = [8, 128], strides = [1, 1]} : vector<8x512xf32> to vector<8x128xf32>
    %137 = math.tanh %136 : vector<8x128xf32>
    %138 = vector.extract_strided_slice %135 {offsets = [0, 0], sizes = [8, 128], strides = [1, 1]} : vector<8x384xf32> to vector<8x128xf32>
    %139 = vector.extract_strided_slice %135 {offsets = [0, 128], sizes = [8, 128], strides = [1, 1]} : vector<8x384xf32> to vector<8x128xf32>
    %140 = vector.extract_strided_slice %135 {offsets = [0, 256], sizes = [8, 128], strides = [1, 1]} : vector<8x384xf32> to vector<8x128xf32>
    %141 = arith.mulf %139, %125 : vector<8x128xf32>
    %142 = arith.mulf %138, %137 : vector<8x128xf32>
    %143 = arith.addf %141, %142 : vector<8x128xf32>
    %144 = math.tanh %143 : vector<8x128xf32>
    %145 = arith.mulf %140, %144 : vector<8x128xf32>
    %c0_39 = arith.constant 0 : index
    %c0_40 = arith.constant 0 : index
    %146 = vector.load %arg18[%c0_39, %c0_40] : memref<40x128xf32, #tpu.memory_space<vmem>>, vector<8x128xf32>
    tpu.vector_store %arg18[%c0_39, %c0_40], %145 {strides = array<i32>} : memref<40x128xf32, #tpu.memory_space<vmem>>, vector<8x128xf32>,
    %147 = vector.extract_strided_slice %122 {offsets = [8, 0], sizes = [8, 512], strides = [1, 1]} : vector<40x512xf32> to vector<8x512xf32>
    %148 = arith.truncf %145 : vector<8x128xf32> to vector<8x128xbf16>
    %cst_41 = arith.constant dense<0.000000e+00> : vector<8x512xf32>
    %149 = tpu.matmul %148, %123, %cst_41 {dimension_numbers = #tpu.dot_dimension_numbers<[1], [0], [0], [1], [0, 0, 1, 1], [], []>} : vector<8x128xbf16>, vector<128x512xbf16>, vector<8x512xf32> -> vector<8x512xf32>
    %150 = arith.addf %147, %149 : vector<8x512xf32>
    %151 = vector.extract_strided_slice %150 {offsets = [0, 0], sizes = [8, 384], strides = [1, 1]} : vector<8x512xf32> to vector<8x384xf32>
    %152 = arith.negf %151 : vector<8x384xf32>
    %153 = math.exp %152 : vector<8x384xf32>
    %cst_42 = arith.constant 1.000000e+00 : f32
    %154 = vector.broadcast %cst_42 : f32 to vector<8x384xf32>
    %155 = arith.addf %154, %153 : vector<8x384xf32>
    %156 = arith.divf %154, %155 : vector<8x384xf32>
    %157 = vector.extract_strided_slice %150 {offsets = [0, 384], sizes = [8, 128], strides = [1, 1]} : vector<8x512xf32> to vector<8x128xf32>
    %158 = math.tanh %157 : vector<8x128xf32>
    %159 = vector.extract_strided_slice %156 {offsets = [0, 0], sizes = [8, 128], strides = [1, 1]} : vector<8x384xf32> to vector<8x128xf32>
    %160 = vector.extract_strided_slice %156 {offsets = [0, 128], sizes = [8, 128], strides = [1, 1]} : vector<8x384xf32> to vector<8x128xf32>
    %161 = vector.extract_strided_slice %156 {offsets = [0, 256], sizes = [8, 128], strides = [1, 1]} : vector<8x384xf32> to vector<8x128xf32>
    %162 = arith.mulf %160, %143 : vector<8x128xf32>
    %163 = arith.mulf %159, %158 : vector<8x128xf32>
    %164 = arith.addf %162, %163 : vector<8x128xf32>
    %165 = math.tanh %164 : vector<8x128xf32>
    %166 = arith.mulf %161, %165 : vector<8x128xf32>
    %c8_43 = arith.constant 8 : index
    %c0_44 = arith.constant 0 : index
    %167 = vector.load %arg18[%c8_43, %c0_44] : memref<40x128xf32, #tpu.memory_space<vmem>>, vector<8x128xf32>
    tpu.vector_store %arg18[%c8_43, %c0_44], %166 {strides = array<i32>} : memref<40x128xf32, #tpu.memory_space<vmem>>, vector<8x128xf32>,
    %168 = vector.extract_strided_slice %122 {offsets = [16, 0], sizes = [8, 512], strides = [1, 1]} : vector<40x512xf32> to vector<8x512xf32>
    %169 = arith.truncf %166 : vector<8x128xf32> to vector<8x128xbf16>
    %cst_45 = arith.constant dense<0.000000e+00> : vector<8x512xf32>
    %170 = tpu.matmul %169, %123, %cst_45 {dimension_numbers = #tpu.dot_dimension_numbers<[1], [0], [0], [1], [0, 0, 1, 1], [], []>} : vector<8x128xbf16>, vector<128x512xbf16>, vector<8x512xf32> -> vector<8x512xf32>
    %171 = arith.addf %168, %170 : vector<8x512xf32>
    %172 = vector.extract_strided_slice %171 {offsets = [0, 0], sizes = [8, 384], strides = [1, 1]} : vector<8x512xf32> to vector<8x384xf32>
    %173 = arith.negf %172 : vector<8x384xf32>
    %174 = math.exp %173 : vector<8x384xf32>
    %cst_46 = arith.constant 1.000000e+00 : f32
    %175 = vector.broadcast %cst_46 : f32 to vector<8x384xf32>
    %176 = arith.addf %175, %174 : vector<8x384xf32>
    %177 = arith.divf %175, %176 : vector<8x384xf32>
    %178 = vector.extract_strided_slice %171 {offsets = [0, 384], sizes = [8, 128], strides = [1, 1]} : vector<8x512xf32> to vector<8x128xf32>
    %179 = math.tanh %178 : vector<8x128xf32>
    %180 = vector.extract_strided_slice %177 {offsets = [0, 0], sizes = [8, 128], strides = [1, 1]} : vector<8x384xf32> to vector<8x128xf32>
    %181 = vector.extract_strided_slice %177 {offsets = [0, 128], sizes = [8, 128], strides = [1, 1]} : vector<8x384xf32> to vector<8x128xf32>
    %182 = vector.extract_strided_slice %177 {offsets = [0, 256], sizes = [8, 128], strides = [1, 1]} : vector<8x384xf32> to vector<8x128xf32>
    %183 = arith.mulf %181, %164 : vector<8x128xf32>
    %184 = arith.mulf %180, %179 : vector<8x128xf32>
    %185 = arith.addf %183, %184 : vector<8x128xf32>
    %186 = math.tanh %185 : vector<8x128xf32>
    %187 = arith.mulf %182, %186 : vector<8x128xf32>
    %c16_47 = arith.constant 16 : index
    %c0_48 = arith.constant 0 : index
    %188 = vector.load %arg18[%c16_47, %c0_48] : memref<40x128xf32, #tpu.memory_space<vmem>>, vector<8x128xf32>
    tpu.vector_store %arg18[%c16_47, %c0_48], %187 {strides = array<i32>} : memref<40x128xf32, #tpu.memory_space<vmem>>, vector<8x128xf32>,
    %189 = vector.extract_strided_slice %122 {offsets = [24, 0], sizes = [8, 512], strides = [1, 1]} : vector<40x512xf32> to vector<8x512xf32>
    %190 = arith.truncf %187 : vector<8x128xf32> to vector<8x128xbf16>
    %cst_49 = arith.constant dense<0.000000e+00> : vector<8x512xf32>
    %191 = tpu.matmul %190, %123, %cst_49 {dimension_numbers = #tpu.dot_dimension_numbers<[1], [0], [0], [1], [0, 0, 1, 1], [], []>} : vector<8x128xbf16>, vector<128x512xbf16>, vector<8x512xf32> -> vector<8x512xf32>
    %192 = arith.addf %189, %191 : vector<8x512xf32>
    %193 = vector.extract_strided_slice %192 {offsets = [0, 0], sizes = [8, 384], strides = [1, 1]} : vector<8x512xf32> to vector<8x384xf32>
    %194 = arith.negf %193 : vector<8x384xf32>
    %195 = math.exp %194 : vector<8x384xf32>
    %cst_50 = arith.constant 1.000000e+00 : f32
    %196 = vector.broadcast %cst_50 : f32 to vector<8x384xf32>
    %197 = arith.addf %196, %195 : vector<8x384xf32>
    %198 = arith.divf %196, %197 : vector<8x384xf32>
    %199 = vector.extract_strided_slice %192 {offsets = [0, 384], sizes = [8, 128], strides = [1, 1]} : vector<8x512xf32> to vector<8x128xf32>
    %200 = math.tanh %199 : vector<8x128xf32>
    %201 = vector.extract_strided_slice %198 {offsets = [0, 0], sizes = [8, 128], strides = [1, 1]} : vector<8x384xf32> to vector<8x128xf32>
    %202 = vector.extract_strided_slice %198 {offsets = [0, 128], sizes = [8, 128], strides = [1, 1]} : vector<8x384xf32> to vector<8x128xf32>
    %203 = vector.extract_strided_slice %198 {offsets = [0, 256], sizes = [8, 128], strides = [1, 1]} : vector<8x384xf32> to vector<8x128xf32>
    %204 = arith.mulf %202, %185 : vector<8x128xf32>
    %205 = arith.mulf %201, %200 : vector<8x128xf32>
    %206 = arith.addf %204, %205 : vector<8x128xf32>
    %207 = math.tanh %206 : vector<8x128xf32>
    %208 = arith.mulf %203, %207 : vector<8x128xf32>
    %c24_51 = arith.constant 24 : index
    %c0_52 = arith.constant 0 : index
    %209 = vector.load %arg18[%c24_51, %c0_52] : memref<40x128xf32, #tpu.memory_space<vmem>>, vector<8x128xf32>
    tpu.vector_store %arg18[%c24_51, %c0_52], %208 {strides = array<i32>} : memref<40x128xf32, #tpu.memory_space<vmem>>, vector<8x128xf32>,
    %210 = vector.extract_strided_slice %122 {offsets = [32, 0], sizes = [8, 512], strides = [1, 1]} : vector<40x512xf32> to vector<8x512xf32>
    %211 = arith.truncf %208 : vector<8x128xf32> to vector<8x128xbf16>
    %cst_53 = arith.constant dense<0.000000e+00> : vector<8x512xf32>
    %212 = tpu.matmul %211, %123, %cst_53 {dimension_numbers = #tpu.dot_dimension_numbers<[1], [0], [0], [1], [0, 0, 1, 1], [], []>} : vector<8x128xbf16>, vector<128x512xbf16>, vector<8x512xf32> -> vector<8x512xf32>
    %213 = arith.addf %210, %212 : vector<8x512xf32>
    %214 = vector.extract_strided_slice %213 {offsets = [0, 0], sizes = [8, 384], strides = [1, 1]} : vector<8x512xf32> to vector<8x384xf32>
    %215 = arith.negf %214 : vector<8x384xf32>
    %216 = math.exp %215 : vector<8x384xf32>
    %cst_54 = arith.constant 1.000000e+00 : f32
    %217 = vector.broadcast %cst_54 : f32 to vector<8x384xf32>
    %218 = arith.addf %217, %216 : vector<8x384xf32>
    %219 = arith.divf %217, %218 : vector<8x384xf32>
    %220 = vector.extract_strided_slice %213 {offsets = [0, 384], sizes = [8, 128], strides = [1, 1]} : vector<8x512xf32> to vector<8x128xf32>
    %221 = math.tanh %220 : vector<8x128xf32>
    %222 = vector.extract_strided_slice %219 {offsets = [0, 0], sizes = [8, 128], strides = [1, 1]} : vector<8x384xf32> to vector<8x128xf32>
    %223 = vector.extract_strided_slice %219 {offsets = [0, 128], sizes = [8, 128], strides = [1, 1]} : vector<8x384xf32> to vector<8x128xf32>
    %224 = vector.extract_strided_slice %219 {offsets = [0, 256], sizes = [8, 128], strides = [1, 1]} : vector<8x384xf32> to vector<8x128xf32>
    %225 = arith.mulf %223, %206 : vector<8x128xf32>
    %226 = arith.mulf %222, %221 : vector<8x128xf32>
    %227 = arith.addf %225, %226 : vector<8x128xf32>
    %228 = math.tanh %227 : vector<8x128xf32>
    %229 = arith.mulf %224, %228 : vector<8x128xf32>
    %c32_55 = arith.constant 32 : index
    %c0_56 = arith.constant 0 : index
    %230 = vector.load %arg18[%c32_55, %c0_56] : memref<40x128xf32, #tpu.memory_space<vmem>>, vector<8x128xf32>
    tpu.vector_store %arg18[%c32_55, %c0_56], %229 {strides = array<i32>} : memref<40x128xf32, #tpu.memory_space<vmem>>, vector<8x128xf32>,
    %c0_57 = arith.constant 0 : index
    %c0_58 = arith.constant 0 : index
    %231 = vector.load %arg18[%c0_57, %c0_58] : memref<40x128xf32, #tpu.memory_space<vmem>>, vector<40x128xf32>
    %232 = arith.truncf %231 : vector<40x128xf32> to vector<40x128xbf16>
    %c0_59 = arith.constant 0 : index
    %c0_60 = arith.constant 0 : index
    %233 = vector.load %arg8[%c0_59, %c0_60] : memref<128x512xbf16, #tpu.memory_space<vmem>>, vector<128x512xbf16>
    %cst_61 = arith.constant dense<0.000000e+00> : vector<40x512xf32>
    %234 = tpu.matmul %232, %233, %cst_61 {dimension_numbers = #tpu.dot_dimension_numbers<[1], [0], [0], [1], [0, 0, 1, 1], [], []>} : vector<40x128xbf16>, vector<128x512xbf16>, vector<40x512xf32> -> vector<40x512xf32>
    %c0_62 = arith.constant 0 : index
    %c0_63 = arith.constant 0 : index
    %235 = vector.load %arg10[%c0_62, %c0_63] : memref<1x512xf32, #tpu.memory_space<vmem>>, vector<1x512xf32>
    %236 = vector.broadcast %235 : vector<1x512xf32> to vector<40x512xf32>
    %237 = arith.addf %234, %236 : vector<40x512xf32>
    %c0_64 = arith.constant 0 : index
    %c0_65 = arith.constant 0 : index
    %238 = vector.load %arg9[%c0_64, %c0_65] : memref<128x512xbf16, #tpu.memory_space<vmem>>, vector<128x512xbf16>
    %cst_66 = arith.constant 0.000000e+00 : f32
    %239 = vector.broadcast %cst_66 : f32 to vector<8x128xf32>
    %cst_67 = arith.constant 0.000000e+00 : f32
    %240 = vector.broadcast %cst_67 : f32 to vector<8x128xf32>
    %241 = vector.extract_strided_slice %237 {offsets = [0, 0], sizes = [8, 512], strides = [1, 1]} : vector<40x512xf32> to vector<8x512xf32>
    %242 = arith.truncf %239 : vector<8x128xf32> to vector<8x128xbf16>
    %cst_68 = arith.constant dense<0.000000e+00> : vector<8x512xf32>
    %243 = tpu.matmul %242, %238, %cst_68 {dimension_numbers = #tpu.dot_dimension_numbers<[1], [0], [0], [1], [0, 0, 1, 1], [], []>} : vector<8x128xbf16>, vector<128x512xbf16>, vector<8x512xf32> -> vector<8x512xf32>
    %244 = arith.addf %241, %243 : vector<8x512xf32>
    %245 = vector.extract_strided_slice %244 {offsets = [0, 0], sizes = [8, 384], strides = [1, 1]} : vector<8x512xf32> to vector<8x384xf32>
    %246 = arith.negf %245 : vector<8x384xf32>
    %247 = math.exp %246 : vector<8x384xf32>
    %cst_69 = arith.constant 1.000000e+00 : f32
    %248 = vector.broadcast %cst_69 : f32 to vector<8x384xf32>
    %249 = arith.addf %248, %247 : vector<8x384xf32>
    %250 = arith.divf %248, %249 : vector<8x384xf32>
    %251 = vector.extract_strided_slice %244 {offsets = [0, 384], sizes = [8, 128], strides = [1, 1]} : vector<8x512xf32> to vector<8x128xf32>
    %252 = math.tanh %251 : vector<8x128xf32>
    %253 = vector.extract_strided_slice %250 {offsets = [0, 0], sizes = [8, 128], strides = [1, 1]} : vector<8x384xf32> to vector<8x128xf32>
    %254 = vector.extract_strided_slice %250 {offsets = [0, 128], sizes = [8, 128], strides = [1, 1]} : vector<8x384xf32> to vector<8x128xf32>
    %255 = vector.extract_strided_slice %250 {offsets = [0, 256], sizes = [8, 128], strides = [1, 1]} : vector<8x384xf32> to vector<8x128xf32>
    %256 = arith.mulf %254, %240 : vector<8x128xf32>
    %257 = arith.mulf %253, %252 : vector<8x128xf32>
    %258 = arith.addf %256, %257 : vector<8x128xf32>
    %259 = math.tanh %258 : vector<8x128xf32>
    %260 = arith.mulf %255, %259 : vector<8x128xf32>
    %c0_70 = arith.constant 0 : index
    %c0_71 = arith.constant 0 : index
    %261 = vector.load %arg18[%c0_70, %c0_71] : memref<40x128xf32, #tpu.memory_space<vmem>>, vector<8x128xf32>
    tpu.vector_store %arg18[%c0_70, %c0_71], %260 {strides = array<i32>} : memref<40x128xf32, #tpu.memory_space<vmem>>, vector<8x128xf32>,
    %262 = vector.extract_strided_slice %237 {offsets = [8, 0], sizes = [8, 512], strides = [1, 1]} : vector<40x512xf32> to vector<8x512xf32>
    %263 = arith.truncf %260 : vector<8x128xf32> to vector<8x128xbf16>
    %cst_72 = arith.constant dense<0.000000e+00> : vector<8x512xf32>
    %264 = tpu.matmul %263, %238, %cst_72 {dimension_numbers = #tpu.dot_dimension_numbers<[1], [0], [0], [1], [0, 0, 1, 1], [], []>} : vector<8x128xbf16>, vector<128x512xbf16>, vector<8x512xf32> -> vector<8x512xf32>
    %265 = arith.addf %262, %264 : vector<8x512xf32>
    %266 = vector.extract_strided_slice %265 {offsets = [0, 0], sizes = [8, 384], strides = [1, 1]} : vector<8x512xf32> to vector<8x384xf32>
    %267 = arith.negf %266 : vector<8x384xf32>
    %268 = math.exp %267 : vector<8x384xf32>
    %cst_73 = arith.constant 1.000000e+00 : f32
    %269 = vector.broadcast %cst_73 : f32 to vector<8x384xf32>
    %270 = arith.addf %269, %268 : vector<8x384xf32>
    %271 = arith.divf %269, %270 : vector<8x384xf32>
    %272 = vector.extract_strided_slice %265 {offsets = [0, 384], sizes = [8, 128], strides = [1, 1]} : vector<8x512xf32> to vector<8x128xf32>
    %273 = math.tanh %272 : vector<8x128xf32>
    %274 = vector.extract_strided_slice %271 {offsets = [0, 0], sizes = [8, 128], strides = [1, 1]} : vector<8x384xf32> to vector<8x128xf32>
    %275 = vector.extract_strided_slice %271 {offsets = [0, 128], sizes = [8, 128], strides = [1, 1]} : vector<8x384xf32> to vector<8x128xf32>
    %276 = vector.extract_strided_slice %271 {offsets = [0, 256], sizes = [8, 128], strides = [1, 1]} : vector<8x384xf32> to vector<8x128xf32>
    %277 = arith.mulf %275, %258 : vector<8x128xf32>
    %278 = arith.mulf %274, %273 : vector<8x128xf32>
    %279 = arith.addf %277, %278 : vector<8x128xf32>
    %280 = math.tanh %279 : vector<8x128xf32>
    %281 = arith.mulf %276, %280 : vector<8x128xf32>
    %c8_74 = arith.constant 8 : index
    %c0_75 = arith.constant 0 : index
    %282 = vector.load %arg18[%c8_74, %c0_75] : memref<40x128xf32, #tpu.memory_space<vmem>>, vector<8x128xf32>
    tpu.vector_store %arg18[%c8_74, %c0_75], %281 {strides = array<i32>} : memref<40x128xf32, #tpu.memory_space<vmem>>, vector<8x128xf32>,
    %283 = vector.extract_strided_slice %237 {offsets = [16, 0], sizes = [8, 512], strides = [1, 1]} : vector<40x512xf32> to vector<8x512xf32>
    %284 = arith.truncf %281 : vector<8x128xf32> to vector<8x128xbf16>
    %cst_76 = arith.constant dense<0.000000e+00> : vector<8x512xf32>
    %285 = tpu.matmul %284, %238, %cst_76 {dimension_numbers = #tpu.dot_dimension_numbers<[1], [0], [0], [1], [0, 0, 1, 1], [], []>} : vector<8x128xbf16>, vector<128x512xbf16>, vector<8x512xf32> -> vector<8x512xf32>
    %286 = arith.addf %283, %285 : vector<8x512xf32>
    %287 = vector.extract_strided_slice %286 {offsets = [0, 0], sizes = [8, 384], strides = [1, 1]} : vector<8x512xf32> to vector<8x384xf32>
    %288 = arith.negf %287 : vector<8x384xf32>
    %289 = math.exp %288 : vector<8x384xf32>
    %cst_77 = arith.constant 1.000000e+00 : f32
    %290 = vector.broadcast %cst_77 : f32 to vector<8x384xf32>
    %291 = arith.addf %290, %289 : vector<8x384xf32>
    %292 = arith.divf %290, %291 : vector<8x384xf32>
    %293 = vector.extract_strided_slice %286 {offsets = [0, 384], sizes = [8, 128], strides = [1, 1]} : vector<8x512xf32> to vector<8x128xf32>
    %294 = math.tanh %293 : vector<8x128xf32>
    %295 = vector.extract_strided_slice %292 {offsets = [0, 0], sizes = [8, 128], strides = [1, 1]} : vector<8x384xf32> to vector<8x128xf32>
    %296 = vector.extract_strided_slice %292 {offsets = [0, 128], sizes = [8, 128], strides = [1, 1]} : vector<8x384xf32> to vector<8x128xf32>
    %297 = vector.extract_strided_slice %292 {offsets = [0, 256], sizes = [8, 128], strides = [1, 1]} : vector<8x384xf32> to vector<8x128xf32>
    %298 = arith.mulf %296, %279 : vector<8x128xf32>
    %299 = arith.mulf %295, %294 : vector<8x128xf32>
    %300 = arith.addf %298, %299 : vector<8x128xf32>
    %301 = math.tanh %300 : vector<8x128xf32>
    %302 = arith.mulf %297, %301 : vector<8x128xf32>
    %c16_78 = arith.constant 16 : index
    %c0_79 = arith.constant 0 : index
    %303 = vector.load %arg18[%c16_78, %c0_79] : memref<40x128xf32, #tpu.memory_space<vmem>>, vector<8x128xf32>
    tpu.vector_store %arg18[%c16_78, %c0_79], %302 {strides = array<i32>} : memref<40x128xf32, #tpu.memory_space<vmem>>, vector<8x128xf32>,
    %304 = vector.extract_strided_slice %237 {offsets = [24, 0], sizes = [8, 512], strides = [1, 1]} : vector<40x512xf32> to vector<8x512xf32>
    %305 = arith.truncf %302 : vector<8x128xf32> to vector<8x128xbf16>
    %cst_80 = arith.constant dense<0.000000e+00> : vector<8x512xf32>
    %306 = tpu.matmul %305, %238, %cst_80 {dimension_numbers = #tpu.dot_dimension_numbers<[1], [0], [0], [1], [0, 0, 1, 1], [], []>} : vector<8x128xbf16>, vector<128x512xbf16>, vector<8x512xf32> -> vector<8x512xf32>
    %307 = arith.addf %304, %306 : vector<8x512xf32>
    %308 = vector.extract_strided_slice %307 {offsets = [0, 0], sizes = [8, 384], strides = [1, 1]} : vector<8x512xf32> to vector<8x384xf32>
    %309 = arith.negf %308 : vector<8x384xf32>
    %310 = math.exp %309 : vector<8x384xf32>
    %cst_81 = arith.constant 1.000000e+00 : f32
    %311 = vector.broadcast %cst_81 : f32 to vector<8x384xf32>
    %312 = arith.addf %311, %310 : vector<8x384xf32>
    %313 = arith.divf %311, %312 : vector<8x384xf32>
    %314 = vector.extract_strided_slice %307 {offsets = [0, 384], sizes = [8, 128], strides = [1, 1]} : vector<8x512xf32> to vector<8x128xf32>
    %315 = math.tanh %314 : vector<8x128xf32>
    %316 = vector.extract_strided_slice %313 {offsets = [0, 0], sizes = [8, 128], strides = [1, 1]} : vector<8x384xf32> to vector<8x128xf32>
    %317 = vector.extract_strided_slice %313 {offsets = [0, 128], sizes = [8, 128], strides = [1, 1]} : vector<8x384xf32> to vector<8x128xf32>
    %318 = vector.extract_strided_slice %313 {offsets = [0, 256], sizes = [8, 128], strides = [1, 1]} : vector<8x384xf32> to vector<8x128xf32>
    %319 = arith.mulf %317, %300 : vector<8x128xf32>
    %320 = arith.mulf %316, %315 : vector<8x128xf32>
    %321 = arith.addf %319, %320 : vector<8x128xf32>
    %322 = math.tanh %321 : vector<8x128xf32>
    %323 = arith.mulf %318, %322 : vector<8x128xf32>
    %c24_82 = arith.constant 24 : index
    %c0_83 = arith.constant 0 : index
    %324 = vector.load %arg18[%c24_82, %c0_83] : memref<40x128xf32, #tpu.memory_space<vmem>>, vector<8x128xf32>
    tpu.vector_store %arg18[%c24_82, %c0_83], %323 {strides = array<i32>} : memref<40x128xf32, #tpu.memory_space<vmem>>, vector<8x128xf32>,
    %325 = vector.extract_strided_slice %237 {offsets = [32, 0], sizes = [8, 512], strides = [1, 1]} : vector<40x512xf32> to vector<8x512xf32>
    %326 = arith.truncf %323 : vector<8x128xf32> to vector<8x128xbf16>
    %cst_84 = arith.constant dense<0.000000e+00> : vector<8x512xf32>
    %327 = tpu.matmul %326, %238, %cst_84 {dimension_numbers = #tpu.dot_dimension_numbers<[1], [0], [0], [1], [0, 0, 1, 1], [], []>} : vector<8x128xbf16>, vector<128x512xbf16>, vector<8x512xf32> -> vector<8x512xf32>
    %328 = arith.addf %325, %327 : vector<8x512xf32>
    %329 = vector.extract_strided_slice %328 {offsets = [0, 0], sizes = [8, 384], strides = [1, 1]} : vector<8x512xf32> to vector<8x384xf32>
    %330 = arith.negf %329 : vector<8x384xf32>
    %331 = math.exp %330 : vector<8x384xf32>
    %cst_85 = arith.constant 1.000000e+00 : f32
    %332 = vector.broadcast %cst_85 : f32 to vector<8x384xf32>
    %333 = arith.addf %332, %331 : vector<8x384xf32>
    %334 = arith.divf %332, %333 : vector<8x384xf32>
    %335 = vector.extract_strided_slice %328 {offsets = [0, 384], sizes = [8, 128], strides = [1, 1]} : vector<8x512xf32> to vector<8x128xf32>
    %336 = math.tanh %335 : vector<8x128xf32>
    %337 = vector.extract_strided_slice %334 {offsets = [0, 0], sizes = [8, 128], strides = [1, 1]} : vector<8x384xf32> to vector<8x128xf32>
    %338 = vector.extract_strided_slice %334 {offsets = [0, 128], sizes = [8, 128], strides = [1, 1]} : vector<8x384xf32> to vector<8x128xf32>
    %339 = vector.extract_strided_slice %334 {offsets = [0, 256], sizes = [8, 128], strides = [1, 1]} : vector<8x384xf32> to vector<8x128xf32>
    %340 = arith.mulf %338, %321 : vector<8x128xf32>
    %341 = arith.mulf %337, %336 : vector<8x128xf32>
    %342 = arith.addf %340, %341 : vector<8x128xf32>
    %343 = math.tanh %342 : vector<8x128xf32>
    %344 = arith.mulf %339, %343 : vector<8x128xf32>
    %c32_86 = arith.constant 32 : index
    %c0_87 = arith.constant 0 : index
    %345 = vector.load %arg18[%c32_86, %c0_87] : memref<40x128xf32, #tpu.memory_space<vmem>>, vector<8x128xf32>
    tpu.vector_store %arg18[%c32_86, %c0_87], %344 {strides = array<i32>} : memref<40x128xf32, #tpu.memory_space<vmem>>, vector<8x128xf32>,
    %c0_88 = arith.constant 0 : index
    %c0_89 = arith.constant 0 : index
    %346 = vector.load %arg12[%c0_88, %c0_89] : memref<1x256xf32, #tpu.memory_space<vmem>>, vector<1x256xf32>
    %c0_90 = arith.constant 0 : index
    %c0_91 = arith.constant 0 : index
    %347 = vector.load %arg18[%c0_90, %c0_91] : memref<40x128xf32, #tpu.memory_space<vmem>>, vector<8x128xf32>
    %348 = arith.truncf %347 : vector<8x128xf32> to vector<8x128xbf16>
    %c0_92 = arith.constant 0 : index
    %c0_93 = arith.constant 0 : index
    %349 = vector.load %arg11[%c0_92, %c0_93] : memref<640x256xbf16, #tpu.memory_space<vmem>>, vector<128x256xbf16>
    %cst_94 = arith.constant dense<0.000000e+00> : vector<8x256xf32>
    %350 = tpu.matmul %348, %349, %cst_94 {dimension_numbers = #tpu.dot_dimension_numbers<[1], [0], [0], [1], [0, 0, 1, 1], [], []>} : vector<8x128xbf16>, vector<128x256xbf16>, vector<8x256xf32> -> vector<8x256xf32>
    %351 = vector.broadcast %346 : vector<1x256xf32> to vector<8x256xf32>
    %352 = arith.addf %351, %350 : vector<8x256xf32>
    %c8_95 = arith.constant 8 : index
    %c0_96 = arith.constant 0 : index
    %353 = vector.load %arg18[%c8_95, %c0_96] : memref<40x128xf32, #tpu.memory_space<vmem>>, vector<8x128xf32>
    %354 = arith.truncf %353 : vector<8x128xf32> to vector<8x128xbf16>
    %c128 = arith.constant 128 : index
    %c0_97 = arith.constant 0 : index
    %355 = vector.load %arg11[%c128, %c0_97] : memref<640x256xbf16, #tpu.memory_space<vmem>>, vector<128x256xbf16>
    %cst_98 = arith.constant dense<0.000000e+00> : vector<8x256xf32>
    %356 = tpu.matmul %354, %355, %cst_98 {dimension_numbers = #tpu.dot_dimension_numbers<[1], [0], [0], [1], [0, 0, 1, 1], [], []>} : vector<8x128xbf16>, vector<128x256xbf16>, vector<8x256xf32> -> vector<8x256xf32>
    %357 = arith.addf %352, %356 : vector<8x256xf32>
    %c16_99 = arith.constant 16 : index
    %c0_100 = arith.constant 0 : index
    %358 = vector.load %arg18[%c16_99, %c0_100] : memref<40x128xf32, #tpu.memory_space<vmem>>, vector<8x128xf32>
    %359 = arith.truncf %358 : vector<8x128xf32> to vector<8x128xbf16>
    %c256 = arith.constant 256 : index
    %c0_101 = arith.constant 0 : index
    %360 = vector.load %arg11[%c256, %c0_101] : memref<640x256xbf16, #tpu.memory_space<vmem>>, vector<128x256xbf16>
    %cst_102 = arith.constant dense<0.000000e+00> : vector<8x256xf32>
    %361 = tpu.matmul %359, %360, %cst_102 {dimension_numbers = #tpu.dot_dimension_numbers<[1], [0], [0], [1], [0, 0, 1, 1], [], []>} : vector<8x128xbf16>, vector<128x256xbf16>, vector<8x256xf32> -> vector<8x256xf32>
    %362 = arith.addf %357, %361 : vector<8x256xf32>
    %c24_103 = arith.constant 24 : index
    %c0_104 = arith.constant 0 : index
    %363 = vector.load %arg18[%c24_103, %c0_104] : memref<40x128xf32, #tpu.memory_space<vmem>>, vector<8x128xf32>
    %364 = arith.truncf %363 : vector<8x128xf32> to vector<8x128xbf16>
    %c384 = arith.constant 384 : index
    %c0_105 = arith.constant 0 : index
    %365 = vector.load %arg11[%c384, %c0_105] : memref<640x256xbf16, #tpu.memory_space<vmem>>, vector<128x256xbf16>
    %cst_106 = arith.constant dense<0.000000e+00> : vector<8x256xf32>
    %366 = tpu.matmul %364, %365, %cst_106 {dimension_numbers = #tpu.dot_dimension_numbers<[1], [0], [0], [1], [0, 0, 1, 1], [], []>} : vector<8x128xbf16>, vector<128x256xbf16>, vector<8x256xf32> -> vector<8x256xf32>
    %367 = arith.addf %362, %366 : vector<8x256xf32>
    %c32_107 = arith.constant 32 : index
    %c0_108 = arith.constant 0 : index
    %368 = vector.load %arg18[%c32_107, %c0_108] : memref<40x128xf32, #tpu.memory_space<vmem>>, vector<8x128xf32>
    %369 = arith.truncf %368 : vector<8x128xf32> to vector<8x128xbf16>
    %c512 = arith.constant 512 : index
    %c0_109 = arith.constant 0 : index
    %370 = vector.load %arg11[%c512, %c0_109] : memref<640x256xbf16, #tpu.memory_space<vmem>>, vector<128x256xbf16>
    %cst_110 = arith.constant dense<0.000000e+00> : vector<8x256xf32>
    %371 = tpu.matmul %369, %370, %cst_110 {dimension_numbers = #tpu.dot_dimension_numbers<[1], [0], [0], [1], [0, 0, 1, 1], [], []>} : vector<8x128xbf16>, vector<128x256xbf16>, vector<8x256xf32> -> vector<8x256xf32>
    %372 = arith.addf %367, %371 : vector<8x256xf32>
    %373 = math.tanh %372 : vector<8x256xf32>
    %374 = arith.truncf %373 : vector<8x256xf32> to vector<8x256xbf16>
    %c0_111 = arith.constant 0 : index
    %c0_112 = arith.constant 0 : index
    %375 = vector.load %arg13[%c0_111, %c0_112] : memref<256x128xbf16, #tpu.memory_space<vmem>>, vector<256x128xbf16>
    %cst_113 = arith.constant dense<0.000000e+00> : vector<8x128xf32>
    %376 = tpu.matmul %374, %375, %cst_113 {dimension_numbers = #tpu.dot_dimension_numbers<[1], [0], [0], [1], [0, 0, 1, 1], [], []>} : vector<8x256xbf16>, vector<256x128xbf16>, vector<8x128xf32> -> vector<8x128xf32>
    %c0_114 = arith.constant 0 : index
    %c0_115 = arith.constant 0 : index
    %377 = vector.load %arg14[%c0_114, %c0_115] : memref<1x128xf32, #tpu.memory_space<vmem>>, vector<1x128xf32>
    %378 = vector.broadcast %377 : vector<1x128xf32> to vector<8x128xf32>
    %379 = arith.addf %376, %378 : vector<8x128xf32>
    %380 = math.tanh %379 : vector<8x128xf32>
    %381 = arith.truncf %380 : vector<8x128xf32> to vector<8x128xbf16>
    %c0_116 = arith.constant 0 : index
    %c0_117 = arith.constant 0 : index
    %382 = vector.load %arg15[%c0_116, %c0_117] : memref<128x128xbf16, #tpu.memory_space<vmem>>, vector<128x128xbf16>
    %cst_118 = arith.constant dense<0.000000e+00> : vector<8x128xf32>
    %383 = tpu.matmul %381, %382, %cst_118 {dimension_numbers = #tpu.dot_dimension_numbers<[1], [0], [0], [1], [0, 0, 1, 1], [], []>} : vector<8x128xbf16>, vector<128x128xbf16>, vector<8x128xf32> -> vector<8x128xf32>
    %c0_119 = arith.constant 0 : index
    %c0_120 = arith.constant 0 : index
    %384 = vector.load %arg16[%c0_119, %c0_120] : memref<1x128xf32, #tpu.memory_space<vmem>>, vector<1x128xf32>
    %385 = vector.broadcast %384 : vector<1x128xf32> to vector<8x128xf32>
    %386 = arith.addf %383, %385 : vector<8x128xf32>
    %c0_121 = arith.constant 0 : index
    %c0_122 = arith.constant 0 : index
    %387 = vector.load %arg17[%c0_121, %c0_122] : memref<8x128xf32, #tpu.memory_space<vmem>>, vector<8x128xf32>
    tpu.vector_store %arg17[%c0_121, %c0_122], %386 {strides = array<i32>} : memref<8x128xf32, #tpu.memory_space<vmem>>, vector<8x128xf32>,
    return
  }
  func.func @transform_0(%arg0: i32) -> (i32, i32, i32) {
    %c0_i32 = arith.constant 0 : i32
    %c0_i32_0 = arith.constant 0 : i32
    %c0_i32_1 = arith.constant 0 : i32
    return %c0_i32, %arg0, %c0_i32_0 : i32, i32, i32
  }
  func.func @transform_1(%arg0: i32) -> (i32, i32) {
    %c0_i32 = arith.constant 0 : i32
    %c0_i32_0 = arith.constant 0 : i32
    %c0_i32_1 = arith.constant 0 : i32
    return %c0_i32, %c0_i32_0 : i32, i32
  }
  func.func @transform_2(%arg0: i32) -> (i32, i32) {
    %c0_i32 = arith.constant 0 : i32
    %c0_i32_0 = arith.constant 0 : i32
    %c0_i32_1 = arith.constant 0 : i32
    return %c0_i32, %c0_i32_0 : i32, i32
  }
  func.func @transform_3(%arg0: i32) -> (i32, i32) {
    %c0_i32 = arith.constant 0 : i32
    %c0_i32_0 = arith.constant 0 : i32
    %c0_i32_1 = arith.constant 0 : i32
    return %c0_i32, %c0_i32_0 : i32, i32
  }
  func.func @transform_4(%arg0: i32) -> (i32, i32) {
    %c0_i32 = arith.constant 0 : i32
    %c0_i32_0 = arith.constant 0 : i32
    %c0_i32_1 = arith.constant 0 : i32
    return %c0_i32, %c0_i32_0 : i32, i32
  }
  func.func @transform_5(%arg0: i32) -> (i32, i32) {
    %c0_i32 = arith.constant 0 : i32
    %c0_i32_0 = arith.constant 0 : i32
    %c0_i32_1 = arith.constant 0 : i32
    return %c0_i32, %c0_i32_0 : i32, i32
  }
  func.func @transform_6(%arg0: i32) -> (i32, i32) {
    %c0_i32 = arith.constant 0 : i32
    %c0_i32_0 = arith.constant 0 : i32
    %c0_i32_1 = arith.constant 0 : i32
    return %c0_i32, %c0_i32_0 : i32, i32
  }
  func.func @transform_7(%arg0: i32) -> (i32, i32) {
    %c0_i32 = arith.constant 0 : i32
    %c0_i32_0 = arith.constant 0 : i32
    %c0_i32_1 = arith.constant 0 : i32
    return %c0_i32, %c0_i32_0 : i32, i32
  }
  func.func @transform_8(%arg0: i32) -> (i32, i32) {
    %c0_i32 = arith.constant 0 : i32
    %c0_i32_0 = arith.constant 0 : i32
    %c0_i32_1 = arith.constant 0 : i32
    return %c0_i32, %c0_i32_0 : i32, i32
  }
  func.func @transform_9(%arg0: i32) -> (i32, i32) {
    %c0_i32 = arith.constant 0 : i32
    %c0_i32_0 = arith.constant 0 : i32
    %c0_i32_1 = arith.constant 0 : i32
    return %c0_i32, %c0_i32_0 : i32, i32
  }
  func.func @transform_10(%arg0: i32) -> (i32, i32) {
    %c0_i32 = arith.constant 0 : i32
    %c0_i32_0 = arith.constant 0 : i32
    %c0_i32_1 = arith.constant 0 : i32
    return %c0_i32, %c0_i32_0 : i32, i32
  }
  func.func @transform_11(%arg0: i32) -> (i32, i32) {
    %c0_i32 = arith.constant 0 : i32
    %c0_i32_0 = arith.constant 0 : i32
    %c0_i32_1 = arith.constant 0 : i32
    return %c0_i32, %c0_i32_0 : i32, i32
  }
  func.func @transform_12(%arg0: i32) -> (i32, i32) {
    %c0_i32 = arith.constant 0 : i32
    %c0_i32_0 = arith.constant 0 : i32
    %c0_i32_1 = arith.constant 0 : i32
    return %c0_i32, %c0_i32_0 : i32, i32
  }
  func.func @transform_13(%arg0: i32) -> (i32, i32) {
    %c0_i32 = arith.constant 0 : i32
    %c0_i32_0 = arith.constant 0 : i32
    %c0_i32_1 = arith.constant 0 : i32
    return %c0_i32, %c0_i32_0 : i32, i32
  }
  func.func @transform_14(%arg0: i32) -> (i32, i32) {
    %c0_i32 = arith.constant 0 : i32
    %c0_i32_0 = arith.constant 0 : i32
    %c0_i32_1 = arith.constant 0 : i32
    return %c0_i32, %c0_i32_0 : i32, i32
  }
  func.func @transform_15(%arg0: i32) -> (i32, i32) {
    %c0_i32 = arith.constant 0 : i32
    %c0_i32_0 = arith.constant 0 : i32
    %c0_i32_1 = arith.constant 0 : i32
    return %c0_i32, %c0_i32_0 : i32, i32
  }
  func.func @transform_16(%arg0: i32) -> (i32, i32) {
    %c0_i32 = arith.constant 0 : i32
    %c0_i32_0 = arith.constant 0 : i32
    return %arg0, %c0_i32 : i32, i32
  }
}

</mosaic_0001>

<bundles_post_ra>
// kernel: tpu_custom_call.1
= control target key start
LH: loop header
LB: loop body
LE: loop exit
PB: predicated region body
PF: predicated region fallthrough
CT: control target
= control target key end

     0   :  { %s6906_s0 = inlined_call_operand.hbm [shape: f32[5,8,8], index: 0, kind: input, shape index: {}]   ;;  %s6907_s1 = inlined_call_operand.hbm [shape: bf16[8,512], index: 1, kind: input, shape index: {}]   ;;  %s6908_s2 = inlined_call_operand.hbm [shape: bf16[128,512], index: 2, kind: input, shape index: {}]   ;;  %s6909_s3 = inlined_call_operand.vmem [shape: f32[1,512], index: 3, kind: input, shape index: {}]   ;;  %s6910_s4 = inlined_call_operand.hbm [shape: bf16[128,512], index: 4, kind: input, shape index: {}]   ;;  %s6911_s5 = inlined_call_operand.hbm [shape: bf16[128,512], index: 5, kind: input, shape index: {}]   ;;  %s6912_s6 = inlined_call_operand.vmem [shape: f32[1,512], index: 6, kind: input, shape index: {}]   ;;  %s6913_s7 = inlined_call_operand.hbm [shape: bf16[128,512], index: 7, kind: input, shape index: {}]   ;;  %s6914_s8 = inlined_call_operand.hbm [shape: bf16[128,512], index: 8, kind: input, shape index: {}]   ;;  %s6915_s9 = inlined_call_operand.vmem [shape: f32[1,512], index: 9, kind: input, shape index: {}]   ;;  %s6916_s10 = inlined_call_operand.hbm [shape: bf16[640,256], index: 10, kind: input, shape index: {}]   ;;  %s6917_s11 = inlined_call_operand.vmem [shape: f32[1,256], index: 11, kind: input, shape index: {}]   ;;  %s6918_s12 = inlined_call_operand.hbm [shape: bf16[256,128], index: 12, kind: input, shape index: {}]   ;;  %s6919_s13 = inlined_call_operand.vmem [shape: f32[1,128], index: 13, kind: input, shape index: {}]   ;;  %s6920_s14 = inlined_call_operand.hbm [shape: bf16[128,128], index: 14, kind: input, shape index: {}]   ;;  %s6921_s15 = inlined_call_operand.vmem [shape: f32[1,128], index: 15, kind: input, shape index: {}]   ;;  %s6922_s16 = inlined_call_operand.hbm [shape: f32[8,128], index: 16, kind: output, shape index: {}]  }
   0x1   :  { %6933 = sst [smem:[#allocation42_spill]] %s6906_s0 }
   0x2   :  { %21 = vsyncpa [#allocation4], 0 }
   0x3   :  { %22 = vsyncpa [#allocation7], 0 }
   0x4   :  { %23 = vsyncpa [#allocation10], 0 }
   0x5   :  { %24 = vsyncpa [#allocation13], 0 }
   0x6   :  { %25 = vsyncpa [#allocation16], 0 }
   0x7   :  { %26 = vsyncpa [#allocation19], 0 }
   0x8   :  { %27 = vsyncpa [#allocation5], 0  ;;  %s5636_s21 = smov [#allocation6]  }
   0x9   :  { %s46_s22 = sshll.u32 %s5636_s21, 4  ;;  %s47_s22 = int_to_ptr.vmem [resolvable:$true] %s46_s22 }
   0xa   :  { %s5410_s23 = scalar_lea.vmem %s47_s22, 256  ;;  %p5415_p1 = scmp.lt.s32.totalorder %s47_s22, %s47_s22 }
   0xb   :  { %p5411_p0 = scmp.ne.s32.totalorder %s47_s22, %s5410_s23  ;;  %p5416_p2 = scmp.lt.s32.totalorder %s5410_s23, %s5410_s23 }
   0xd   :  { %p5417_p3 = por %p5416_p2, %p5415_p1 }
   0xf   :  { %p5418_p4 = pnand %p5417_p3, %p5411_p0 }
  0x11   :  { %5421 = shalt.err (!%p5418_p4)
}
  0x12   :  { %49 = dma.hbm_to_vmem [thread:$0]  %s6907_s1, 256, %s47_s22, [#allocation7]  }
  0x13   :  { %s5637_s26 = smov [#allocation9]   ;;  %s5638_s28 = smov [#allocation12]  }
  0x14   :  { %s69_s27 = sshll.u32 %s5637_s26, 4  ;;  %s95_s29 = sshll.u32 %s5638_s28, 4  ;;  %s70_s27 = int_to_ptr.vmem [resolvable:$true] %s69_s27  ;;  %s96_s29 = int_to_ptr.vmem [resolvable:$true] %s95_s29 }
  0x15   :  { %s5430_s30 = scalar_lea.vmem %s70_s27, 4096  ;;  %p5435_p6 = scmp.lt.s32.totalorder %s70_s27, %s70_s27 }
  0x16   :  { %p5431_p5 = scmp.ne.s32.totalorder %s70_s27, %s5430_s30  ;;  %p5436_p7 = scmp.lt.s32.totalorder %s5430_s30, %s5430_s30 }
  0x18   :  { %p5437_p8 = por %p5436_p7, %p5435_p6 }
  0x1a   :  { %p5438_p9 = pnand %p5437_p8, %p5431_p5 }
  0x1c   :  { %5441 = shalt.err (!%p5438_p9)
}
  0x1d   :  { %s5639_s0 = smov 256   ;;  %s5640_s17 = smov 16  }
  0x1e   :  { %75 = dma.hbm_to_vmem [thread:$0]  %s6910_s4, 4096, %s70_s27, [#allocation10], %s5639_s0, %s5639_s0, %s5640_s17  }
  0x1f   :  { %s5450_s1 = scalar_lea.vmem %s96_s29, 4096  ;;  %p5455_p11 = scmp.lt.s32.totalorder %s96_s29, %s96_s29 }
  0x20   :  { %p5451_p10 = scmp.ne.s32.totalorder %s96_s29, %s5450_s1  ;;  %p5456_p12 = scmp.lt.s32.totalorder %s5450_s1, %s5450_s1 }
  0x22   :  { %p5457_p13 = por %p5456_p12, %p5455_p11 }
  0x24   :  { %p5458_p0 = pnand %p5457_p13, %p5451_p10 }
  0x26   :  { %5461 = shalt.err (!%p5458_p0)
}
  0x27   :  { %101 = dma.hbm_to_vmem [thread:$0]  %s6913_s7, 4096, %s96_s29, [#allocation13], %s5639_s0, %s5639_s0, %s5640_s17  }
  0x28   :  { %s5641_s22 = smov [#allocation15]   ;;  %s5642_s24 = smov [#allocation3]  }
  0x29   :  { %s121_s23 = sshll.u32 %s5641_s22, 4  ;;  %s33_s4 = sshll.u32 %s5642_s24, 4  ;;  %s122_s23 = int_to_ptr.vmem [resolvable:$true] %s121_s23  ;;  %s34_s4 = int_to_ptr.vmem [resolvable:$true] %s33_s4 }
  0x2a   :  { %s5470_s25 = scalar_lea.vmem %s122_s23, 10240  ;;  %p5475_p2 = scmp.lt.s32.totalorder %s122_s23, %s122_s23 }
  0x2b   :  { %p5471_p1 = scmp.ne.s32.totalorder %s122_s23, %s5470_s25  ;;  %p5476_p3 = scmp.lt.s32.totalorder %s5470_s25, %s5470_s25 }
  0x2d   :  { %p5477_p4 = por %p5476_p3, %p5475_p2 }
  0x2f   :  { %p5478_p5 = pnand %p5477_p4, %p5471_p1 }
  0x31   :  { %5481 = shalt.err (!%p5478_p5)
}
  0x32   :  { %s5643_s26 = smov 128   ;;  %s5644_s27 = smov 8  }
  0x33   :  { %127 = dma.hbm_to_vmem [thread:$0]  %s6916_s10, 10240, %s122_s23, [#allocation16], %s5643_s26, %s5643_s26, %s5644_s27  }
  0x34   :  { %s5490_s7 = scalar_lea.vmem %s34_s4, 640  ;;  %p5495_p7 = scmp.lt.s32.totalorder %s34_s4, %s34_s4 }
  0x35   :  { %p5491_p6 = scmp.ne.s32.totalorder %s34_s4, %s5490_s7  ;;  %p5496_p8 = scmp.lt.s32.totalorder %s5490_s7, %s5490_s7 }
  0x37   :  { %p5497_p9 = por %p5496_p8, %p5495_p7 }
  0x39   :  { %p5498_p10 = pnand %p5497_p9, %p5491_p6 }
  0x3b   :  { %5501 = shalt.err (!%p5498_p10)
}
  0x3c   :  { %s6934_s19 = sld [smem:[#allocation42_spill]]  ;;  %s5645_s1 = smov [#allocation8]  }
  0x3d   :  { %s55_s20 = sshll.u32 %s5645_s1, 4  ;;  %s5646_s21 = smov [#allocation11]   ;;  %s56_s20 = int_to_ptr.vmem [resolvable:$true] %s55_s20 }
  0x3e   :  { %s81_s22 = sshll.u32 %s5646_s21, 4  ;;  %s5510_s24 = scalar_lea.vmem %s56_s20, 4096  ;;  %s82_s22 = int_to_ptr.vmem [resolvable:$true] %s81_s22 }
  0x3f   :  { %p5511_p11 = scmp.ne.s32.totalorder %s56_s20, %s5510_s24  ;;  %p5515_p12 = scmp.lt.s32.totalorder %s56_s20, %s56_s20 }
  0x40   :  { %p5516_p13 = scmp.lt.s32.totalorder %s5510_s24, %s5510_s24 }
  0x42   :  { %39 = dma.hbm_to_vmem [thread:$0]  %s6934_s19, 640, %s34_s4, [#allocation4], %s5643_s26, %s5643_s26, %s5644_s27  }
  0x43   :  { %p5517_p0 = por %p5516_p13, %p5515_p12 }
  0x45   :  { %p5518_p1 = pnand %p5517_p0, %p5511_p11 }
  0x47   :  { %5521 = shalt.err (!%p5518_p1)
}
  0x48   :  { %61 = dma.hbm_to_vmem [thread:$0]  %s6908_s2, 4096, %s56_s20, [#allocation7], %s5639_s0, %s5639_s0, %s5640_s17  }
  0x49   :  { %s5530_s4 = scalar_lea.vmem %s82_s22, 4096  ;;  %p5535_p3 = scmp.lt.s32.totalorder %s82_s22, %s82_s22 }
  0x4a   :  { %p5531_p2 = scmp.ne.s32.totalorder %s82_s22, %s5530_s4  ;;  %p5536_p4 = scmp.lt.s32.totalorder %s5530_s4, %s5530_s4 }
  0x4c   :  { %p5537_p5 = por %p5536_p4, %p5535_p3 }
  0x4e   :  { %p5538_p6 = pnand %p5537_p5, %p5531_p2 }
  0x50   :  { %5541 = shalt.err (!%p5538_p6)
}
  0x51   :  { %87 = dma.hbm_to_vmem [thread:$0]  %s6911_s5, 4096, %s82_s22, [#allocation10], %s5639_s0, %s5639_s0, %s5640_s17  }
  0x52   :  { %s5647_s27 = smov [#allocation14]   ;;  %s5648_s30 = smov [#allocation17]  }
  0x53   :  { %s107_s28 = sshll.u32 %s5647_s27, 4  ;;  %s135_s2 = sshll.u32 %s5648_s30, 4  ;;  %s108_s28 = int_to_ptr.vmem [resolvable:$true] %s107_s28  ;;  %s136_s2 = int_to_ptr.vmem [resolvable:$true] %s135_s2 }
  0x54   :  { %s5550_s7 = scalar_lea.vmem %s108_s28, 4096  ;;  %p5555_p8 = scmp.lt.s32.totalorder %s108_s28, %s108_s28 }
  0x55   :  { %p5551_p7 = scmp.ne.s32.totalorder %s108_s28, %s5550_s7  ;;  %p5556_p9 = scmp.lt.s32.totalorder %s5550_s7, %s5550_s7 }
  0x57   :  { %p5557_p10 = por %p5556_p9, %p5555_p8 }
  0x59   :  { %p5558_p11 = pnand %p5557_p10, %p5551_p7 }
  0x5b   :  { %5561 = shalt.err (!%p5558_p11)
}
  0x5c   :  { %113 = dma.hbm_to_vmem [thread:$0]  %s6914_s8, 4096, %s108_s28, [#allocation13], %s5639_s0, %s5639_s0, %s5640_s17  }
  0x5d   :  { %s5570_s5 = scalar_lea.vmem %s136_s2, 2048  ;;  %p5575_p13 = scmp.lt.s32.totalorder %s136_s2, %s136_s2 }
  0x5e   :  { %p5571_p12 = scmp.ne.s32.totalorder %s136_s2, %s5570_s5  ;;  %p5576_p0 = scmp.lt.s32.totalorder %s5570_s5, %s5570_s5 }
  0x60   :  { %p5577_p1 = por %p5576_p0, %p5575_p13 }
  0x62   :  { %p5578_p2 = pnand %p5577_p1, %p5571_p12 }
  0x64   :  { %5581 = shalt.err (!%p5578_p2)
}
  0x65   :  { %s5649_s19 = smov 64   ;;  %s5650_s1 = smov 4  }
  0x66   :  { %141 = dma.hbm_to_vmem [thread:$0]  %s6918_s12, 2048, %s136_s2, [#allocation16], %s5649_s19, %s5649_s19, %s5650_s1  }
  0x67   :  { %s5651_s22 = smov [#allocation18]  }
  0x68   :  { %s149_s24 = sshll.u32 %s5651_s22, 4  ;;  %s150_s24 = int_to_ptr.vmem [resolvable:$true] %s149_s24 }
  0x69   :  { %s5590_s10 = scalar_lea.vmem %s150_s24, 1024  ;;  %p5595_p4 = scmp.lt.s32.totalorder %s150_s24, %s150_s24 }
  0x6a   :  { %p5591_p3 = scmp.ne.s32.totalorder %s150_s24, %s5590_s10  ;;  %p5596_p5 = scmp.lt.s32.totalorder %s5590_s10, %s5590_s10 }
  0x6c   :  { %p5597_p6 = por %p5596_p5, %p5595_p4 }
  0x6e   :  { %p5598_p7 = pnand %p5597_p6, %p5591_p3 }
  0x70   :  { %5601 = shalt.err (!%p5598_p7)
}
  0x71   :  { %155 = dma.hbm_to_vmem [thread:$0]  %s6920_s14, 1024, %s150_s24, [#allocation19], %s5649_s19, %s5649_s19, %s5650_s1  }
  0x72   :  { %5622 = dma.done.wait [#allocation4], 640  }
  0x73   :  { %5623 = vsyncadd [#allocation4], 4294966656 }
  0x74   :  { %5624 = dma.done.wait [#allocation7], 4352  }
  0x75   :  { %5625 = vsyncadd [#allocation7], 4294962944 }
  0x76   :  { %5626 = dma.done.wait [#allocation10], 8192  }
  0x77   :  { %5627 = vsyncadd [#allocation10], 4294959104 }
  0x78   :  { %5628 = dma.done.wait [#allocation13], 8192  }
  0x79   :  { %5629 = vsyncadd [#allocation13], 4294959104 }
  0x7a   :  { %5630 = dma.done.wait [#allocation16], 12288  }
  0x7b   :  { %5631 = vsyncadd [#allocation16], 4294955008 }
  0x7c   :  { %5632 = dma.done.wait [#allocation19], 1024  }
  0x7d   :  { %5633 = vsyncadd [#allocation19], 4294966272  ;;  %v6923_v0 = vmov 0   ;;  %v197_v1 = vld [vmem:[#allocation6] sm:$0xff]  ;;  %vm241_vm0 = vcmask 1043456   ;;  %v189_v6 = vld [vmem:[#allocation3] sm:$0xff]  ;;  %v201_v49 = vlaneseq }
  0x7e   :  { %286 = vmatprep.mubr.bf16.mxu1 %v6923_v0  ;;  %600 = vmatprep.mubr.bf16.mxu0 %v6923_v0  ;;  %v4348_v2 = vcombine.high %v197_v1, %v197_v1  ;;  %v5788_v3 = vld [vmem:[#allocation8 + $0xe4] ss:$16 sps:$4 sm:$0xff]   ;;  %v4347_v4 = vcombine.low %v197_v1, %v197_v1  ;;  %v5790_v5 = vld [vmem:[#allocation8 + $0xe0] ss:$16 sps:$4 sm:$0xff]   ;;  %v198_v8 = vld [vmem:[#allocation6 + $0x8] sm:$0xff]  ;;  %vm231_vm1 = vcmask 64512  }
  0x7f   :  { %v190_v7 = vld [vmem:[#allocation3 + $0x8] sm:$0xff]  ;;  %568 = vmatprep.subr.bf16.mxu0 %v5788_v3  ;;  %v4350_v11 = vcombine.high %v198_v8, %v198_v8  ;;  %v4349_v13 = vcombine.low %v198_v8, %v198_v8  ;;  %v191_v18 = vld [vmem:[#allocation3 + $0x10] sm:$0xff]  ;;  %v192_v19 = vld [vmem:[#allocation3 + $0x18] sm:$0xff]  ;;  %v202_v50 = vshrl.u32 %v201_v49, 7  ;;  %vm5654_vm2 = vmmov 0   ;;  %s5655_s28 = smov [#allocation20]  }
  0x80   :  { %4351 = vmatprep.subr.msk.bf16.mxu1 %vm241_vm0, %v4348_v2  ;;  %v243_v9 = vsel %vm241_vm0, %v4347_v4, 0  ;;  %v194_v10 = vpack.c.bf16 %v190_v7, %v189_v6  ;;  %v5795_v12 = vld [vmem:[#allocation8 + $0xc4] ss:$16 sps:$4 sm:$0xff]   ;;  %569 = vmatpush1.bf16.msra.mxu0 %v5790_v5  ;;  %v5798_v14 = vld [vmem:[#allocation8 + $0xc0] ss:$16 sps:$4 sm:$0xff]   ;;  %v195_v21 = vpack.c.bf16 %v192_v19, %v191_v18  ;;  %v193_v26 = vld [vmem:[#allocation3 + $0x20] sm:$0xff] }
  0x81   :  { %269 = vmatpush1.bf16.msra.mxu1 %v243_v9  ;;  %570 = vmatprep.subr.bf16.mxu0 %v5795_v12  ;;  %v249_v15 = vsel %vm241_vm0, %v4349_v13, 0  ;;  %v5803_v16 = vld [vmem:[#allocation8 + $0xa4] ss:$16 sps:$4 sm:$0xff]   ;;  %v5807_v17 = vld [vmem:[#allocation8 + $0xa0] ss:$16 sps:$4 sm:$0xff]   ;;  %v196_v28 = vpack.c.bf16 %v193_v26, %v193_v26  ;;  %v5938_v51 = vsub.s32 0, %v202_v50 }
  0x82   :  { %4355 = vmatprep.subr.msk.bf16.mxu1 %vm241_vm0, %v4350_v11  ;;  %v5811_v20 = vld [vmem:[#allocation8 + $0x84] ss:$16 sps:$4 sm:$0xff]   ;;  %v5813_v22 = vld [vmem:[#allocation8 + $0x80] ss:$16 sps:$4 sm:$0xff]   ;;  %v5816_v23 = vld [vmem:[#allocation8 + $0xec] ss:$16 sps:$4 sm:$0xff]  }
  0x83   :  { %v5819_v24 = vld [vmem:[#allocation8 + $0x64] ss:$16 sps:$4 sm:$0xff]   ;;  %v5824_v25 = vld [vmem:[#allocation8 + $0x60] ss:$16 sps:$4 sm:$0xff]   ;;  %v5844_v33 = vld [vmem:[#allocation8 + $0xe8] ss:$16 sps:$4 sm:$0xff]  }
  0x84   :  { %4352 = vmatmul.mubr.msk.bf16.vlgmr.msra.gmra.mxu1 %vm231_vm1, %v194_v10  ;;  %571 = vmatpush1.bf16.msra.mxu0 %v5798_v14  ;;  %v5828_v27 = vld [vmem:[#allocation8 + $0x44] ss:$16 sps:$4 sm:$0xff]   ;;  %v5831_v29 = vld [vmem:[#allocation8 + $0x40] ss:$16 sps:$4 sm:$0xff]   ;;  %v5848_v35 = vld [vmem:[#allocation8 + $0xcc] ss:$16 sps:$4 sm:$0xff]  }
  0x85   :  { %330 = vmatpush1.bf16.msra.mxu1 %v249_v15  ;;  %572 = vmatprep.subr.bf16.mxu0 %v5803_v16  ;;  %v5834_v30 = vld [vmem:[#allocation8 + $0x24] ss:$16 sps:$4 sm:$0xff]   ;;  %v5837_v31 = vld [vmem:[#allocation8 + $0x20] ss:$16 sps:$4 sm:$0xff]   ;;  %v5852_v36 = vld [vmem:[#allocation8 + $0xc8] ss:$16 sps:$4 sm:$0xff]  }
  0x86   :  { %296 = vmatprep.mubr.bf16.mxu1 %v6923_v0  ;;  %609 = vmatprep.subr.bf16.mxu1 %v5816_v23  ;;  %v5839_v32 = vld [vmem:[#allocation8 + $0x4] ss:$16 sps:$4 sm:$0xff]   ;;  %v5846_v34 = vld [vmem:[#allocation8] ss:$16 sps:$4 sm:$0xff]   ;;  %v5855_v37 = vld [vmem:[#allocation8 + $0xac] ss:$16 sps:$4 sm:$0xff]  }
  0x87   :  { %v5861_v38 = vld [vmem:[#allocation8 + $0xa8] ss:$16 sps:$4 sm:$0xff]   ;;  %v5865_v39 = vld [vmem:[#allocation8 + $0x8c] ss:$16 sps:$4 sm:$0xff]   ;;  %6935 = vst [vmem:[#allocation28_spill] sm:$0xff] %v5938_v51  ;;  %v5944_v57 = vsub.s32 1, %v202_v50 }
  0x88   :  { %573 = vmatpush1.bf16.msra.mxu0 %v5807_v17  ;;  %v5871_v40 = vld [vmem:[#allocation8 + $0x88] ss:$16 sps:$4 sm:$0xff]   ;;  %v5875_v41 = vld [vmem:[#allocation8 + $0x6c] ss:$16 sps:$4 sm:$0xff]   ;;  %v5967_v13 = vsub.s32 2, %v202_v50  ;;  %v5969_v18 = vsub.s32 3, %v202_v50 }
  0x89   :  { %574 = vmatprep.subr.bf16.mxu0 %v5811_v20  ;;  %v5881_v42 = vld [vmem:[#allocation8 + $0x68] ss:$16 sps:$4 sm:$0xff]   ;;  %v5884_v43 = vld [vmem:[#allocation8 + $0x4c] ss:$16 sps:$4 sm:$0xff]   ;;  %6936 = vst [vmem:[#allocation29_spill] sm:$0xff] %v5944_v57  ;;  %s4333_s30 = sshll.u32 %s5655_s28, 4  ;;  %s4334_s30 = int_to_ptr.vmem [resolvable:$true] %s4333_s30 }
  0x8a   :  { %v5889_v44 = vld [vmem:[#allocation8 + $0x48] ss:$16 sps:$4 sm:$0xff]   ;;  %v5893_v45 = vld [vmem:[#allocation8 + $0x2c] ss:$16 sps:$4 sm:$0xff]   ;;  %6939 = vst [vmem:[#allocation32_spill] sm:$0xff] %v5967_v13  ;;  %6940 = vst [vmem:[#allocation33_spill] sm:$0xff] %v5969_v18  ;;  %p5607_p9 = scmp.lt.s32.totalorder %s4334_s30, %s4334_s30 }
  0x8b   :  { %v5899_v46 = vld [vmem:[#allocation8 + $0x28] ss:$16 sps:$4 sm:$0xff]   ;;  %v5902_v47 = vld [vmem:[#allocation8 + $0xc] ss:$16 sps:$4 sm:$0xff]  }
  0x8c   :  { %4353 = vmatmul.mubr.msk.bf16.gmra.mxu1 %vm231_vm1, %v195_v21  ;;  %575 = vmatpush1.bf16.msra.mxu0 %v5813_v22  ;;  %v5907_v48 = vld [vmem:[#allocation8 + $0x8] ss:$16 sps:$4 sm:$0xff]  }
  0x8d   :  { %306 = vmatprep.mubr.bf16.mxu1 %v6923_v0  ;;  %576 = vmatprep.subr.bf16.mxu0 %v5819_v24  ;;  %v199_v52 = vld [vmem:[%s6909_s3] sm:$0xf] }
  0x8e   :  { %v204_v55 = vrot.slane %v199_v52, %v5938_v51  ;;  %v5951_v61 = vrot.slane %v199_v52, %v5944_v57 }
  0x90   :  { %577 = vmatpush1.bf16.msra.mxu0 %v5824_v25 }
  0x91   :  { %578 = vmatprep.subr.bf16.mxu0 %v5828_v27 }
  0x94   :  { %4354 = vmatmul.mubr.msk.bf16.gmra.mxu1 %vm231_vm1, %v196_v28  ;;  %579 = vmatpush1.bf16.msra.mxu0 %v5831_v29 }
  0x95   :  { %347 = vmatprep.mubr.bf16.mxu1 %v6923_v0  ;;  %580 = vmatprep.subr.bf16.mxu0 %v5834_v30 }
  0x98   :  { %581 = vmatpush1.bf16.msra.mxu0 %v5837_v31 }
  0x99   :  { %582 = vmatprep.subr.bf16.mxu0 %v5839_v32 }
  0x9c   :  { %4356 = vmatmul.mubr.msk.bf16.vlgmr.msra.gmra.mxu1 %vm231_vm1, %v194_v10  ;;  %583 = vmatpush1.bf16.msra.mxu0 %v5846_v34 }
  0x9d   :  { %610 = vmatpush1.bf16.msra.mxu1 %v5844_v33  ;;  %357 = vmatprep.mubr.bf16.mxu1 %v6923_v0 }
  0x9e   :  { %611 = vmatprep.subr.bf16.mxu1 %v5848_v35  ;;  %680 = vmatprep.subr.bf16.mxu0 %v5788_v3 }
  0x9f   :  { %601 = vmatmul.mubr.bf16.vlgmr.msra.gmra.mxu0 %v6923_v0 }
  0xa0   :  { %681 = vmatpush1.bf16.msra.mxu0 %v5790_v5  ;;  %712 = vmatprep.mubr.bf16.mxu0 %v6923_v0 }
  0xa1   :  { %612 = vmatpush1.bf16.msra.mxu1 %v5852_v36  ;;  %682 = vmatprep.subr.bf16.mxu0 %v5795_v12 }
  0xa2   :  { %613 = vmatprep.subr.bf16.mxu1 %v5855_v37 }
  0xa4   :  { %4357 = vmatmul.mubr.msk.bf16.gmra.mxu1 %vm231_vm1, %v195_v21  ;;  %683 = vmatpush1.bf16.msra.mxu0 %v5798_v14  ;;  %v212_v21 = vrot.slane %v199_v52, %v5967_v13 }
  0xa5   :  { %614 = vmatpush1.bf16.msra.mxu1 %v5861_v38  ;;  %367 = vmatprep.mubr.bf16.mxu1 %v6923_v0 }
  0xa6   :  { %615 = vmatprep.subr.bf16.mxu1 %v5865_v39  ;;  %684 = vmatprep.subr.bf16.mxu0 %v5803_v16 }
  0xa8   :  { %685 = vmatpush1.bf16.msra.mxu0 %v5807_v17 }
  0xa9   :  { %616 = vmatpush1.bf16.msra.mxu1 %v5871_v40  ;;  %686 = vmatprep.subr.bf16.mxu0 %v5811_v20 }
  0xaa   :  { %617 = vmatprep.subr.bf16.mxu1 %v5875_v41 }
  0xac   :  { %4358 = vmatmul.mubr.msk.bf16.gmra.mxu1 %vm231_vm1, %v196_v28  ;;  %687 = vmatpush1.bf16.msra.mxu0 %v5813_v22 }
  0xad   :  { %618 = vmatpush1.bf16.msra.mxu1 %v5881_v42  ;;  %641 = vmatprep.mubr.bf16.mxu1 %v6923_v0 }
  0xae   :  { %619 = vmatprep.subr.bf16.mxu1 %v5884_v43  ;;  %688 = vmatprep.subr.bf16.mxu0 %v5819_v24 }
  0xb0   :  { %689 = vmatpush1.bf16.msra.mxu0 %v5824_v25 }
  0xb1   :  { %620 = vmatpush1.bf16.msra.mxu1 %v5889_v44  ;;  %690 = vmatprep.subr.bf16.mxu0 %v5828_v27 }
  0xb2   :  { %621 = vmatprep.subr.bf16.mxu1 %v5893_v45 }
  0xb4   :  { %691 = vmatpush1.bf16.msra.mxu0 %v5831_v29 }
  0xb5   :  { %622 = vmatpush1.bf16.msra.mxu1 %v5899_v46  ;;  %692 = vmatprep.subr.bf16.mxu0 %v5834_v30 }
  0xb6   :  { %623 = vmatprep.subr.bf16.mxu1 %v5902_v47 }
  0xb8   :  { %693 = vmatpush1.bf16.msra.mxu0 %v5837_v31 }
  0xb9   :  { %624 = vmatpush1.bf16.msra.mxu1 %v5907_v48  ;;  %694 = vmatprep.subr.bf16.mxu0 %v5839_v32 }
  0xba   :  { %721 = vmatprep.subr.bf16.mxu1 %v5816_v23 }
  0xbc   :  { %642 = vmatmul.mubr.bf16.vlgmr.msra.gmra.mxu1 %v6923_v0  ;;  %695 = vmatpush1.bf16.msra.mxu0 %v5846_v34 }
  0xbd   :  { %722 = vmatpush1.bf16.msra.mxu1 %v5844_v33  ;;  %753 = vmatprep.mubr.bf16.mxu1 %v6923_v0 }
  0xbe   :  { %723 = vmatprep.subr.bf16.mxu1 %v5848_v35  ;;  %792 = vmatprep.subr.bf16.mxu0 %v5788_v3 }
  0xc1   :  { %724 = vmatpush1.bf16.msra.mxu1 %v5852_v36 }
  0xc2   :  { %725 = vmatprep.subr.bf16.mxu1 %v5855_v37 }
  0xc5   :  { %726 = vmatpush1.bf16.msra.mxu1 %v5861_v38 }
  0xc6   :  { %727 = vmatprep.subr.bf16.mxu1 %v5865_v39 }
  0xc9   :  { %728 = vmatpush1.bf16.msra.mxu1 %v5871_v40 }
  0xca   :  { %729 = vmatprep.subr.bf16.mxu1 %v5875_v41 }
  0xcd   :  { %730 = vmatpush1.bf16.msra.mxu1 %v5881_v42 }
  0xce   :  { %731 = vmatprep.subr.bf16.mxu1 %v5884_v43 }
  0xd1   :  { %732 = vmatpush1.bf16.msra.mxu1 %v5889_v44 }
  0xd2   :  { %733 = vmatprep.subr.bf16.mxu1 %v5893_v45 }
  0xd5   :  { %734 = vmatpush1.bf16.msra.mxu1 %v5899_v46 }
  0xd6   :  { %735 = vmatprep.subr.bf16.mxu1 %v5902_v47 }
  0xd9   :  { %736 = vmatpush1.bf16.msra.mxu1 %v5907_v48 }
  0xda   :  { %833 = vmatprep.subr.bf16.mxu1 %v5816_v23 }
 0x144   :  { %v288_v53 = vpop.f32.mrf.mxu1 }
 0x145   :  { %v289_v49 = vadd.f32 %v288_v53, %v204_v55 }
 0x146   :  { %v290_v54 = vpop.f32.mrf.mxu1 }
 0x148   :  { %v292_v56 = vpop.f32.mrf.mxu1 }
 0x149   :  { %v5946_v58 = vadd.f32 %v292_v56, %v204_v55  ;;  %v216_v56 = vrot.slane %v199_v52, %v5969_v18 }
 0x14a   :  { %v5948_v59 = vpop.f32.mrf.mxu1 }
 0x14c   :  { %v298_v60 = vpop.f32.mrf.mxu1 }
 0x14d   :  { %v5953_v62 = vadd.f32 %v298_v60, %v204_v55 }
 0x14e   :  { %v300_v63 = vpop.f32.mrf.mxu1 }
 0x14f   :  { %v5956_v1 = vadd.f32 %v300_v63, %v5951_v61  ;;  %v291_v63 = vadd.f32 %v290_v54, %v5951_v61 }
 0x150   :  { %v302_v2 = vpop.f32.mrf.mxu1 }
 0x151   :  { %v5958_v3 = vadd.f32 %v302_v2, %v204_v55 }
 0x152   :  { %v5960_v4 = vpop.f32.mrf.mxu1 }
 0x154   :  { %v308_v6 = vpop.f32.mrf.mxu1 }
 0x155   :  { %v5962_v7 = vadd.f32 %v308_v6, %v204_v55 }
 0x156   :  { %v310_v8 = vpop.f32.mrf.mxu1 }
 0x157   :  { %6937 = vst [vmem:[#allocation30_spill] sm:$0xff] %v5962_v7  ;;  %v5965_v9 = vadd.f32 %v310_v8, %v5951_v61 }
 0x158   :  { %v312_v10 = vpop.f32.mrf.mxu1 }
 0x159   :  { %6938 = vst [vmem:[#allocation31_spill] sm:$0xff] %v5965_v9 }
 0x15a   :  { %v313_v11 = vpop.f32.mrf.mxu1 }
 0x15c   :  { %v349_v15 = vpop.f32.mrf.mxu1 }
 0x15e   :  { %v351_v19 = vpop.f32.mrf.mxu1 }
 0x15f   :  { %v602_v28 = vpop.f32.mrf.mxu0  ;;  %v352_v7 = vadd.f32 %v351_v19, %v216_v56 }
 0x160   :  { %v353_v26 = vpop.f32.mrf.mxu1  ;;  %v650_v8 = vadd.f32 %v602_v28, %v289_v49 }
 0x161   :  { %v5973_v60 = vadd.f32 %v353_v26, %v212_v21  ;;  %v604_v6 = vpop.f32.mrf.mxu0 }
 0x162   :  { %v355_v2 = vpop.f32.mrf.mxu1  ;;  %v651_v11 = vadd.f32 %v604_v6, %v291_v63  ;;  %v4391_v9 = vmul.f32 -1.442695, %v650_v8  ;;  %v350_v8 = vadd.f32 %v349_v15, %v212_v21 }
 0x163   :  { %v5976_v10 = vadd.f32 %v355_v2, %v216_v56  ;;  %v606_v0 = vpop.f32.mrf.mxu0 }
 0x164   :  { %v359_v50 = vpop.f32.mrf.mxu1  ;;  %v4392_v52 = vmul.f32 -1.442695, %v651_v11  ;;  %5129 = vpow2.f32 %v4391_v9 }
 0x165   :  { %v5978_v57 = vadd.f32 %v359_v50, %v212_v21  ;;  %v607_v51 = vpop.f32.mrf.mxu0 }
 0x166   :  { %v361_v13 = vpop.f32.mrf.mxu1  ;;  %5131 = vpow2.f32 %v4392_v52 }
 0x167   :  { %v5980_v53 = vadd.f32 %v361_v13, %v216_v56 }
 0x168   :  { %v363_v55 = vpop.f32.mrf.mxu1 }
 0x169   :  { %v5982_v26 = vadd.f32 %v363_v55, %v212_v21 }
 0x16a   :  { %v365_v54 = vpop.f32.mrf.mxu1 }
 0x16b   :  { %6941 = vst [vmem:[#allocation34_spill] sm:$0xff] %v5982_v26  ;;  %v5984_v18 = vadd.f32 %v365_v54, %v216_v56 }
 0x16c   :  { %v369_v28 = vpop.f32.mrf.mxu1 }
 0x16d   :  { %6942 = vst [vmem:[#allocation35_spill] sm:$0xff] %v5984_v18  ;;  %v5986_v49 = vadd.f32 %v369_v28, %v212_v21 }
 0x16e   :  { %v371_v0 = vpop.f32.mrf.mxu1 }
 0x16f   :  { %6943 = vst [vmem:[#allocation36_spill] sm:$0xff] %v5986_v49  ;;  %v5988_v63 = vadd.f32 %v371_v0, %v216_v56 }
 0x170   :  { %v373_v2 = vpop.f32.mrf.mxu1 }
 0x171   :  { %6944 = vst [vmem:[#allocation37_spill] sm:$0xff] %v5988_v63  ;;  %v5130_v6 = vpop.eup %5129 }
 0x172   :  { %v374_v51 = vpop.f32.mrf.mxu1  ;;  %v663_v11 = vadd.f32 1.0, %v5130_v6 }
 0x173   :  { %v5132_v13 = vpop.eup %5131 }
 0x174   :  { %v664_v50 = vadd.f32 1.0, %v5132_v13  ;;  %5133 = vrcp.f32 %v663_v11 }
 0x176   :  { %5135 = vrcp.f32 %v664_v50 }
 0x17c   :  { %v643_v55 = vpop.f32.mrf.mxu1 }
 0x17d   :  { %v652_v26 = vadd.f32 %v643_v55, %v350_v8 }
 0x17e   :  { %v645_v9 = vpop.f32.mrf.mxu1 }
 0x17f   :  { %v4393_v54 = vmul.f32 -1.442695, %v652_v26  ;;  %v653_v52 = vadd.f32 %v645_v9, %v352_v7 }
 0x180   :  { %v647_v28 = vpop.f32.mrf.mxu1 }
 0x181   :  { %5137 = vpow2.f32 %v4393_v54  ;;  %v5134_v63 = vpop.eup %5133 }
 0x182   :  { %5139 = vtanh.f32 %v653_v52  ;;  %v648_v0 = vpop.f32.mrf.mxu1 }
 0x183   :  { %v5136_v2 = vpop.eup %5135 }
 0x184   :  { %v673_v15 = vmul.f32 0.0, %v5136_v2 }
 0x18e   :  { %v5138_v51 = vpop.eup %5137 }
 0x18f   :  { %v5140_v49 = vpop.eup %5139  ;;  %v665_v18 = vadd.f32 1.0, %v5138_v51  ;;  %v6046_v51 = vld [vmem:[#allocation8 + $0xe0] ss:$16 sps:$4 sm:$0xff]  }
 0x190   :  { %v674_v21 = vmul.f32 %v5140_v49, %v5134_v63 }
 0x191   :  { %5141 = vrcp.f32 %v665_v18  ;;  %v6945_v18 = vmov 0  }
 0x192   :  { %v5990_v6 = vadd.f32 %v674_v21, %v673_v15  ;;  %v6050_v15 = vld [vmem:[#allocation8 + $0xc4] ss:$16 sps:$4 sm:$0xff]   ;;  %v6056_v21 = vld [vmem:[#allocation8 + $0xc0] ss:$16 sps:$4 sm:$0xff]  }
 0x194   :  { %5143 = vtanh.f32 %v5990_v6 }
 0x19e   :  { %v5142_v19 = vpop.eup %5141 }
 0x1a1   :  { %v5144_v56 = vpop.eup %5143 }
 0x1a2   :  { %v5993_v7 = vmul.f32 %v5144_v56, %v5142_v19  ;;  %v6072_v19 = vld [vmem:[#allocation8 + $0x80] ss:$16 sps:$4 sm:$0xff]   ;;  %v5391_v56 = vld [vmem:[#allocation8 + $0xec] ss:$16 sps:$4 sm:$0xff]  }
 0x1a4   :  { %v679_v26 = vpack.c.bf16 %v5993_v7, %v5993_v7 }
 0x1a6   :  { %713 = vmatmul.mubr.bf16.vlgmr.msra.gmra.mxu0 %v679_v26  ;;  %754 = vmatmul.mubr.bf16.vlgmr.msra.gmra.mxu1 %v679_v26 }
 0x1a7   :  { %793 = vmatpush1.bf16.msra.mxu0 %v5790_v5  ;;  %834 = vmatpush1.bf16.msra.mxu1 %v5844_v33  ;;  %v6029_v5 = vld [vmem:[#allocation8 + $0xe4] ss:$16 sps:$4 sm:$0xff]  }
 0x1a8   :  { %794 = vmatprep.subr.bf16.mxu0 %v5795_v12  ;;  %835 = vmatprep.subr.bf16.mxu1 %v5848_v35 }
 0x1a9   :  { %824 = vmatprep.mubr.bf16.mxu0 %v6945_v18  ;;  %865 = vmatprep.mubr.bf16.mxu1 %v6945_v18 }
 0x1ab   :  { %795 = vmatpush1.bf16.msra.mxu0 %v5798_v14  ;;  %836 = vmatpush1.bf16.msra.mxu1 %v5852_v36 }
 0x1ac   :  { %796 = vmatprep.subr.bf16.mxu0 %v5803_v16  ;;  %837 = vmatprep.subr.bf16.mxu1 %v5855_v37  ;;  %v295_v16 = vadd.f32 %v5948_v59, %v5951_v61 }
 0x1af   :  { %797 = vmatpush1.bf16.msra.mxu0 %v5807_v17  ;;  %838 = vmatpush1.bf16.msra.mxu1 %v5861_v38 }
 0x1b0   :  { %798 = vmatprep.subr.bf16.mxu0 %v5811_v20  ;;  %839 = vmatprep.subr.bf16.mxu1 %v5865_v39 }
 0x1b3   :  { %799 = vmatpush1.bf16.msra.mxu0 %v5813_v22  ;;  %840 = vmatpush1.bf16.msra.mxu1 %v5871_v40 }
 0x1b4   :  { %800 = vmatprep.subr.bf16.mxu0 %v5819_v24  ;;  %841 = vmatprep.subr.bf16.mxu1 %v5875_v41 }
 0x1b7   :  { %801 = vmatpush1.bf16.msra.mxu0 %v5824_v25  ;;  %842 = vmatpush1.bf16.msra.mxu1 %v5881_v42 }
 0x1b8   :  { %802 = vmatprep.subr.bf16.mxu0 %v5828_v27  ;;  %843 = vmatprep.subr.bf16.mxu1 %v5884_v43 }
 0x1bb   :  { %803 = vmatpush1.bf16.msra.mxu0 %v5831_v29  ;;  %844 = vmatpush1.bf16.msra.mxu1 %v5889_v44 }
 0x1bc   :  { %804 = vmatprep.subr.bf16.mxu0 %v5834_v30  ;;  %845 = vmatprep.subr.bf16.mxu1 %v5893_v45 }
 0x1bf   :  { %805 = vmatpush1.bf16.msra.mxu0 %v5837_v31  ;;  %846 = vmatpush1.bf16.msra.mxu1 %v5899_v46 }
 0x1c0   :  { %806 = vmatprep.subr.bf16.mxu0 %v5839_v32  ;;  %847 = vmatprep.subr.bf16.mxu1 %v5902_v47 }
 0x1c3   :  { %807 = vmatpush1.bf16.msra.mxu0 %v5846_v34  ;;  %848 = vmatpush1.bf16.msra.mxu1 %v5907_v48 }
 0x1c4   :  { %904 = vmatprep.subr.bf16.mxu0 %v6029_v5  ;;  %945 = vmatprep.subr.bf16.mxu1 %v5816_v23 }
 0x266   :  { %v714_v12 = vpop.f32.mrf.mxu0  ;;  %v755_v14 = vpop.f32.mrf.mxu1 }
 0x267   :  { %v762_v17 = vadd.f32 %v714_v12, %v5946_v58  ;;  %v764_v23 = vadd.f32 %v755_v14, %v5973_v60 }
 0x268   :  { %v716_v20 = vpop.f32.mrf.mxu0  ;;  %v757_v22 = vpop.f32.mrf.mxu1 }
 0x269   :  { %v4394_v24 = vmul.f32 -1.442695, %v762_v17  ;;  %v763_v25 = vadd.f32 %v716_v20, %v295_v16  ;;  %v4396_v34 = vmul.f32 -1.442695, %v764_v23  ;;  %v765_v49 = vadd.f32 %v757_v22, %v5976_v10 }
 0x26a   :  { %v718_v27 = vpop.f32.mrf.mxu0  ;;  %v759_v29 = vpop.f32.mrf.mxu1 }
 0x26b   :  { %5145 = vpow2.f32 %v4394_v24  ;;  %v4395_v30 = vmul.f32 -1.442695, %v763_v25 }
 0x26c   :  { %v719_v31 = vpop.f32.mrf.mxu0  ;;  %v760_v32 = vpop.f32.mrf.mxu1 }
 0x26d   :  { %5147 = vpow2.f32 %v4395_v30 }
 0x26e   :  { %5149 = vpow2.f32 %v4396_v34 }
 0x26f   :  { %5151 = vtanh.f32 %v765_v49 }
 0x278   :  { %v5146_v63 = vpop.eup %5145 }
 0x279   :  { %v775_v59 = vadd.f32 1.0, %v5146_v63 }
 0x27a   :  { %v5148_v58 = vpop.eup %5147 }
 0x27b   :  { %5153 = vrcp.f32 %v775_v59  ;;  %v776_v13 = vadd.f32 1.0, %v5148_v58  ;;  %v5150_v8 = vpop.eup %5149 }
 0x27c   :  { %v5152_v11 = vpop.eup %5151  ;;  %v777_v54 = vadd.f32 1.0, %v5150_v8 }
 0x27d   :  { %5155 = vrcp.f32 %v776_v13 }
 0x27e   :  { %5157 = vrcp.f32 %v777_v54  ;;  %v5392_v54 = vld [vmem:[#allocation8 + $0xe8] ss:$16 sps:$4 sm:$0xff]  }
 0x288   :  { %v5154_v50 = vpop.eup %5153 }
 0x289   :  { %v786_v55 = vmul.f32 %v5154_v50, %v5152_v11 }
 0x28a   :  { %v5156_v9 = vpop.eup %5155 }
 0x28b   :  { %v785_v52 = vmul.f32 %v5156_v9, %v5990_v6  ;;  %v5158_v10 = vpop.eup %5157  ;;  %v6060_v6 = vld [vmem:[#allocation8 + $0xa4] ss:$16 sps:$4 sm:$0xff]  }
 0x28d   :  { %v6039_v60 = vadd.f32 %v786_v55, %v785_v52  ;;  %v5393_v52 = vld [vmem:[#allocation8 + $0xcc] ss:$16 sps:$4 sm:$0xff]  }
 0x28f   :  { %5159 = vtanh.f32 %v6039_v60 }
 0x29c   :  { %v5160_v28 = vpop.eup %5159 }
 0x29d   :  { %v6042_v0 = vmul.f32 %v5160_v28, %v5158_v10  ;;  %v5395_v10 = vld [vmem:[#allocation8 + $0xac] ss:$16 sps:$4 sm:$0xff]   ;;  %v5396_v28 = vld [vmem:[#allocation8 + $0xa8] ss:$16 sps:$4 sm:$0xff]  }
 0x29f   :  { %v791_v2 = vpack.c.bf16 %v6042_v0, %v6042_v0 }
 0x2a1   :  { %825 = vmatmul.mubr.bf16.vlgmr.msra.gmra.mxu0 %v791_v2  ;;  %866 = vmatmul.mubr.bf16.vlgmr.msra.gmra.mxu1 %v791_v2  ;;  %v5397_v2 = vld [vmem:[#allocation8 + $0x8c] ss:$16 sps:$4 sm:$0xff]  }
 0x2a2   :  { %905 = vmatpush1.bf16.msra.mxu0 %v6046_v51  ;;  %946 = vmatpush1.bf16.msra.mxu1 %v5844_v33  ;;  %v6064_v33 = vld [vmem:[#allocation8 + $0xa0] ss:$16 sps:$4 sm:$0xff]  }
 0x2a3   :  { %906 = vmatprep.subr.bf16.mxu0 %v6050_v15  ;;  %947 = vmatprep.subr.bf16.mxu1 %v5848_v35  ;;  %v6068_v35 = vld [vmem:[#allocation8 + $0x84] ss:$16 sps:$4 sm:$0xff]  }
 0x2a4   :  { %936 = vmatprep.mubr.bf16.mxu0 %v6945_v18  ;;  %977 = vmatprep.mubr.bf16.mxu1 %v6945_v18 }
 0x2a6   :  { %907 = vmatpush1.bf16.msra.mxu0 %v6056_v21  ;;  %948 = vmatpush1.bf16.msra.mxu1 %v5852_v36  ;;  %v6076_v36 = vld [vmem:[#allocation8 + $0x64] ss:$16 sps:$4 sm:$0xff]  }
 0x2a7   :  { %908 = vmatprep.subr.bf16.mxu0 %v6060_v6  ;;  %949 = vmatprep.subr.bf16.mxu1 %v5855_v37  ;;  %v6080_v37 = vld [vmem:[#allocation8 + $0x60] ss:$16 sps:$4 sm:$0xff]  }
 0x2aa   :  { %909 = vmatpush1.bf16.msra.mxu0 %v6064_v33  ;;  %950 = vmatpush1.bf16.msra.mxu1 %v5861_v38  ;;  %v6084_v38 = vld [vmem:[#allocation8 + $0x44] ss:$16 sps:$4 sm:$0xff]  }
 0x2ab   :  { %910 = vmatprep.subr.bf16.mxu0 %v6068_v35  ;;  %951 = vmatprep.subr.bf16.mxu1 %v5865_v39  ;;  %v6088_v39 = vld [vmem:[#allocation8 + $0x40] ss:$16 sps:$4 sm:$0xff]  }
 0x2ae   :  { %911 = vmatpush1.bf16.msra.mxu0 %v6072_v19  ;;  %952 = vmatpush1.bf16.msra.mxu1 %v5871_v40  ;;  %v6092_v40 = vld [vmem:[#allocation8 + $0x24] ss:$16 sps:$4 sm:$0xff]  }
 0x2af   :  { %912 = vmatprep.subr.bf16.mxu0 %v6076_v36  ;;  %953 = vmatprep.subr.bf16.mxu1 %v5875_v41  ;;  %v6096_v41 = vld [vmem:[#allocation8 + $0x20] ss:$16 sps:$4 sm:$0xff]  }
 0x2b2   :  { %913 = vmatpush1.bf16.msra.mxu0 %v6080_v37  ;;  %954 = vmatpush1.bf16.msra.mxu1 %v5881_v42  ;;  %v6100_v42 = vld [vmem:[#allocation8 + $0x4] ss:$16 sps:$4 sm:$0xff]  }
 0x2b3   :  { %914 = vmatprep.subr.bf16.mxu0 %v6084_v38  ;;  %955 = vmatprep.subr.bf16.mxu1 %v5884_v43  ;;  %v6104_v43 = vld [vmem:[#allocation8] ss:$16 sps:$4 sm:$0xff]  }
 0x2b6   :  { %915 = vmatpush1.bf16.msra.mxu0 %v6088_v39  ;;  %956 = vmatpush1.bf16.msra.mxu1 %v5889_v44 }
 0x2b7   :  { %916 = vmatprep.subr.bf16.mxu0 %v6092_v40  ;;  %957 = vmatprep.subr.bf16.mxu1 %v5893_v45 }
 0x2ba   :  { %917 = vmatpush1.bf16.msra.mxu0 %v6096_v41  ;;  %958 = vmatpush1.bf16.msra.mxu1 %v5899_v46 }
 0x2bb   :  { %918 = vmatprep.subr.bf16.mxu0 %v6100_v42  ;;  %959 = vmatprep.subr.bf16.mxu1 %v5902_v47 }
 0x2be   :  { %919 = vmatpush1.bf16.msra.mxu0 %v6104_v43  ;;  %960 = vmatpush1.bf16.msra.mxu1 %v5907_v48 }
 0x2bf   :  { %1016 = vmatprep.subr.bf16.mxu0 %v6029_v5  ;;  %1057 = vmatprep.subr.bf16.mxu1 %v5391_v56 }
 0x361   :  { %v826_v26 = vpop.f32.mrf.mxu0  ;;  %v867_v12 = vpop.f32.mrf.mxu1 }
 0x362   :  { %v874_v14 = vadd.f32 %v826_v26, %v5953_v62  ;;  %v876_v5 = vadd.f32 %v867_v12, %v5978_v57  ;;  %v6947_v12 = vld [vmem:[#allocation35_spill] sm:$0xff] }
 0x363   :  { %v828_v16 = vpop.f32.mrf.mxu0  ;;  %v869_v17 = vpop.f32.mrf.mxu1 }
 0x364   :  { %v4397_v20 = vmul.f32 -1.442695, %v874_v14  ;;  %v875_v22 = vadd.f32 %v828_v16, %v5956_v1  ;;  %v4399_v31 = vmul.f32 -1.442695, %v876_v5  ;;  %v877_v32 = vadd.f32 %v869_v17, %v5980_v53 }
 0x365   :  { %v830_v24 = vpop.f32.mrf.mxu0  ;;  %v871_v25 = vpop.f32.mrf.mxu1 }
 0x366   :  { %5161 = vpow2.f32 %v4397_v20  ;;  %v4398_v27 = vmul.f32 -1.442695, %v875_v22 }
 0x367   :  { %v831_v29 = vpop.f32.mrf.mxu0  ;;  %v872_v30 = vpop.f32.mrf.mxu1 }
 0x368   :  { %5163 = vpow2.f32 %v4398_v27 }
 0x369   :  { %5165 = vpow2.f32 %v4399_v31 }
 0x36a   :  { %5167 = vtanh.f32 %v877_v32 }
 0x373   :  { %v5162_v23 = vpop.eup %5161 }
 0x374   :  { %v887_v34 = vadd.f32 1.0, %v5162_v23  ;;  %v4793_v23 = vld [vmem:[#allocation9 + $0xe0] ss:$16 sps:$4 sm:$0xff]  }
 0x375   :  { %v5164_v62 = vpop.eup %5163 }
 0x376   :  { %5169 = vrcp.f32 %v887_v34  ;;  %v888_v49 = vadd.f32 1.0, %v5164_v62  ;;  %v5166_v1 = vpop.eup %5165  ;;  %v4796_v34 = vld [vmem:[#allocation9 + $0xe8] ss:$16 sps:$4 sm:$0xff]  }
 0x377   :  { %v5168_v63 = vpop.eup %5167  ;;  %v889_v8 = vadd.f32 1.0, %v5166_v1  ;;  %v4804_v1 = vld [vmem:[#allocation9 + $0xcc] ss:$16 sps:$4 sm:$0xff]  }
 0x378   :  { %5171 = vrcp.f32 %v888_v49  ;;  %v4801_v49 = vld [vmem:[#allocation9 + $0xc4] ss:$16 sps:$4 sm:$0xff]  }
 0x379   :  { %5173 = vrcp.f32 %v889_v8  ;;  %v4805_v8 = vld [vmem:[#allocation9 + $0xa0] ss:$16 sps:$4 sm:$0xff]  }
 0x383   :  { %v5170_v59 = vpop.eup %5169 }
 0x384   :  { %v898_v58 = vmul.f32 %v5170_v59, %v5168_v63  ;;  %v4799_v63 = vld [vmem:[#allocation9 + $0xc0] ss:$16 sps:$4 sm:$0xff]   ;;  %v4802_v59 = vld [vmem:[#allocation9 + $0xc8] ss:$16 sps:$4 sm:$0xff]  }
 0x385   :  { %v5172_v13 = vpop.eup %5171 }
 0x386   :  { %v897_v11 = vmul.f32 %v5172_v13, %v6039_v60  ;;  %v5174_v53 = vpop.eup %5173  ;;  %v5394_v60 = vld [vmem:[#allocation8 + $0xc8] ss:$16 sps:$4 sm:$0xff]   ;;  %v4810_v13 = vld [vmem:[#allocation9 + $0xac] ss:$16 sps:$4 sm:$0xff]  }
 0x388   :  { %v6114_v57 = vadd.f32 %v898_v58, %v897_v11  ;;  %v4807_v58 = vld [vmem:[#allocation9 + $0xa4] ss:$16 sps:$4 sm:$0xff]   ;;  %v4808_v11 = vld [vmem:[#allocation9 + $0xa8] ss:$16 sps:$4 sm:$0xff]  }
 0x38a   :  { %5175 = vtanh.f32 %v6114_v57 }
 0x397   :  { %v5176_v50 = vpop.eup %5175 }
 0x398   :  { %v6117_v55 = vmul.f32 %v5176_v50, %v5174_v53  ;;  %v4816_v53 = vld [vmem:[#allocation9 + $0x8c] ss:$16 sps:$4 sm:$0xff]   ;;  %v4811_v50 = vld [vmem:[#allocation9 + $0x80] ss:$16 sps:$4 sm:$0xff]  }
 0x39a   :  { %v903_v9 = vpack.c.bf16 %v6117_v55, %v6117_v55 }
 0x39c   :  { %937 = vmatmul.mubr.bf16.vlgmr.msra.gmra.mxu0 %v903_v9  ;;  %978 = vmatmul.mubr.bf16.vlgmr.msra.gmra.mxu1 %v903_v9  ;;  %v4814_v9 = vld [vmem:[#allocation9 + $0x88] ss:$16 sps:$4 sm:$0xff]  }
 0x39d   :  { %1017 = vmatpush1.bf16.msra.mxu0 %v6046_v51  ;;  %1058 = vmatpush1.bf16.msra.mxu1 %v5392_v54  ;;  %v5398_v51 = vld [vmem:[#allocation8 + $0x88] ss:$16 sps:$4 sm:$0xff]   ;;  %v4819_v54 = vld [vmem:[#allocation9 + $0x64] ss:$16 sps:$4 sm:$0xff]  }
 0x39e   :  { %1018 = vmatprep.subr.bf16.mxu0 %v6050_v15  ;;  %1059 = vmatprep.subr.bf16.mxu1 %v5393_v52  ;;  %v5399_v15 = vld [vmem:[#allocation8 + $0x6c] ss:$16 sps:$4 sm:$0xff]  }
 0x39f   :  { %1048 = vmatprep.mubr.bf16.mxu0 %v6945_v18  ;;  %1089 = vmatprep.mubr.bf16.mxu1 %v6945_v18  ;;  %v4822_v52 = vld [vmem:[#allocation9 + $0x6c] ss:$16 sps:$4 sm:$0xff]  }
 0x3a1   :  { %1019 = vmatpush1.bf16.msra.mxu0 %v6056_v21  ;;  %1060 = vmatpush1.bf16.msra.mxu1 %v5394_v60  ;;  %v5400_v21 = vld [vmem:[#allocation8 + $0x68] ss:$16 sps:$4 sm:$0xff]   ;;  %v4817_v60 = vld [vmem:[#allocation9 + $0x60] ss:$16 sps:$4 sm:$0xff]  }
 0x3a2   :  { %1020 = vmatprep.subr.bf16.mxu0 %v6060_v6  ;;  %1061 = vmatprep.subr.bf16.mxu1 %v5395_v10  ;;  %v5401_v6 = vld [vmem:[#allocation8 + $0x4c] ss:$16 sps:$4 sm:$0xff]   ;;  %v4820_v10 = vld [vmem:[#allocation9 + $0x68] ss:$16 sps:$4 sm:$0xff]  }
 0x3a5   :  { %1021 = vmatpush1.bf16.msra.mxu0 %v6064_v33  ;;  %1062 = vmatpush1.bf16.msra.mxu1 %v5396_v28  ;;  %v4795_v33 = vld [vmem:[#allocation9 + $0xe4] ss:$16 sps:$4 sm:$0xff]  }
 0x3a6   :  { %1022 = vmatprep.subr.bf16.mxu0 %v6068_v35  ;;  %1063 = vmatprep.subr.bf16.mxu1 %v5397_v2  ;;  %v4798_v35 = vld [vmem:[#allocation9 + $0xec] ss:$16 sps:$4 sm:$0xff]   ;;  %v4825_v28 = vld [vmem:[#allocation9 + $0x44] ss:$16 sps:$4 sm:$0xff]  }
 0x3a7   :  { %v4828_v2 = vld [vmem:[#allocation9 + $0x4c] ss:$16 sps:$4 sm:$0xff]  }
 0x3a9   :  { %1023 = vmatpush1.bf16.msra.mxu0 %v6072_v19  ;;  %1064 = vmatpush1.bf16.msra.mxu1 %v5398_v51  ;;  %v4823_v51 = vld [vmem:[#allocation9 + $0x40] ss:$16 sps:$4 sm:$0xff]  }
 0x3aa   :  { %1024 = vmatprep.subr.bf16.mxu0 %v6076_v36  ;;  %1065 = vmatprep.subr.bf16.mxu1 %v5399_v15  ;;  %v4826_v15 = vld [vmem:[#allocation9 + $0x48] ss:$16 sps:$4 sm:$0xff]  }
 0x3ad   :  { %1025 = vmatpush1.bf16.msra.mxu0 %v6080_v37  ;;  %1066 = vmatpush1.bf16.msra.mxu1 %v5400_v21  ;;  %v4831_v21 = vld [vmem:[#allocation9 + $0x24] ss:$16 sps:$4 sm:$0xff]  }
 0x3ae   :  { %1026 = vmatprep.subr.bf16.mxu0 %v6084_v38  ;;  %1067 = vmatprep.subr.bf16.mxu1 %v5401_v6  ;;  %v4834_v6 = vld [vmem:[#allocation9 + $0x2c] ss:$16 sps:$4 sm:$0xff]  }
 0x3b1   :  { %1027 = vmatpush1.bf16.msra.mxu0 %v6088_v39  ;;  %1068 = vmatpush1.bf16.msra.mxu1 %v5889_v44 }
 0x3b2   :  { %1028 = vmatprep.subr.bf16.mxu0 %v6092_v40  ;;  %1069 = vmatprep.subr.bf16.mxu1 %v5893_v45  ;;  %v305_v45 = vadd.f32 %v5960_v4, %v5951_v61 }
 0x3b5   :  { %1029 = vmatpush1.bf16.msra.mxu0 %v6096_v41  ;;  %1070 = vmatpush1.bf16.msra.mxu1 %v5899_v46 }
 0x3b6   :  { %1030 = vmatprep.subr.bf16.mxu0 %v6100_v42  ;;  %1071 = vmatprep.subr.bf16.mxu1 %v5902_v47 }
 0x3b9   :  { %1031 = vmatpush1.bf16.msra.mxu0 %v6104_v43  ;;  %1072 = vmatpush1.bf16.msra.mxu1 %v5907_v48  ;;  %v6946_v43 = vld [vmem:[#allocation34_spill] sm:$0xff] }
 0x3ba   :  { %1349 = vmatprep.subr.bf16.mxu0 %v4795_v33  ;;  %1410 = vmatprep.subr.bf16.mxu1 %v4798_v35  ;;  %v4829_v33 = vld [vmem:[#allocation9 + $0x20] ss:$16 sps:$4 sm:$0xff]   ;;  %v4832_v35 = vld [vmem:[#allocation9 + $0x28] ss:$16 sps:$4 sm:$0xff]  }
 0x45c   :  { %v938_v44 = vpop.f32.mrf.mxu0  ;;  %v979_v19 = vpop.f32.mrf.mxu1 }
 0x45d   :  { %v986_v36 = vadd.f32 %v938_v44, %v5958_v3  ;;  %v988_v56 = vadd.f32 %v979_v19, %v6946_v43  ;;  %v4837_v44 = vld [vmem:[#allocation9 + $0x4] ss:$16 sps:$4 sm:$0xff]   ;;  %v4840_v19 = vld [vmem:[#allocation9 + $0xc] ss:$16 sps:$4 sm:$0xff]   ;;  %v6194_v43 = vld [vmem:[#allocation11 + $0xa0] ss:$16 sps:$4 sm:$0xff]  }
 0x45e   :  { %v940_v46 = vpop.f32.mrf.mxu0  ;;  %v981_v37 = vpop.f32.mrf.mxu1 }
 0x45f   :  { %v4400_v38 = vmul.f32 -1.442695, %v986_v36  ;;  %v987_v39 = vadd.f32 %v940_v46, %v305_v45  ;;  %v4402_v26 = vmul.f32 -1.442695, %v988_v56  ;;  %v989_v14 = vadd.f32 %v981_v37, %v6947_v12  ;;  %v4835_v45 = vld [vmem:[#allocation9] ss:$16 sps:$4 sm:$0xff]  }
 0x460   :  { %v942_v47 = vpop.f32.mrf.mxu0  ;;  %v983_v40 = vpop.f32.mrf.mxu1  ;;  %v4838_v36 = vld [vmem:[#allocation9 + $0x8] ss:$16 sps:$4 sm:$0xff]   ;;  %v1132_v46 = vpack.c.bf16 %v6042_v0, %v5993_v7  ;;  %v6170_v7 = vld [vmem:[#allocation11 + $0xe0] ss:$16 sps:$4 sm:$0xff]   ;;  %v6204_v12 = vld [vmem:[#allocation11 + $0x8c] ss:$16 sps:$4 sm:$0xff]  }
 0x461   :  { %5177 = vpow2.f32 %v4400_v38  ;;  %v4401_v41 = vmul.f32 -1.442695, %v987_v39  ;;  %v6166_v38 = vld [vmem:[#allocation11 + $0xe4] ss:$16 sps:$4 sm:$0xff]   ;;  %v6168_v39 = vld [vmem:[#allocation11 + $0xec] ss:$16 sps:$4 sm:$0xff]  }
 0x462   :  { %v943_v48 = vpop.f32.mrf.mxu0  ;;  %v984_v42 = vpop.f32.mrf.mxu1  ;;  %v6172_v0 = vld [vmem:[#allocation11 + $0xe8] ss:$16 sps:$4 sm:$0xff]   ;;  %v6180_v47 = vld [vmem:[#allocation11 + $0xcc] ss:$16 sps:$4 sm:$0xff]   ;;  %v6182_v40 = vld [vmem:[#allocation11 + $0xc0] ss:$16 sps:$4 sm:$0xff]  }
 0x463   :  { %5179 = vpow2.f32 %v4401_v41  ;;  %v6184_v41 = vld [vmem:[#allocation11 + $0xc8] ss:$16 sps:$4 sm:$0xff]   ;;  %v6190_v48 = vld [vmem:[#allocation11 + $0xa4] ss:$16 sps:$4 sm:$0xff]   ;;  %v6192_v42 = vld [vmem:[#allocation11 + $0xac] ss:$16 sps:$4 sm:$0xff]  }
 0x464   :  { %5181 = vpow2.f32 %v4402_v26  ;;  %v6196_v56 = vld [vmem:[#allocation11 + $0xa8] ss:$16 sps:$4 sm:$0xff]   ;;  %v6202_v26 = vld [vmem:[#allocation11 + $0x84] ss:$16 sps:$4 sm:$0xff]  }
 0x465   :  { %5183 = vtanh.f32 %v989_v14  ;;  %v6206_v14 = vld [vmem:[#allocation11 + $0x80] ss:$16 sps:$4 sm:$0xff]  }
 0x46e   :  { %v5178_v16 = vpop.eup %5177 }
 0x46f   :  { %v999_v61 = vadd.f32 1.0, %v5178_v16  ;;  %v6208_v16 = vld [vmem:[#allocation11 + $0x88] ss:$16 sps:$4 sm:$0xff]  }
 0x470   :  { %v5180_v3 = vpop.eup %5179 }
 0x471   :  { %5185 = vrcp.f32 %v999_v61  ;;  %v1000_v4 = vadd.f32 1.0, %v5180_v3  ;;  %v5182_v17 = vpop.eup %5181  ;;  %v6210_v61 = vld [vmem:[#allocation11 + $0x64] ss:$16 sps:$4 sm:$0xff]   ;;  %v6212_v3 = vld [vmem:[#allocation11 + $0x6c] ss:$16 sps:$4 sm:$0xff]  }
 0x472   :  { %v5184_v20 = vpop.eup %5183  ;;  %v1001_v27 = vadd.f32 1.0, %v5182_v17  ;;  %v6220_v17 = vld [vmem:[#allocation11 + $0x68] ss:$16 sps:$4 sm:$0xff]  }
 0x473   :  { %5187 = vrcp.f32 %v1000_v4  ;;  %v6218_v4 = vld [vmem:[#allocation11 + $0x60] ss:$16 sps:$4 sm:$0xff]  }
 0x474   :  { %5189 = vrcp.f32 %v1001_v27  ;;  %v6238_v27 = vld [vmem:[#allocation11 + $0x24] ss:$16 sps:$4 sm:$0xff]  }
 0x47e   :  { %v5186_v22 = vpop.eup %5185 }
 0x47f   :  { %v1010_v24 = vmul.f32 %v5186_v22, %v5184_v20  ;;  %v6224_v20 = vld [vmem:[#allocation11 + $0x44] ss:$16 sps:$4 sm:$0xff]   ;;  %v6226_v22 = vld [vmem:[#allocation11 + $0x4c] ss:$16 sps:$4 sm:$0xff]  }
 0x480   :  { %v5188_v25 = vpop.eup %5187 }
 0x481   :  { %v1009_v29 = vmul.f32 %v5188_v25, %v6114_v57  ;;  %v5190_v5 = vpop.eup %5189  ;;  %v4813_v57 = vld [vmem:[#allocation9 + $0x84] ss:$16 sps:$4 sm:$0xff]   ;;  %v6232_v25 = vld [vmem:[#allocation11 + $0x48] ss:$16 sps:$4 sm:$0xff]  }
 0x483   :  { %v6149_v30 = vadd.f32 %v1010_v24, %v1009_v29  ;;  %v6230_v24 = vld [vmem:[#allocation11 + $0x40] ss:$16 sps:$4 sm:$0xff]   ;;  %v6240_v29 = vld [vmem:[#allocation11 + $0x2c] ss:$16 sps:$4 sm:$0xff]  }
 0x485   :  { %5191 = vtanh.f32 %v6149_v30 }
 0x492   :  { %v5192_v31 = vpop.eup %5191 }
 0x493   :  { %v6152_v32 = vmul.f32 %v5192_v31, %v5190_v5  ;;  %v6242_v5 = vld [vmem:[#allocation11 + $0x20] ss:$16 sps:$4 sm:$0xff]   ;;  %v6244_v31 = vld [vmem:[#allocation11 + $0x28] ss:$16 sps:$4 sm:$0xff]  }
 0x495   :  { %v1015_v62 = vpack.c.bf16 %v6152_v32, %v6152_v32  ;;  %v1133_v37 = vpack.c.bf16 %v6152_v32, %v6117_v55  ;;  %v6178_v55 = vld [vmem:[#allocation11 + $0xc4] ss:$16 sps:$4 sm:$0xff]  }
 0x496   :  { %v6246_v32 = vld [vmem:[#allocation11 + $0x4] ss:$16 sps:$4 sm:$0xff]  }
 0x497   :  { %1049 = vmatmul.mubr.bf16.vlgmr.msra.gmra.mxu0 %v1015_v62  ;;  %1090 = vmatmul.mubr.bf16.vlgmr.msra.gmra.mxu1 %v1015_v62  ;;  %v6256_v62 = vld [vmem:[#allocation11 + $0x8] ss:$16 sps:$4 sm:$0xff]  }
 0x498   :  { %1350 = vmatpush1.bf16.msra.mxu0 %v4793_v23  ;;  %1411 = vmatpush1.bf16.msra.mxu1 %v4796_v34  ;;  %v6248_v23 = vld [vmem:[#allocation11 + $0xc] ss:$16 sps:$4 sm:$0xff]   ;;  %v6254_v34 = vld [vmem:[#allocation11] ss:$16 sps:$4 sm:$0xff]  }
 0x499   :  { %1351 = vmatprep.subr.bf16.mxu0 %v4801_v49  ;;  %1412 = vmatprep.subr.bf16.mxu1 %v4804_v1 }
 0x49a   :  { %1381 = vmatprep.mubr.bf16.mxu0 %v6945_v18  ;;  %1442 = vmatprep.mubr.bf16.mxu1 %v6945_v18 }
 0x49c   :  { %1352 = vmatpush1.bf16.msra.mxu0 %v4799_v63  ;;  %1413 = vmatpush1.bf16.msra.mxu1 %v4802_v59  ;;  %v6948_v63 = vld [vmem:[#allocation30_spill] sm:$0xff] }
 0x49d   :  { %1353 = vmatprep.subr.bf16.mxu0 %v4807_v58  ;;  %1414 = vmatprep.subr.bf16.mxu1 %v4810_v13 }
 0x4a0   :  { %1354 = vmatpush1.bf16.msra.mxu0 %v4805_v8  ;;  %1415 = vmatpush1.bf16.msra.mxu1 %v4808_v11  ;;  %v6949_v11 = vld [vmem:[#allocation31_spill] sm:$0xff] }
 0x4a1   :  { %1355 = vmatprep.subr.bf16.mxu0 %v4813_v57  ;;  %1416 = vmatprep.subr.bf16.mxu1 %v4816_v53 }
 0x4a4   :  { %1356 = vmatpush1.bf16.msra.mxu0 %v4811_v50  ;;  %1417 = vmatpush1.bf16.msra.mxu1 %v4814_v9 }
 0x4a5   :  { %1357 = vmatprep.subr.bf16.mxu0 %v4819_v54  ;;  %1418 = vmatprep.subr.bf16.mxu1 %v4822_v52 }
 0x4a8   :  { %1358 = vmatpush1.bf16.msra.mxu0 %v4817_v60  ;;  %1419 = vmatpush1.bf16.msra.mxu1 %v4820_v10  ;;  %v6950_v60 = vld [vmem:[#allocation36_spill] sm:$0xff] }
 0x4a9   :  { %1359 = vmatprep.subr.bf16.mxu0 %v4825_v28  ;;  %1420 = vmatprep.subr.bf16.mxu1 %v4828_v2  ;;  %v6951_v2 = vld [vmem:[#allocation37_spill] sm:$0xff] }
 0x4ac   :  { %1360 = vmatpush1.bf16.msra.mxu0 %v4823_v51  ;;  %1421 = vmatpush1.bf16.msra.mxu1 %v4826_v15 }
 0x4ad   :  { %1361 = vmatprep.subr.bf16.mxu0 %v4831_v21  ;;  %1422 = vmatprep.subr.bf16.mxu1 %v4834_v6 }
 0x4b0   :  { %1362 = vmatpush1.bf16.msra.mxu0 %v4829_v33  ;;  %1423 = vmatpush1.bf16.msra.mxu1 %v4832_v35 }
 0x4b1   :  { %1363 = vmatprep.subr.bf16.mxu0 %v4837_v44  ;;  %1424 = vmatprep.subr.bf16.mxu1 %v4840_v19 }
 0x4b4   :  { %1364 = vmatpush1.bf16.msra.mxu0 %v4835_v45  ;;  %1425 = vmatpush1.bf16.msra.mxu1 %v4838_v36 }
 0x4b5   :  { %1663 = vmatprep.subr.bf16.mxu0 %v6166_v38  ;;  %1704 = vmatprep.subr.bf16.mxu1 %v6168_v39 }
 0x4b7   :  { %1382 = vmatmul.mubr.bf16.vlgmr.msra.gmra.mxu0 %v1132_v46  ;;  %1443 = vmatmul.mubr.bf16.vlgmr.msra.gmra.mxu1 %v1132_v46 }
 0x4b8   :  { %1391 = vmatprep.mubr.bf16.mxu0 %v6945_v18  ;;  %1452 = vmatprep.mubr.bf16.mxu1 %v6945_v18 }
 0x4b9   :  { %1664 = vmatpush1.bf16.msra.mxu0 %v6170_v7  ;;  %1705 = vmatpush1.bf16.msra.mxu1 %v6172_v0 }
 0x4ba   :  { %1665 = vmatprep.subr.bf16.mxu0 %v6178_v55  ;;  %1706 = vmatprep.subr.bf16.mxu1 %v6180_v47 }
 0x4bd   :  { %1666 = vmatpush1.bf16.msra.mxu0 %v6182_v40  ;;  %1707 = vmatpush1.bf16.msra.mxu1 %v6184_v41 }
 0x4be   :  { %1667 = vmatprep.subr.bf16.mxu0 %v6190_v48  ;;  %1708 = vmatprep.subr.bf16.mxu1 %v6192_v42 }
 0x4bf   :  { %1392 = vmatmul.mubr.bf16.gmra.mxu0 %v1133_v37  ;;  %1453 = vmatmul.mubr.bf16.gmra.mxu1 %v1133_v37 }
 0x4c0   :  { %1401 = vmatprep.mubr.bf16.mxu0 %v6945_v18  ;;  %1462 = vmatprep.mubr.bf16.mxu1 %v6945_v18 }
 0x4c1   :  { %1668 = vmatpush1.bf16.msra.mxu0 %v6194_v43  ;;  %1709 = vmatpush1.bf16.msra.mxu1 %v6196_v56 }
 0x4c2   :  { %1669 = vmatprep.subr.bf16.mxu0 %v6202_v26  ;;  %1710 = vmatprep.subr.bf16.mxu1 %v6204_v12 }
 0x4c5   :  { %1670 = vmatpush1.bf16.msra.mxu0 %v6206_v14  ;;  %1711 = vmatpush1.bf16.msra.mxu1 %v6208_v16 }
 0x4c6   :  { %1671 = vmatprep.subr.bf16.mxu0 %v6210_v61  ;;  %1712 = vmatprep.subr.bf16.mxu1 %v6212_v3 }
 0x4c9   :  { %1672 = vmatpush1.bf16.msra.mxu0 %v6218_v4  ;;  %1713 = vmatpush1.bf16.msra.mxu1 %v6220_v17 }
 0x4ca   :  { %1673 = vmatprep.subr.bf16.mxu0 %v6224_v20  ;;  %1714 = vmatprep.subr.bf16.mxu1 %v6226_v22 }
 0x4cd   :  { %1674 = vmatpush1.bf16.msra.mxu0 %v6230_v24  ;;  %1715 = vmatpush1.bf16.msra.mxu1 %v6232_v25 }
 0x4ce   :  { %1675 = vmatprep.subr.bf16.mxu0 %v6238_v27  ;;  %1716 = vmatprep.subr.bf16.mxu1 %v6240_v29 }
 0x4d1   :  { %1676 = vmatpush1.bf16.msra.mxu0 %v6242_v5  ;;  %1717 = vmatpush1.bf16.msra.mxu1 %v6244_v31 }
 0x4d2   :  { %1677 = vmatprep.subr.bf16.mxu0 %v6246_v32  ;;  %1718 = vmatprep.subr.bf16.mxu1 %v6248_v23 }
 0x4d5   :  { %1678 = vmatpush1.bf16.msra.mxu0 %v6254_v34  ;;  %1719 = vmatpush1.bf16.msra.mxu1 %v6256_v62 }
 0x4d6   :  { %1775 = vmatprep.subr.bf16.mxu0 %v6166_v38  ;;  %1816 = vmatprep.subr.bf16.mxu1 %v6168_v39 }
 0x557   :  { %v1050_v49 = vpop.f32.mrf.mxu0  ;;  %v1091_v1 = vpop.f32.mrf.mxu1 }
 0x558   :  { %v1098_v59 = vadd.f32 %v1050_v49, %v6948_v63  ;;  %v1100_v10 = vadd.f32 %v1091_v1, %v6950_v60 }
 0x559   :  { %v1052_v58 = vpop.f32.mrf.mxu0  ;;  %v1093_v13 = vpop.f32.mrf.mxu1 }
 0x55a   :  { %v4403_v8 = vmul.f32 -1.442695, %v1098_v59  ;;  %v1099_v57 = vadd.f32 %v1052_v58, %v6949_v11  ;;  %v4405_v28 = vmul.f32 -1.442695, %v1100_v10  ;;  %v1101_v51 = vadd.f32 %v1093_v13, %v6951_v2 }
 0x55b   :  { %v1054_v53 = vpop.f32.mrf.mxu0  ;;  %v1095_v50 = vpop.f32.mrf.mxu1 }
 0x55c   :  { %5193 = vpow2.f32 %v4403_v8  ;;  %v4404_v9 = vmul.f32 -1.442695, %v1099_v57 }
 0x55d   :  { %v1055_v54 = vpop.f32.mrf.mxu0  ;;  %v1096_v52 = vpop.f32.mrf.mxu1 }
 0x55e   :  { %5195 = vpow2.f32 %v4404_v9 }
 0x55f   :  { %5197 = vpow2.f32 %v4405_v28 }
 0x560   :  { %5199 = vtanh.f32 %v1101_v51 }
 0x569   :  { %v5194_v15 = vpop.eup %5193 }
 0x56a   :  { %v1111_v21 = vadd.f32 1.0, %v5194_v15 }
 0x56b   :  { %v5196_v6 = vpop.eup %5195 }
 0x56c   :  { %5201 = vrcp.f32 %v1111_v21  ;;  %v1112_v33 = vadd.f32 1.0, %v5196_v6  ;;  %v5198_v35 = vpop.eup %5197  ;;  %v1167_v21 = vld [vmem:[%s6912_s6] sm:$0xf] }
 0x56d   :  { %v5200_v44 = vpop.eup %5199  ;;  %v1113_v46 = vadd.f32 1.0, %v5198_v35 }
 0x56e   :  { %5203 = vrcp.f32 %v1112_v33 }
 0x56f   :  { %5205 = vrcp.f32 %v1113_v46 }
 0x577   :  { %v1444_v13 = vpop.f32.mrf.mxu1 }
 0x579   :  { %v5202_v19 = vpop.eup %5201  ;;  %v1446_v11 = vpop.f32.mrf.mxu1 }
 0x57a   :  { %v1122_v45 = vmul.f32 %v5202_v19, %v5200_v44  ;;  %v6962_v19 = vld [vmem:[#allocation28_spill] sm:$0xff] }
 0x57b   :  { %v5204_v36 = vpop.eup %5203  ;;  %v6309_v53 = vpop.f32.mrf.mxu1 }
 0x57c   :  { %v1121_v37 = vmul.f32 %v5204_v36, %v6149_v30  ;;  %v5206_v1 = vpop.eup %5205  ;;  %v1383_v30 = vpop.f32.mrf.mxu0 }
 0x57d   :  { %v6313_v9 = vpop.f32.mrf.mxu1 }
 0x57e   :  { %v1123_v49 = vadd.f32 %v1122_v45, %v1121_v37  ;;  %v1385_v8 = vpop.f32.mrf.mxu0  ;;  %v6343_v45 = vrot.slane %v1167_v21, %v6962_v19  ;;  %v6963_v37 = vld [vmem:[#allocation29_spill] sm:$0xff] }
 0x57f   :  { %v6317_v52 = vpop.f32.mrf.mxu1 }
 0x580   :  { %5207 = vtanh.f32 %v1123_v49  ;;  %v6307_v57 = vpop.f32.mrf.mxu0  ;;  %6952 = vst [vmem:[#allocation34_spill] sm:$0xff] %v6317_v52  ;;  %v6346_v49 = vrot.slane %v1167_v21, %v6963_v37 }
 0x581   :  { %v6321_v10 = vpop.f32.mrf.mxu1 }
 0x582   :  { %v6311_v50 = vpop.f32.mrf.mxu0  ;;  %6953 = vst [vmem:[#allocation35_spill] sm:$0xff] %v6321_v10  ;;  %v6965_v10 = vld [vmem:[#allocation33_spill] sm:$0xff] }
 0x583   :  { %v6325_v2 = vpop.f32.mrf.mxu1  ;;  %v6355_v52 = vrot.slane %v1167_v21, %v6965_v10 }
 0x584   :  { %v6315_v54 = vpop.f32.mrf.mxu0  ;;  %6955 = vst [vmem:[#allocation31_spill] sm:$0xff] %v6325_v2 }
 0x585   :  { %v6329_v15 = vpop.f32.mrf.mxu1 }
 0x586   :  { %v6319_v60 = vpop.f32.mrf.mxu0  ;;  %6957 = vst [vmem:[#allocation37_spill] sm:$0xff] %v6329_v15 }
 0x588   :  { %v6323_v28 = vpop.f32.mrf.mxu0 }
 0x589   :  { %6954 = vst [vmem:[#allocation30_spill] sm:$0xff] %v6323_v28 }
 0x58a   :  { %v6327_v51 = vpop.f32.mrf.mxu0 }
 0x58b   :  { %6956 = vst [vmem:[#allocation36_spill] sm:$0xff] %v6327_v51 }
 0x58d   :  { %v5208_v63 = vpop.eup %5207 }
 0x58e   :  { %v1125_v59 = vmul.f32 %v5208_v63, %v5206_v1 }
 0x590   :  { %v1134_v58 = vpack.c.bf16 %v1125_v59, %v1125_v59  ;;  %v1384_v59 = vadd.f32 %v1383_v30, %v6343_v45 }
 0x592   :  { %1402 = vmatmul.mubr.bf16.gmra.mxu0 %v1134_v58  ;;  %1463 = vmatmul.mubr.bf16.gmra.mxu1 %v1134_v58 }
 0x593   :  { %1695 = vmatprep.mubr.bf16.mxu0 %v6945_v18  ;;  %1736 = vmatprep.mubr.bf16.mxu1 %v6945_v18 }
 0x59a   :  { %1696 = vmatmul.mubr.bf16.vlgmr.msra.gmra.mxu0 %v6945_v18  ;;  %1737 = vmatmul.mubr.bf16.vlgmr.msra.gmra.mxu1 %v6945_v18 }
 0x59b   :  { %1776 = vmatpush1.bf16.msra.mxu0 %v6170_v7  ;;  %1817 = vmatpush1.bf16.msra.mxu1 %v6172_v0 }
 0x59c   :  { %1777 = vmatprep.subr.bf16.mxu0 %v6178_v55  ;;  %1818 = vmatprep.subr.bf16.mxu1 %v6180_v47 }
 0x59d   :  { %1807 = vmatprep.mubr.bf16.mxu0 %v6945_v18  ;;  %1848 = vmatprep.mubr.bf16.mxu1 %v6945_v18 }
 0x59f   :  { %1778 = vmatpush1.bf16.msra.mxu0 %v6182_v40  ;;  %1819 = vmatpush1.bf16.msra.mxu1 %v6184_v41 }
 0x5a0   :  { %1779 = vmatprep.subr.bf16.mxu0 %v6190_v48  ;;  %1820 = vmatprep.subr.bf16.mxu1 %v6192_v42 }
 0x5a3   :  { %1780 = vmatpush1.bf16.msra.mxu0 %v6194_v43  ;;  %1821 = vmatpush1.bf16.msra.mxu1 %v6196_v56 }
 0x5a4   :  { %1781 = vmatprep.subr.bf16.mxu0 %v6202_v26  ;;  %1822 = vmatprep.subr.bf16.mxu1 %v6204_v12 }
 0x5a7   :  { %1782 = vmatpush1.bf16.msra.mxu0 %v6206_v14  ;;  %1823 = vmatpush1.bf16.msra.mxu1 %v6208_v16 }
 0x5a8   :  { %1783 = vmatprep.subr.bf16.mxu0 %v6210_v61  ;;  %1824 = vmatprep.subr.bf16.mxu1 %v6212_v3 }
 0x5ab   :  { %1784 = vmatpush1.bf16.msra.mxu0 %v6218_v4  ;;  %1825 = vmatpush1.bf16.msra.mxu1 %v6220_v17 }
 0x5ac   :  { %1785 = vmatprep.subr.bf16.mxu0 %v6224_v20  ;;  %1826 = vmatprep.subr.bf16.mxu1 %v6226_v22 }
 0x5af   :  { %1786 = vmatpush1.bf16.msra.mxu0 %v6230_v24  ;;  %1827 = vmatpush1.bf16.msra.mxu1 %v6232_v25 }
 0x5b0   :  { %1787 = vmatprep.subr.bf16.mxu0 %v6238_v27  ;;  %1828 = vmatprep.subr.bf16.mxu1 %v6240_v29 }
 0x5b3   :  { %1788 = vmatpush1.bf16.msra.mxu0 %v6242_v5  ;;  %1829 = vmatpush1.bf16.msra.mxu1 %v6244_v31 }
 0x5b4   :  { %1789 = vmatprep.subr.bf16.mxu0 %v6246_v32  ;;  %1830 = vmatprep.subr.bf16.mxu1 %v6248_v23 }
 0x5b7   :  { %1790 = vmatpush1.bf16.msra.mxu0 %v6254_v34  ;;  %1831 = vmatpush1.bf16.msra.mxu1 %v6256_v62 }
 0x5b8   :  { %1887 = vmatprep.subr.bf16.mxu0 %v6166_v38  ;;  %1928 = vmatprep.subr.bf16.mxu1 %v6168_v39 }
 0x652   :  { %v6334_v6 = vpop.f32.mrf.mxu0  ;;  %v6336_v33 = vpop.f32.mrf.mxu1 }
 0x653   :  { %6958 = vst [vmem:[#allocation38_spill] sm:$0xff] %v6334_v6  ;;  %6959 = vst [vmem:[#allocation39_spill] sm:$0xff] %v6336_v33  ;;  %v1386_v33 = vadd.f32 %v1385_v8, %v6346_v49 }
 0x654   :  { %v6338_v35 = vpop.f32.mrf.mxu0  ;;  %v6340_v44 = vpop.f32.mrf.mxu1 }
 0x655   :  { %6960 = vst [vmem:[#allocation40_spill] sm:$0xff] %v6338_v35  ;;  %6961 = vst [vmem:[#allocation41_spill] sm:$0xff] %v6340_v44 }
 0x656   :  { %v1407_v36 = vpop.f32.mrf.mxu0  ;;  %v1468_v46 = vpop.f32.mrf.mxu1 }
 0x657   :  { %v6964_v46 = vld [vmem:[#allocation32_spill] sm:$0xff] }
 0x658   :  { %v1408_v1 = vpop.f32.mrf.mxu0  ;;  %v1469_v63 = vpop.f32.mrf.mxu1  ;;  %v6351_v37 = vrot.slane %v1167_v21, %v6964_v46 }
 0x65a   :  { %v1697_v58 = vpop.f32.mrf.mxu0  ;;  %v1738_v6 = vpop.f32.mrf.mxu1  ;;  %v1445_v30 = vadd.f32 %v1444_v13, %v6351_v37 }
 0x65b   :  { %v1745_v15 = vadd.f32 %v1697_v58, %v1384_v59  ;;  %v1447_v59 = vadd.f32 %v1446_v11, %v6355_v52 }
 0x65c   :  { %v1699_v35 = vpop.f32.mrf.mxu0  ;;  %v1740_v2 = vpop.f32.mrf.mxu1  ;;  %v1747_v8 = vadd.f32 %v1738_v6, %v1445_v30 }
 0x65d   :  { %v4470_v44 = vmul.f32 -1.442695, %v1745_v15  ;;  %v1746_v51 = vadd.f32 %v1699_v35, %v1386_v33  ;;  %v1748_v35 = vadd.f32 %v1740_v2, %v1447_v59  ;;  %v1388_v59 = vadd.f32 %v6307_v57, %v6343_v45 }
 0x65e   :  { %v1701_v19 = vpop.f32.mrf.mxu0  ;;  %v1742_v28 = vpop.f32.mrf.mxu1  ;;  %v4472_v15 = vmul.f32 -1.442695, %v1747_v8  ;;  %v1449_v57 = vadd.f32 %v6309_v53, %v6351_v37 }
 0x65f   :  { %5209 = vpow2.f32 %v4470_v44  ;;  %v4471_v36 = vmul.f32 -1.442695, %v1746_v51 }
 0x660   :  { %v1702_v1 = vpop.f32.mrf.mxu0  ;;  %v1743_v63 = vpop.f32.mrf.mxu1 }
 0x661   :  { %5211 = vpow2.f32 %v4471_v36 }
 0x662   :  { %5213 = vpow2.f32 %v4472_v15 }
 0x66c   :  { %v5210_v33 = vpop.eup %5209 }
 0x66d   :  { %v1758_v28 = vadd.f32 1.0, %v5210_v33 }
 0x66e   :  { %v5212_v44 = vpop.eup %5211 }
 0x66f   :  { %5215 = vrcp.f32 %v1758_v28  ;;  %v1759_v51 = vadd.f32 1.0, %v5212_v44  ;;  %v5214_v19 = vpop.eup %5213 }
 0x670   :  { %5217 = vtanh.f32 %v1748_v35  ;;  %v1760_v1 = vadd.f32 1.0, %v5214_v19  ;;  %v1390_v35 = vadd.f32 %v6311_v50, %v6346_v49 }
 0x671   :  { %5219 = vrcp.f32 %v1759_v51 }
 0x672   :  { %5221 = vrcp.f32 %v1760_v1 }
 0x67c   :  { %v5216_v58 = vpop.eup %5215 }
 0x67d   :  { %v5218_v36 = vpop.eup %5217 }
 0x67e   :  { %v5220_v13 = vpop.eup %5219  ;;  %v1769_v63 = vmul.f32 %v5218_v36, %v5216_v58 }
 0x67f   :  { %v1768_v21 = vmul.f32 0.0, %v5220_v13  ;;  %v5222_v11 = vpop.eup %5221 }
 0x681   :  { %v6358_v6 = vadd.f32 %v1769_v63, %v1768_v21 }
 0x683   :  { %5223 = vtanh.f32 %v6358_v6 }
 0x690   :  { %v5224_v2 = vpop.eup %5223 }
 0x691   :  { %v6361_v30 = vmul.f32 %v5224_v2, %v5222_v11  ;;  %v1451_v2 = vadd.f32 %v6313_v9, %v6355_v52 }
 0x693   :  { %v1774_v8 = vpack.c.bf16 %v6361_v30, %v6361_v30 }
 0x695   :  { %1808 = vmatmul.mubr.bf16.vlgmr.msra.gmra.mxu0 %v1774_v8  ;;  %1849 = vmatmul.mubr.bf16.vlgmr.msra.gmra.mxu1 %v1774_v8 }
 0x696   :  { %1888 = vmatpush1.bf16.msra.mxu0 %v6170_v7  ;;  %1929 = vmatpush1.bf16.msra.mxu1 %v6172_v0 }
 0x697   :  { %1889 = vmatprep.subr.bf16.mxu0 %v6178_v55  ;;  %1930 = vmatprep.subr.bf16.mxu1 %v6180_v47 }
 0x698   :  { %1919 = vmatprep.mubr.bf16.mxu0 %v6945_v18  ;;  %1960 = vmatprep.mubr.bf16.mxu1 %v6945_v18 }
 0x69a   :  { %1890 = vmatpush1.bf16.msra.mxu0 %v6182_v40  ;;  %1931 = vmatpush1.bf16.msra.mxu1 %v6184_v41 }
 0x69b   :  { %1891 = vmatprep.subr.bf16.mxu0 %v6190_v48  ;;  %1932 = vmatprep.subr.bf16.mxu1 %v6192_v42 }
 0x69e   :  { %1892 = vmatpush1.bf16.msra.mxu0 %v6194_v43  ;;  %1933 = vmatpush1.bf16.msra.mxu1 %v6196_v56 }
 0x69f   :  { %1893 = vmatprep.subr.bf16.mxu0 %v6202_v26  ;;  %1934 = vmatprep.subr.bf16.mxu1 %v6204_v12 }
 0x6a2   :  { %1894 = vmatpush1.bf16.msra.mxu0 %v6206_v14  ;;  %1935 = vmatpush1.bf16.msra.mxu1 %v6208_v16 }
 0x6a3   :  { %1895 = vmatprep.subr.bf16.mxu0 %v6210_v61  ;;  %1936 = vmatprep.subr.bf16.mxu1 %v6212_v3 }
 0x6a6   :  { %1896 = vmatpush1.bf16.msra.mxu0 %v6218_v4  ;;  %1937 = vmatpush1.bf16.msra.mxu1 %v6220_v17 }
 0x6a7   :  { %1897 = vmatprep.subr.bf16.mxu0 %v6224_v20  ;;  %1938 = vmatprep.subr.bf16.mxu1 %v6226_v22 }
 0x6aa   :  { %1898 = vmatpush1.bf16.msra.mxu0 %v6230_v24  ;;  %1939 = vmatpush1.bf16.msra.mxu1 %v6232_v25 }
 0x6ab   :  { %1899 = vmatprep.subr.bf16.mxu0 %v6238_v27  ;;  %1940 = vmatprep.subr.bf16.mxu1 %v6240_v29 }
 0x6ae   :  { %1900 = vmatpush1.bf16.msra.mxu0 %v6242_v5  ;;  %1941 = vmatpush1.bf16.msra.mxu1 %v6244_v31 }
 0x6af   :  { %1901 = vmatprep.subr.bf16.mxu0 %v6246_v32  ;;  %1942 = vmatprep.subr.bf16.mxu1 %v6248_v23 }
 0x6b2   :  { %1902 = vmatpush1.bf16.msra.mxu0 %v6254_v34  ;;  %1943 = vmatpush1.bf16.msra.mxu1 %v6256_v62 }
 0x6b3   :  { %1999 = vmatprep.subr.bf16.mxu0 %v6166_v38  ;;  %2040 = vmatprep.subr.bf16.mxu1 %v6168_v39 }
 0x755   :  { %v1809_v15 = vpop.f32.mrf.mxu0  ;;  %v1850_v33 = vpop.f32.mrf.mxu1 }
 0x756   :  { %v1857_v28 = vadd.f32 %v1809_v15, %v1388_v59  ;;  %v1859_v11 = vadd.f32 %v1850_v33, %v1449_v57 }
 0x757   :  { %v1811_v44 = vpop.f32.mrf.mxu0  ;;  %v1852_v51 = vpop.f32.mrf.mxu1 }
 0x758   :  { %v4473_v19 = vmul.f32 -1.442695, %v1857_v28  ;;  %v1858_v58 = vadd.f32 %v1811_v44, %v1390_v35  ;;  %v4475_v50 = vmul.f32 -1.442695, %v1859_v11  ;;  %v1860_v8 = vadd.f32 %v1852_v51, %v1451_v2 }
 0x759   :  { %v1813_v36 = vpop.f32.mrf.mxu0  ;;  %v1854_v13 = vpop.f32.mrf.mxu1  ;;  %v1396_v2 = vadd.f32 %v6319_v60, %v6346_v49 }
 0x75a   :  { %5225 = vpow2.f32 %v4473_v19  ;;  %v4474_v1 = vmul.f32 -1.442695, %v1858_v58 }
 0x75b   :  { %v1814_v21 = vpop.f32.mrf.mxu0  ;;  %v1855_v63 = vpop.f32.mrf.mxu1 }
 0x75c   :  { %5227 = vpow2.f32 %v4474_v1 }
 0x75d   :  { %5229 = vpow2.f32 %v4475_v50 }
 0x75e   :  { %5231 = vtanh.f32 %v1860_v8 }
 0x767   :  { %v5226_v59 = vpop.eup %5225 }
 0x768   :  { %v1870_v15 = vadd.f32 1.0, %v5226_v59 }
 0x769   :  { %v5228_v35 = vpop.eup %5227 }
 0x76a   :  { %5233 = vrcp.f32 %v1870_v15  ;;  %v1871_v28 = vadd.f32 1.0, %v5228_v35  ;;  %v5230_v44 = vpop.eup %5229 }
 0x76b   :  { %v5232_v19 = vpop.eup %5231  ;;  %v1872_v53 = vadd.f32 1.0, %v5230_v44 }
 0x76c   :  { %5235 = vrcp.f32 %v1871_v28 }
 0x76d   :  { %5237 = vrcp.f32 %v1872_v53 }
 0x777   :  { %v5234_v58 = vpop.eup %5233 }
 0x778   :  { %v1881_v36 = vmul.f32 %v5234_v58, %v5232_v19 }
 0x779   :  { %v5236_v13 = vpop.eup %5235 }
 0x77a   :  { %v1880_v33 = vmul.f32 %v5236_v13, %v6358_v6  ;;  %v5238_v9 = vpop.eup %5237  ;;  %v1394_v6 = vadd.f32 %v6315_v54, %v6343_v45  ;;  %v6967_v13 = vld [vmem:[#allocation35_spill] sm:$0xff] }
 0x77b   :  { %v1457_v53 = vadd.f32 %v6967_v13, %v6355_v52 }
 0x77c   :  { %v6408_v1 = vadd.f32 %v1881_v36, %v1880_v33 }
 0x77e   :  { %5239 = vtanh.f32 %v6408_v1 }
 0x78b   :  { %v5240_v51 = vpop.eup %5239 }
 0x78c   :  { %v6411_v21 = vmul.f32 %v5240_v51, %v5238_v9 }
 0x78e   :  { %v1886_v63 = vpack.c.bf16 %v6411_v21, %v6411_v21 }
 0x790   :  { %1920 = vmatmul.mubr.bf16.vlgmr.msra.gmra.mxu0 %v1886_v63  ;;  %1961 = vmatmul.mubr.bf16.vlgmr.msra.gmra.mxu1 %v1886_v63 }
 0x791   :  { %2000 = vmatpush1.bf16.msra.mxu0 %v6170_v7  ;;  %2041 = vmatpush1.bf16.msra.mxu1 %v6172_v0 }
 0x792   :  { %2001 = vmatprep.subr.bf16.mxu0 %v6178_v55  ;;  %2042 = vmatprep.subr.bf16.mxu1 %v6180_v47 }
 0x793   :  { %2031 = vmatprep.mubr.bf16.mxu0 %v6945_v18  ;;  %2072 = vmatprep.mubr.bf16.mxu1 %v6945_v18 }
 0x795   :  { %2002 = vmatpush1.bf16.msra.mxu0 %v6182_v40  ;;  %2043 = vmatpush1.bf16.msra.mxu1 %v6184_v41 }
 0x796   :  { %2003 = vmatprep.subr.bf16.mxu0 %v6190_v48  ;;  %2044 = vmatprep.subr.bf16.mxu1 %v6192_v42 }
 0x799   :  { %2004 = vmatpush1.bf16.msra.mxu0 %v6194_v43  ;;  %2045 = vmatpush1.bf16.msra.mxu1 %v6196_v56 }
 0x79a   :  { %2005 = vmatprep.subr.bf16.mxu0 %v6202_v26  ;;  %2046 = vmatprep.subr.bf16.mxu1 %v6204_v12 }
 0x79d   :  { %2006 = vmatpush1.bf16.msra.mxu0 %v6206_v14  ;;  %2047 = vmatpush1.bf16.msra.mxu1 %v6208_v16 }
 0x79e   :  { %2007 = vmatprep.subr.bf16.mxu0 %v6210_v61  ;;  %2048 = vmatprep.subr.bf16.mxu1 %v6212_v3 }
 0x7a1   :  { %2008 = vmatpush1.bf16.msra.mxu0 %v6218_v4  ;;  %2049 = vmatpush1.bf16.msra.mxu1 %v6220_v17 }
 0x7a2   :  { %2009 = vmatprep.subr.bf16.mxu0 %v6224_v20  ;;  %2050 = vmatprep.subr.bf16.mxu1 %v6226_v22 }
 0x7a5   :  { %2010 = vmatpush1.bf16.msra.mxu0 %v6230_v24  ;;  %2051 = vmatpush1.bf16.msra.mxu1 %v6232_v25 }
 0x7a6   :  { %2011 = vmatprep.subr.bf16.mxu0 %v6238_v27  ;;  %2052 = vmatprep.subr.bf16.mxu1 %v6240_v29 }
 0x7a9   :  { %2012 = vmatpush1.bf16.msra.mxu0 %v6242_v5  ;;  %2053 = vmatpush1.bf16.msra.mxu1 %v6244_v31 }
 0x7aa   :  { %2013 = vmatprep.subr.bf16.mxu0 %v6246_v32  ;;  %2054 = vmatprep.subr.bf16.mxu1 %v6248_v23 }
 0x7ad   :  { %2014 = vmatpush1.bf16.msra.mxu0 %v6254_v34  ;;  %2055 = vmatpush1.bf16.msra.mxu1 %v6256_v62 }
 0x7ae   :  { %2111 = vmatprep.subr.bf16.mxu0 %v6166_v38  ;;  %2152 = vmatprep.subr.bf16.mxu1 %v6168_v39  ;;  %v6966_v39 = vld [vmem:[#allocation34_spill] sm:$0xff] }
 0x7af   :  { %v1455_v54 = vadd.f32 %v6966_v39, %v6351_v37 }
 0x850   :  { %v1921_v57 = vpop.f32.mrf.mxu0  ;;  %v1962_v11 = vpop.f32.mrf.mxu1 }
 0x851   :  { %v1969_v50 = vadd.f32 %v1921_v57, %v1394_v6  ;;  %v1971_v36 = vadd.f32 %v1962_v11, %v1455_v54 }
 0x852   :  { %v1923_v8 = vpop.f32.mrf.mxu0  ;;  %v1964_v59 = vpop.f32.mrf.mxu1 }
 0x853   :  { %v4476_v15 = vmul.f32 -1.442695, %v1969_v50  ;;  %v1970_v35 = vadd.f32 %v1923_v8, %v1396_v2  ;;  %v4478_v60 = vmul.f32 -1.442695, %v1971_v36  ;;  %v1972_v33 = vadd.f32 %v1964_v59, %v1457_v53 }
 0x854   :  { %v1925_v28 = vpop.f32.mrf.mxu0  ;;  %v1966_v44 = vpop.f32.mrf.mxu1 }
 0x855   :  { %5241 = vpow2.f32 %v4476_v15  ;;  %v4477_v19 = vmul.f32 -1.442695, %v1970_v35 }
 0x856   :  { %v1926_v38 = vpop.f32.mrf.mxu0  ;;  %v1967_v58 = vpop.f32.mrf.mxu1 }
 0x857   :  { %5243 = vpow2.f32 %v4477_v19 }
 0x858   :  { %5245 = vpow2.f32 %v4478_v60 }
 0x859   :  { %5247 = vtanh.f32 %v1972_v33 }
 0x862   :  { %v5242_v9 = vpop.eup %5241 }
 0x863   :  { %v1982_v51 = vadd.f32 1.0, %v5242_v9 }
 0x864   :  { %v5244_v63 = vpop.eup %5243 }
 0x865   :  { %5249 = vrcp.f32 %v1982_v51  ;;  %v1983_v6 = vadd.f32 1.0, %v5244_v63  ;;  %v5246_v57 = vpop.eup %5245  ;;  %v4889_v51 = vld [vmem:[#allocation12 + $0xe0] ss:$16 sps:$4 sm:$0xff]   ;;  %v4892_v63 = vld [vmem:[#allocation12 + $0xe8] ss:$16 sps:$4 sm:$0xff]  }
 0x866   :  { %v5248_v2 = vpop.eup %5247  ;;  %v1984_v35 = vadd.f32 1.0, %v5246_v57  ;;  %v4897_v57 = vld [vmem:[#allocation12 + $0xc4] ss:$16 sps:$4 sm:$0xff]  }
 0x867   :  { %5251 = vrcp.f32 %v1983_v6 }
 0x868   :  { %5253 = vrcp.f32 %v1984_v35  ;;  %v4906_v35 = vld [vmem:[#allocation12 + $0xac] ss:$16 sps:$4 sm:$0xff]  }
 0x872   :  { %v5250_v50 = vpop.eup %5249 }
 0x873   :  { %v1993_v8 = vmul.f32 %v5250_v50, %v5248_v2  ;;  %v4900_v2 = vld [vmem:[#allocation12 + $0xcc] ss:$16 sps:$4 sm:$0xff]   ;;  %v4895_v50 = vld [vmem:[#allocation12 + $0xc0] ss:$16 sps:$4 sm:$0xff]  }
 0x874   :  { %v5252_v15 = vpop.eup %5251 }
 0x875   :  { %v1992_v11 = vmul.f32 %v5252_v15, %v6408_v1  ;;  %v5254_v59 = vpop.eup %5253  ;;  %v4903_v15 = vld [vmem:[#allocation12 + $0xa4] ss:$16 sps:$4 sm:$0xff]  }
 0x877   :  { %v6458_v28 = vadd.f32 %v1993_v8, %v1992_v11  ;;  %v4898_v8 = vld [vmem:[#allocation12 + $0xc8] ss:$16 sps:$4 sm:$0xff]   ;;  %v4901_v11 = vld [vmem:[#allocation12 + $0xa0] ss:$16 sps:$4 sm:$0xff]  }
 0x879   :  { %5255 = vtanh.f32 %v6458_v28 }
 0x886   :  { %v5256_v44 = vpop.eup %5255 }
 0x887   :  { %v6461_v19 = vmul.f32 %v5256_v44, %v5254_v59  ;;  %v4909_v59 = vld [vmem:[#allocation12 + $0x84] ss:$16 sps:$4 sm:$0xff]   ;;  %v4912_v44 = vld [vmem:[#allocation12 + $0x8c] ss:$16 sps:$4 sm:$0xff]  }
 0x889   :  { %v1998_v38 = vpack.c.bf16 %v6461_v19, %v6461_v19 }
 0x88b   :  { %2032 = vmatmul.mubr.bf16.vlgmr.msra.gmra.mxu0 %v1998_v38  ;;  %2073 = vmatmul.mubr.bf16.vlgmr.msra.gmra.mxu1 %v1998_v38  ;;  %v4907_v38 = vld [vmem:[#allocation12 + $0x80] ss:$16 sps:$4 sm:$0xff]  }
 0x88c   :  { %2112 = vmatpush1.bf16.msra.mxu0 %v6170_v7  ;;  %2153 = vmatpush1.bf16.msra.mxu1 %v6172_v0  ;;  %v4891_v7 = vld [vmem:[#allocation12 + $0xe4] ss:$16 sps:$4 sm:$0xff]   ;;  %v4894_v0 = vld [vmem:[#allocation12 + $0xec] ss:$16 sps:$4 sm:$0xff]  }
 0x88d   :  { %2113 = vmatprep.subr.bf16.mxu0 %v6178_v55  ;;  %2154 = vmatprep.subr.bf16.mxu1 %v6180_v47  ;;  %v6968_v55 = vld [vmem:[#allocation30_spill] sm:$0xff] }
 0x88e   :  { %2143 = vmatprep.mubr.bf16.mxu0 %v6945_v18  ;;  %2184 = vmatprep.mubr.bf16.mxu1 %v6945_v18  ;;  %v1398_v47 = vadd.f32 %v6968_v55, %v6343_v45  ;;  %v4918_v55 = vld [vmem:[#allocation12 + $0x6c] ss:$16 sps:$4 sm:$0xff]  }
 0x890   :  { %2114 = vmatpush1.bf16.msra.mxu0 %v6182_v40  ;;  %2155 = vmatpush1.bf16.msra.mxu1 %v6184_v41 }
 0x891   :  { %2115 = vmatprep.subr.bf16.mxu0 %v6190_v48  ;;  %2156 = vmatprep.subr.bf16.mxu1 %v6192_v42  ;;  %v6969_v48 = vld [vmem:[#allocation36_spill] sm:$0xff] }
 0x892   :  { %v1400_v42 = vadd.f32 %v6969_v48, %v6346_v49  ;;  %v4924_v48 = vld [vmem:[#allocation12 + $0x4c] ss:$16 sps:$4 sm:$0xff]  }
 0x894   :  { %2116 = vmatpush1.bf16.msra.mxu0 %v6194_v43  ;;  %2157 = vmatpush1.bf16.msra.mxu1 %v6196_v56 }
 0x895   :  { %2117 = vmatprep.subr.bf16.mxu0 %v6202_v26  ;;  %2158 = vmatprep.subr.bf16.mxu1 %v6204_v12 }
 0x898   :  { %2118 = vmatpush1.bf16.msra.mxu0 %v6206_v14  ;;  %2159 = vmatpush1.bf16.msra.mxu1 %v6208_v16 }
 0x899   :  { %2119 = vmatprep.subr.bf16.mxu0 %v6210_v61  ;;  %2160 = vmatprep.subr.bf16.mxu1 %v6212_v3 }
 0x89c   :  { %2120 = vmatpush1.bf16.msra.mxu0 %v6218_v4  ;;  %2161 = vmatpush1.bf16.msra.mxu1 %v6220_v17 }
 0x89d   :  { %2121 = vmatprep.subr.bf16.mxu0 %v6224_v20  ;;  %2162 = vmatprep.subr.bf16.mxu1 %v6226_v22  ;;  %v6970_v20 = vld [vmem:[#allocation31_spill] sm:$0xff] }
 0x89e   :  { %v1459_v22 = vadd.f32 %v6970_v20, %v6351_v37 }
 0x8a0   :  { %2122 = vmatpush1.bf16.msra.mxu0 %v6230_v24  ;;  %2163 = vmatpush1.bf16.msra.mxu1 %v6232_v25  ;;  %v6971_v25 = vld [vmem:[#allocation37_spill] sm:$0xff] }
 0x8a1   :  { %2123 = vmatprep.subr.bf16.mxu0 %v6238_v27  ;;  %2164 = vmatprep.subr.bf16.mxu1 %v6240_v29  ;;  %v1461_v27 = vadd.f32 %v6971_v25, %v6355_v52  ;;  %v6537_v25 = vld [vmem:[#allocation14 + $0xcc] ss:$16 sps:$4 sm:$0xff]  }
 0x8a4   :  { %2124 = vmatpush1.bf16.msra.mxu0 %v6242_v5  ;;  %2165 = vmatpush1.bf16.msra.mxu1 %v6244_v31 }
 0x8a5   :  { %2125 = vmatprep.subr.bf16.mxu0 %v6246_v32  ;;  %2166 = vmatprep.subr.bf16.mxu1 %v6248_v23 }
 0x8a8   :  { %2126 = vmatpush1.bf16.msra.mxu0 %v6254_v34  ;;  %2167 = vmatpush1.bf16.msra.mxu1 %v6256_v62 }
 0x8a9   :  { %2444 = vmatprep.subr.bf16.mxu0 %v4891_v7  ;;  %2505 = vmatprep.subr.bf16.mxu1 %v4894_v0  ;;  %v4910_v7 = vld [vmem:[#allocation12 + $0x88] ss:$16 sps:$4 sm:$0xff]   ;;  %v4915_v0 = vld [vmem:[#allocation12 + $0x64] ss:$16 sps:$4 sm:$0xff]  }
 0x94b   :  { %v2033_v40 = vpop.f32.mrf.mxu0  ;;  %v2074_v41 = vpop.f32.mrf.mxu1 }
 0x94c   :  { %v2081_v43 = vadd.f32 %v2033_v40, %v1398_v47  ;;  %v2083_v24 = vadd.f32 %v2074_v41, %v1459_v22  ;;  %v4913_v47 = vld [vmem:[#allocation12 + $0x60] ss:$16 sps:$4 sm:$0xff]   ;;  %v4916_v40 = vld [vmem:[#allocation12 + $0x68] ss:$16 sps:$4 sm:$0xff]   ;;  %v4921_v41 = vld [vmem:[#allocation12 + $0x44] ss:$16 sps:$4 sm:$0xff]  }
 0x94d   :  { %v2035_v56 = vpop.f32.mrf.mxu0  ;;  %v2076_v26 = vpop.f32.mrf.mxu1  ;;  %v6523_v22 = vld [vmem:[#allocation14 + $0xe4] ss:$16 sps:$4 sm:$0xff]  }
 0x94e   :  { %v4479_v12 = vmul.f32 -1.442695, %v2081_v43  ;;  %v2082_v14 = vadd.f32 %v2035_v56, %v1400_v42  ;;  %v4481_v29 = vmul.f32 -1.442695, %v2083_v24  ;;  %v2084_v31 = vadd.f32 %v2076_v26, %v1461_v27  ;;  %v4919_v42 = vld [vmem:[#allocation12 + $0x40] ss:$16 sps:$4 sm:$0xff]  }
 0x94f   :  { %v2037_v16 = vpop.f32.mrf.mxu0  ;;  %v2078_v61 = vpop.f32.mrf.mxu1  ;;  %v4922_v43 = vld [vmem:[#allocation12 + $0x48] ss:$16 sps:$4 sm:$0xff]   ;;  %v4927_v56 = vld [vmem:[#allocation12 + $0x24] ss:$16 sps:$4 sm:$0xff]   ;;  %v4930_v26 = vld [vmem:[#allocation12 + $0x2c] ss:$16 sps:$4 sm:$0xff]  }
 0x950   :  { %5257 = vpow2.f32 %v4479_v12  ;;  %v4480_v3 = vmul.f32 -1.442695, %v2082_v14  ;;  %v4925_v12 = vld [vmem:[#allocation12 + $0x20] ss:$16 sps:$4 sm:$0xff]   ;;  %v4928_v14 = vld [vmem:[#allocation12 + $0x28] ss:$16 sps:$4 sm:$0xff]  }
 0x951   :  { %v2038_v4 = vpop.f32.mrf.mxu0  ;;  %v2079_v17 = vpop.f32.mrf.mxu1  ;;  %v4933_v16 = vld [vmem:[#allocation12 + $0x4] ss:$16 sps:$4 sm:$0xff]   ;;  %v4936_v61 = vld [vmem:[#allocation12 + $0xc] ss:$16 sps:$4 sm:$0xff]   ;;  %v6539_v27 = vld [vmem:[#allocation14 + $0xc0] ss:$16 sps:$4 sm:$0xff]  }
 0x952   :  { %5259 = vpow2.f32 %v4480_v3  ;;  %v4931_v3 = vld [vmem:[#allocation12] ss:$16 sps:$4 sm:$0xff]   ;;  %v4934_v4 = vld [vmem:[#allocation12 + $0x8] ss:$16 sps:$4 sm:$0xff]   ;;  %v2227_v17 = vpack.c.bf16 %v6411_v21, %v6361_v30  ;;  %v6525_v24 = vld [vmem:[#allocation14 + $0xec] ss:$16 sps:$4 sm:$0xff]  }
 0x953   :  { %5261 = vpow2.f32 %v4481_v29  ;;  %v6527_v30 = vld [vmem:[#allocation14 + $0xe0] ss:$16 sps:$4 sm:$0xff]   ;;  %v6529_v21 = vld [vmem:[#allocation14 + $0xe8] ss:$16 sps:$4 sm:$0xff]  }
 0x954   :  { %v6541_v29 = vld [vmem:[#allocation14 + $0xc8] ss:$16 sps:$4 sm:$0xff]  }
 0x95d   :  { %v5258_v5 = vpop.eup %5257 }
 0x95e   :  { %v2094_v32 = vadd.f32 1.0, %v5258_v5  ;;  %v6547_v5 = vld [vmem:[#allocation14 + $0xa4] ss:$16 sps:$4 sm:$0xff]  }
 0x95f   :  { %v5260_v23 = vpop.eup %5259 }
 0x960   :  { %5263 = vrcp.f32 %v2094_v32  ;;  %v2095_v34 = vadd.f32 1.0, %v5260_v23  ;;  %v5262_v62 = vpop.eup %5261  ;;  %v6551_v32 = vld [vmem:[#allocation14 + $0xa0] ss:$16 sps:$4 sm:$0xff]   ;;  %v6553_v23 = vld [vmem:[#allocation14 + $0xa8] ss:$16 sps:$4 sm:$0xff]  }
 0x961   :  { %5265 = vtanh.f32 %v2084_v31  ;;  %v2096_v54 = vadd.f32 1.0, %v5262_v62  ;;  %v6549_v31 = vld [vmem:[#allocation14 + $0xac] ss:$16 sps:$4 sm:$0xff]  }
 0x962   :  { %5267 = vrcp.f32 %v2095_v34  ;;  %v6559_v34 = vld [vmem:[#allocation14 + $0x84] ss:$16 sps:$4 sm:$0xff]   ;;  %v6561_v62 = vld [vmem:[#allocation14 + $0x8c] ss:$16 sps:$4 sm:$0xff]  }
 0x963   :  { %5269 = vrcp.f32 %v2096_v54  ;;  %v6569_v54 = vld [vmem:[#allocation14 + $0x6c] ss:$16 sps:$4 sm:$0xff]  }
 0x96d   :  { %v5264_v1 = vpop.eup %5263 }
 0x96e   :  { %v5266_v58 = vpop.eup %5265 }
 0x96f   :  { %v5268_v39 = vpop.eup %5267  ;;  %v2105_v13 = vmul.f32 %v5266_v58, %v5264_v1  ;;  %v6563_v1 = vld [vmem:[#allocation14 + $0x80] ss:$16 sps:$4 sm:$0xff]   ;;  %v6565_v58 = vld [vmem:[#allocation14 + $0x88] ss:$16 sps:$4 sm:$0xff]  }
 0x970   :  { %v2104_v36 = vmul.f32 %v5268_v39, %v6458_v28  ;;  %v5270_v60 = vpop.eup %5269  ;;  %v4904_v28 = vld [vmem:[#allocation12 + $0xa8] ss:$16 sps:$4 sm:$0xff]   ;;  %v6567_v39 = vld [vmem:[#allocation14 + $0x64] ss:$16 sps:$4 sm:$0xff]  }
 0x972   :  { %v6506_v53 = vadd.f32 %v2105_v13, %v2104_v36  ;;  %v6575_v36 = vld [vmem:[#allocation14 + $0x60] ss:$16 sps:$4 sm:$0xff]   ;;  %v6577_v13 = vld [vmem:[#allocation14 + $0x68] ss:$16 sps:$4 sm:$0xff]  }
 0x974   :  { %5271 = vtanh.f32 %v6506_v53 }
 0x981   :  { %v5272_v33 = vpop.eup %5271 }
 0x982   :  { %v6509_v9 = vmul.f32 %v5272_v33, %v5270_v60  ;;  %v6581_v60 = vld [vmem:[#allocation14 + $0x44] ss:$16 sps:$4 sm:$0xff]   ;;  %v6583_v33 = vld [vmem:[#allocation14 + $0x4c] ss:$16 sps:$4 sm:$0xff]  }
 0x984   :  { %v2110_v6 = vpack.c.bf16 %v6509_v9, %v6509_v9  ;;  %v2228_v20 = vpack.c.bf16 %v6509_v9, %v6461_v19  ;;  %v6535_v19 = vld [vmem:[#allocation14 + $0xc4] ss:$16 sps:$4 sm:$0xff]   ;;  %v6587_v9 = vld [vmem:[#allocation14 + $0x40] ss:$16 sps:$4 sm:$0xff]  }
 0x986   :  { %2144 = vmatmul.mubr.bf16.vlgmr.msra.gmra.mxu0 %v2110_v6  ;;  %2185 = vmatmul.mubr.bf16.vlgmr.msra.gmra.mxu1 %v2110_v6  ;;  %v6597_v6 = vld [vmem:[#allocation14 + $0x2c] ss:$16 sps:$4 sm:$0xff]  }
 0x987   :  { %2445 = vmatpush1.bf16.msra.mxu0 %v4889_v51  ;;  %2506 = vmatpush1.bf16.msra.mxu1 %v4892_v63  ;;  %v6589_v51 = vld [vmem:[#allocation14 + $0x48] ss:$16 sps:$4 sm:$0xff]   ;;  %v6595_v63 = vld [vmem:[#allocation14 + $0x24] ss:$16 sps:$4 sm:$0xff]  }
 0x988   :  { %2446 = vmatprep.subr.bf16.mxu0 %v4897_v57  ;;  %2507 = vmatprep.subr.bf16.mxu1 %v4900_v2  ;;  %v6599_v57 = vld [vmem:[#allocation14 + $0x20] ss:$16 sps:$4 sm:$0xff]   ;;  %v6601_v2 = vld [vmem:[#allocation14 + $0x28] ss:$16 sps:$4 sm:$0xff]  }
 0x989   :  { %2476 = vmatprep.mubr.bf16.mxu0 %v6945_v18  ;;  %2537 = vmatprep.mubr.bf16.mxu1 %v6945_v18 }
 0x98b   :  { %2447 = vmatpush1.bf16.msra.mxu0 %v4895_v50  ;;  %2508 = vmatpush1.bf16.msra.mxu1 %v4898_v8  ;;  %v6603_v50 = vld [vmem:[#allocation14 + $0x4] ss:$16 sps:$4 sm:$0xff]   ;;  %v6605_v8 = vld [vmem:[#allocation14 + $0xc] ss:$16 sps:$4 sm:$0xff]  }
 0x98c   :  { %2448 = vmatprep.subr.bf16.mxu0 %v4903_v15  ;;  %2509 = vmatprep.subr.bf16.mxu1 %v4906_v35  ;;  %v6611_v15 = vld [vmem:[#allocation14] ss:$16 sps:$4 sm:$0xff]   ;;  %v6613_v35 = vld [vmem:[#allocation14 + $0x8] ss:$16 sps:$4 sm:$0xff]  }
 0x98f   :  { %2449 = vmatpush1.bf16.msra.mxu0 %v4901_v11  ;;  %2510 = vmatpush1.bf16.msra.mxu1 %v4904_v28  ;;  %v6972_v11 = vld [vmem:[#allocation38_spill] sm:$0xff] }
 0x990   :  { %2450 = vmatprep.subr.bf16.mxu0 %v4909_v59  ;;  %2511 = vmatprep.subr.bf16.mxu1 %v4912_v44  ;;  %v1404_v28 = vadd.f32 %v6972_v11, %v6343_v45 }
 0x993   :  { %2451 = vmatpush1.bf16.msra.mxu0 %v4907_v38  ;;  %2512 = vmatpush1.bf16.msra.mxu1 %v4910_v7  ;;  %v6973_v38 = vld [vmem:[#allocation40_spill] sm:$0xff] }
 0x994   :  { %2452 = vmatprep.subr.bf16.mxu0 %v4915_v0  ;;  %2513 = vmatprep.subr.bf16.mxu1 %v4918_v55  ;;  %v1406_v7 = vadd.f32 %v6973_v38, %v6346_v49 }
 0x997   :  { %2453 = vmatpush1.bf16.msra.mxu0 %v4913_v47  ;;  %2514 = vmatpush1.bf16.msra.mxu1 %v4916_v40 }
 0x998   :  { %2454 = vmatprep.subr.bf16.mxu0 %v4921_v41  ;;  %2515 = vmatprep.subr.bf16.mxu1 %v4924_v48 }
 0x99b   :  { %2455 = vmatpush1.bf16.msra.mxu0 %v4919_v42  ;;  %2516 = vmatpush1.bf16.msra.mxu1 %v4922_v43 }
 0x99c   :  { %2456 = vmatprep.subr.bf16.mxu0 %v4927_v56  ;;  %2517 = vmatprep.subr.bf16.mxu1 %v4930_v26 }
 0x99f   :  { %2457 = vmatpush1.bf16.msra.mxu0 %v4925_v12  ;;  %2518 = vmatpush1.bf16.msra.mxu1 %v4928_v14  ;;  %v6974_v12 = vld [vmem:[#allocation39_spill] sm:$0xff] }
 0x9a0   :  { %2458 = vmatprep.subr.bf16.mxu0 %v4933_v16  ;;  %2519 = vmatprep.subr.bf16.mxu1 %v4936_v61  ;;  %v1465_v45 = vadd.f32 %v6974_v12, %v6351_v37  ;;  %v6975_v16 = vld [vmem:[#allocation41_spill] sm:$0xff] }
 0x9a1   :  { %v1467_v61 = vadd.f32 %v6975_v16, %v6355_v52 }
 0x9a3   :  { %2459 = vmatpush1.bf16.msra.mxu0 %v4931_v3  ;;  %2520 = vmatpush1.bf16.msra.mxu1 %v4934_v4 }
 0x9a4   :  { %2758 = vmatprep.subr.bf16.mxu0 %v6523_v22  ;;  %2799 = vmatprep.subr.bf16.mxu1 %v6525_v24 }
 0x9a6   :  { %2477 = vmatmul.mubr.bf16.vlgmr.msra.gmra.mxu0 %v2227_v17  ;;  %2538 = vmatmul.mubr.bf16.vlgmr.msra.gmra.mxu1 %v2227_v17 }
 0x9a7   :  { %2486 = vmatprep.mubr.bf16.mxu0 %v6945_v18  ;;  %2547 = vmatprep.mubr.bf16.mxu1 %v6945_v18 }
 0x9a8   :  { %2759 = vmatpush1.bf16.msra.mxu0 %v6527_v30  ;;  %2800 = vmatpush1.bf16.msra.mxu1 %v6529_v21 }
 0x9a9   :  { %2760 = vmatprep.subr.bf16.mxu0 %v6535_v19  ;;  %2801 = vmatprep.subr.bf16.mxu1 %v6537_v25 }
 0x9ac   :  { %2761 = vmatpush1.bf16.msra.mxu0 %v6539_v27  ;;  %2802 = vmatpush1.bf16.msra.mxu1 %v6541_v29 }
 0x9ad   :  { %2762 = vmatprep.subr.bf16.mxu0 %v6547_v5  ;;  %2803 = vmatprep.subr.bf16.mxu1 %v6549_v31 }
 0x9ae   :  { %2487 = vmatmul.mubr.bf16.gmra.mxu0 %v2228_v20  ;;  %2548 = vmatmul.mubr.bf16.gmra.mxu1 %v2228_v20 }
 0x9af   :  { %2496 = vmatprep.mubr.bf16.mxu0 %v6945_v18  ;;  %2557 = vmatprep.mubr.bf16.mxu1 %v6945_v18 }
 0x9b0   :  { %2763 = vmatpush1.bf16.msra.mxu0 %v6551_v32  ;;  %2804 = vmatpush1.bf16.msra.mxu1 %v6553_v23 }
 0x9b1   :  { %2764 = vmatprep.subr.bf16.mxu0 %v6559_v34  ;;  %2805 = vmatprep.subr.bf16.mxu1 %v6561_v62 }
 0x9b4   :  { %2765 = vmatpush1.bf16.msra.mxu0 %v6563_v1  ;;  %2806 = vmatpush1.bf16.msra.mxu1 %v6565_v58 }
 0x9b5   :  { %2766 = vmatprep.subr.bf16.mxu0 %v6567_v39  ;;  %2807 = vmatprep.subr.bf16.mxu1 %v6569_v54 }
 0x9b8   :  { %2767 = vmatpush1.bf16.msra.mxu0 %v6575_v36  ;;  %2808 = vmatpush1.bf16.msra.mxu1 %v6577_v13 }
 0x9b9   :  { %2768 = vmatprep.subr.bf16.mxu0 %v6581_v60  ;;  %2809 = vmatprep.subr.bf16.mxu1 %v6583_v33 }
 0x9bc   :  { %2769 = vmatpush1.bf16.msra.mxu0 %v6587_v9  ;;  %2810 = vmatpush1.bf16.msra.mxu1 %v6589_v51 }
 0x9bd   :  { %2770 = vmatprep.subr.bf16.mxu0 %v6595_v63  ;;  %2811 = vmatprep.subr.bf16.mxu1 %v6597_v6 }
 0x9c0   :  { %2771 = vmatpush1.bf16.msra.mxu0 %v6599_v57  ;;  %2812 = vmatpush1.bf16.msra.mxu1 %v6601_v2 }
 0x9c1   :  { %2772 = vmatprep.subr.bf16.mxu0 %v6603_v50  ;;  %2813 = vmatprep.subr.bf16.mxu1 %v6605_v8 }
 0x9c4   :  { %2773 = vmatpush1.bf16.msra.mxu0 %v6611_v15  ;;  %2814 = vmatpush1.bf16.msra.mxu1 %v6613_v35 }
 0x9c5   :  { %2870 = vmatprep.subr.bf16.mxu0 %v6523_v22  ;;  %2911 = vmatprep.subr.bf16.mxu1 %v6525_v24 }
 0xa46   :  { %v2145_v59 = vpop.f32.mrf.mxu0  ;;  %v2186_v44 = vpop.f32.mrf.mxu1 }
 0xa47   :  { %v2193_v0 = vadd.f32 %v2145_v59, %v1404_v28  ;;  %v2195_v14 = vadd.f32 %v2186_v44, %v1465_v45 }
 0xa48   :  { %v2147_v55 = vpop.f32.mrf.mxu0  ;;  %v2188_v47 = vpop.f32.mrf.mxu1 }
 0xa49   :  { %v4482_v40 = vmul.f32 -1.442695, %v2193_v0  ;;  %v2194_v41 = vadd.f32 %v2147_v55, %v1406_v7  ;;  %v4484_v49 = vmul.f32 -1.442695, %v2195_v14  ;;  %v2196_v3 = vadd.f32 %v2188_v47, %v1467_v61 }
 0xa4a   :  { %v2149_v48 = vpop.f32.mrf.mxu0  ;;  %v2190_v42 = vpop.f32.mrf.mxu1 }
 0xa4b   :  { %5273 = vpow2.f32 %v4482_v40  ;;  %v4483_v43 = vmul.f32 -1.442695, %v2194_v41 }
 0xa4c   :  { %v2150_v56 = vpop.f32.mrf.mxu0  ;;  %v2191_v26 = vpop.f32.mrf.mxu1 }
 0xa4d   :  { %5275 = vpow2.f32 %v4483_v43 }
 0xa4e   :  { %5277 = vpow2.f32 %v4484_v49 }
 0xa4f   :  { %5279 = vtanh.f32 %v2196_v3 }
 0xa58   :  { %v5274_v4 = vpop.eup %5273 }
 0xa59   :  { %v2206_v17 = vadd.f32 1.0, %v5274_v4 }
 0xa5a   :  { %v5276_v20 = vpop.eup %5275 }
 0xa5b   :  { %5281 = vrcp.f32 %v2206_v17  ;;  %v2207_v11 = vadd.f32 1.0, %v5276_v20  ;;  %v5278_v28 = vpop.eup %5277 }
 0xa5c   :  { %v5280_v59 = vpop.eup %5279  ;;  %v2208_v37 = vadd.f32 1.0, %v5278_v28 }
 0xa5d   :  { %5283 = vrcp.f32 %v2207_v11  ;;  %v2262_v11 = vld [vmem:[%s6915_s9] sm:$0xf] }
 0xa5e   :  { %5285 = vrcp.f32 %v2208_v37 }
 0xa66   :  { %v2539_v48 = vpop.f32.mrf.mxu1 }
 0xa68   :  { %v5282_v38 = vpop.eup %5281  ;;  %v2541_v43 = vpop.f32.mrf.mxu1 }
 0xa69   :  { %v2217_v7 = vmul.f32 %v5282_v38, %v5280_v59 }
 0xa6a   :  { %v5284_v0 = vpop.eup %5283  ;;  %v6670_v26 = vpop.f32.mrf.mxu1 }
 0xa6b   :  { %v2216_v44 = vmul.f32 %v5284_v0, %v6506_v53  ;;  %v5286_v52 = vpop.eup %5285  ;;  %v2478_v53 = vpop.f32.mrf.mxu0  ;;  %v6986_v0 = vld [vmem:[#allocation28_spill] sm:$0xff] }
 0xa6c   :  { %v6674_v45 = vpop.f32.mrf.mxu1  ;;  %v6704_v37 = vrot.slane %v2262_v11, %v6986_v0 }
 0xa6d   :  { %v2218_v55 = vadd.f32 %v2217_v7, %v2216_v44  ;;  %v2480_v42 = vpop.f32.mrf.mxu0 }
 0xa6e   :  { %v6678_v16 = vpop.f32.mrf.mxu1 }
 0xa6f   :  { %5287 = vtanh.f32 %v2218_v55  ;;  %v6668_v56 = vpop.f32.mrf.mxu0  ;;  %6976 = vst [vmem:[#allocation32_spill] sm:$0xff] %v6678_v16 }
 0xa70   :  { %v6682_v49 = vpop.f32.mrf.mxu1 }
 0xa71   :  { %v6672_v12 = vpop.f32.mrf.mxu0  ;;  %6977 = vst [vmem:[#allocation33_spill] sm:$0xff] %v6682_v49 }
 0xa72   :  { %v6686_v4 = vpop.f32.mrf.mxu1 }
 0xa73   :  { %v6676_v14 = vpop.f32.mrf.mxu0  ;;  %6979 = vst [vmem:[#allocation35_spill] sm:$0xff] %v6686_v4 }
 0xa74   :  { %v6690_v20 = vpop.f32.mrf.mxu1 }
 0xa75   :  { %v6680_v61 = vpop.f32.mrf.mxu0  ;;  %6981 = vst [vmem:[#allocation36_spill] sm:$0xff] %v6690_v20  ;;  %v2479_v20 = vadd.f32 %v2478_v53, %v6704_v37 }
 0xa77   :  { %v6684_v3 = vpop.f32.mrf.mxu0 }
 0xa78   :  { %6978 = vst [vmem:[#allocation34_spill] sm:$0xff] %v6684_v3 }
 0xa79   :  { %v6688_v17 = vpop.f32.mrf.mxu0 }
 0xa7a   :  { %6980 = vst [vmem:[#allocation30_spill] sm:$0xff] %v6688_v17 }
 0xa7c   :  { %v5288_v47 = vpop.eup %5287 }
 0xa7d   :  { %v2220_v40 = vmul.f32 %v5288_v47, %v5286_v52  ;;  %v6987_v52 = vld [vmem:[#allocation29_spill] sm:$0xff] }
 0xa7e   :  { %v6707_v47 = vrot.slane %v2262_v11, %v6987_v52  ;;  %v6716_v52 = vrot.slane %v2262_v11, %v6965_v10 }
 0xa7f   :  { %v2229_v41 = vpack.c.bf16 %v2220_v40, %v2220_v40 }
 0xa81   :  { %2497 = vmatmul.mubr.bf16.gmra.mxu0 %v2229_v41  ;;  %2558 = vmatmul.mubr.bf16.gmra.mxu1 %v2229_v41 }
 0xa82   :  { %2790 = vmatprep.mubr.bf16.mxu0 %v6945_v18  ;;  %2831 = vmatprep.mubr.bf16.mxu1 %v6945_v18 }
 0xa89   :  { %2791 = vmatmul.mubr.bf16.vlgmr.msra.gmra.mxu0 %v6945_v18  ;;  %2832 = vmatmul.mubr.bf16.vlgmr.msra.gmra.mxu1 %v6945_v18 }
 0xa8a   :  { %2871 = vmatpush1.bf16.msra.mxu0 %v6527_v30  ;;  %2912 = vmatpush1.bf16.msra.mxu1 %v6529_v21 }
 0xa8b   :  { %2872 = vmatprep.subr.bf16.mxu0 %v6535_v19  ;;  %2913 = vmatprep.subr.bf16.mxu1 %v6537_v25 }
 0xa8c   :  { %2902 = vmatprep.mubr.bf16.mxu0 %v6945_v18  ;;  %2943 = vmatprep.mubr.bf16.mxu1 %v6945_v18 }
 0xa8e   :  { %2873 = vmatpush1.bf16.msra.mxu0 %v6539_v27  ;;  %2914 = vmatpush1.bf16.msra.mxu1 %v6541_v29 }
 0xa8f   :  { %2874 = vmatprep.subr.bf16.mxu0 %v6547_v5  ;;  %2915 = vmatprep.subr.bf16.mxu1 %v6549_v31 }
 0xa92   :  { %2875 = vmatpush1.bf16.msra.mxu0 %v6551_v32  ;;  %2916 = vmatpush1.bf16.msra.mxu1 %v6553_v23 }
 0xa93   :  { %2876 = vmatprep.subr.bf16.mxu0 %v6559_v34  ;;  %2917 = vmatprep.subr.bf16.mxu1 %v6561_v62 }
 0xa96   :  { %2877 = vmatpush1.bf16.msra.mxu0 %v6563_v1  ;;  %2918 = vmatpush1.bf16.msra.mxu1 %v6565_v58 }
 0xa97   :  { %2878 = vmatprep.subr.bf16.mxu0 %v6567_v39  ;;  %2919 = vmatprep.subr.bf16.mxu1 %v6569_v54 }
 0xa9a   :  { %2879 = vmatpush1.bf16.msra.mxu0 %v6575_v36  ;;  %2920 = vmatpush1.bf16.msra.mxu1 %v6577_v13 }
 0xa9b   :  { %2880 = vmatprep.subr.bf16.mxu0 %v6581_v60  ;;  %2921 = vmatprep.subr.bf16.mxu1 %v6583_v33 }
 0xa9e   :  { %2881 = vmatpush1.bf16.msra.mxu0 %v6587_v9  ;;  %2922 = vmatpush1.bf16.msra.mxu1 %v6589_v51 }
 0xa9f   :  { %2882 = vmatprep.subr.bf16.mxu0 %v6595_v63  ;;  %2923 = vmatprep.subr.bf16.mxu1 %v6597_v6 }
 0xaa2   :  { %2883 = vmatpush1.bf16.msra.mxu0 %v6599_v57  ;;  %2924 = vmatpush1.bf16.msra.mxu1 %v6601_v2 }
 0xaa3   :  { %2884 = vmatprep.subr.bf16.mxu0 %v6603_v50  ;;  %2925 = vmatprep.subr.bf16.mxu1 %v6605_v8 }
 0xaa6   :  { %2885 = vmatpush1.bf16.msra.mxu0 %v6611_v15  ;;  %2926 = vmatpush1.bf16.msra.mxu1 %v6613_v35 }
 0xaa7   :  { %2982 = vmatprep.subr.bf16.mxu0 %v6523_v22  ;;  %3023 = vmatprep.subr.bf16.mxu1 %v6525_v24 }
 0xb41   :  { %v6695_v28 = vpop.f32.mrf.mxu0  ;;  %v6697_v59 = vpop.f32.mrf.mxu1 }
 0xb42   :  { %6982 = vst [vmem:[#allocation31_spill] sm:$0xff] %v6695_v28  ;;  %6983 = vst [vmem:[#allocation37_spill] sm:$0xff] %v6697_v59  ;;  %v2481_v59 = vadd.f32 %v2480_v42, %v6707_v47 }
 0xb43   :  { %v6699_v38 = vpop.f32.mrf.mxu0  ;;  %v6701_v7 = vpop.f32.mrf.mxu1 }
 0xb44   :  { %6984 = vst [vmem:[#allocation38_spill] sm:$0xff] %v6699_v38  ;;  %6985 = vst [vmem:[#allocation40_spill] sm:$0xff] %v6701_v7 }
 0xb45   :  { %v2502_v44 = vpop.f32.mrf.mxu0  ;;  %v2563_v55 = vpop.f32.mrf.mxu1 }
 0xb46   :  { %v6712_v55 = vrot.slane %v2262_v11, %v6964_v46 }
 0xb47   :  { %v2503_v40 = vpop.f32.mrf.mxu0  ;;  %v2564_v41 = vpop.f32.mrf.mxu1 }
 0xb48   :  { %v2540_v53 = vadd.f32 %v2539_v48, %v6712_v55 }
 0xb49   :  { %v2792_v4 = vpop.f32.mrf.mxu0  ;;  %v2833_v28 = vpop.f32.mrf.mxu1 }
 0xb4a   :  { %v2840_v17 = vadd.f32 %v2792_v4, %v2479_v20  ;;  %v2842_v42 = vadd.f32 %v2833_v28, %v2540_v53  ;;  %v2542_v4 = vadd.f32 %v2541_v43, %v6716_v52  ;;  %v2483_v53 = vadd.f32 %v6668_v56, %v6704_v37 }
 0xb4b   :  { %v2794_v38 = vpop.f32.mrf.mxu0  ;;  %v2835_v3 = vpop.f32.mrf.mxu1  ;;  %v2544_v56 = vadd.f32 %v6670_v26, %v6712_v55 }
 0xb4c   :  { %v4549_v7 = vmul.f32 -1.442695, %v2840_v17  ;;  %v2841_v49 = vadd.f32 %v2794_v38, %v2481_v59  ;;  %v4551_v17 = vmul.f32 -1.442695, %v2842_v42  ;;  %v2843_v59 = vadd.f32 %v2835_v3, %v2542_v4 }
 0xb4d   :  { %v2796_v0 = vpop.f32.mrf.mxu0  ;;  %v2837_v16 = vpop.f32.mrf.mxu1 }
 0xb4e   :  { %5289 = vpow2.f32 %v4549_v7  ;;  %v4550_v44 = vmul.f32 -1.442695, %v2841_v49 }
 0xb4f   :  { %v2797_v40 = vpop.f32.mrf.mxu0  ;;  %v2838_v41 = vpop.f32.mrf.mxu1 }
 0xb50   :  { %5291 = vpow2.f32 %v4550_v44 }
 0xb51   :  { %5293 = vpow2.f32 %v4551_v17  ;;  %v2485_v17 = vadd.f32 %v6672_v12, %v6707_v47 }
 0xb5b   :  { %v5290_v20 = vpop.eup %5289 }
 0xb5c   :  { %v2853_v16 = vadd.f32 1.0, %v5290_v20 }
 0xb5d   :  { %v5292_v38 = vpop.eup %5291 }
 0xb5e   :  { %5295 = vrcp.f32 %v2853_v16  ;;  %v2854_v46 = vadd.f32 1.0, %v5292_v38  ;;  %v5294_v49 = vpop.eup %5293 }
 0xb5f   :  { %5297 = vtanh.f32 %v2843_v59  ;;  %v2855_v44 = vadd.f32 1.0, %v5294_v49 }
 0xb60   :  { %5299 = vrcp.f32 %v2854_v46 }
 0xb61   :  { %5301 = vrcp.f32 %v2855_v44 }
 0xb6b   :  { %v5296_v7 = vpop.eup %5295 }
 0xb6c   :  { %v5298_v0 = vpop.eup %5297 }
 0xb6d   :  { %v5300_v48 = vpop.eup %5299  ;;  %v2864_v11 = vmul.f32 %v5298_v0, %v5296_v7 }
 0xb6e   :  { %v2863_v10 = vmul.f32 0.0, %v5300_v48  ;;  %v5302_v43 = vpop.eup %5301 }
 0xb70   :  { %v6719_v28 = vadd.f32 %v2864_v11, %v2863_v10  ;;  %v2546_v11 = vadd.f32 %v6674_v45, %v6716_v52 }
 0xb72   :  { %5303 = vtanh.f32 %v6719_v28 }
 0xb7f   :  { %v5304_v3 = vpop.eup %5303 }
 0xb80   :  { %v2867_v40 = vmul.f32 %v5304_v3, %v5302_v43 }
 0xb82   :  { %v6722_v41 = vpack.c.bf16 %v2867_v40, %v2867_v40 }
 0xb84   :  { %2903 = vmatmul.mubr.bf16.vlgmr.msra.gmra.mxu0 %v6722_v41  ;;  %2944 = vmatmul.mubr.bf16.vlgmr.msra.gmra.mxu1 %v6722_v41 }
 0xb85   :  { %2983 = vmatpush1.bf16.msra.mxu0 %v6527_v30  ;;  %3024 = vmatpush1.bf16.msra.mxu1 %v6529_v21 }
 0xb86   :  { %2984 = vmatprep.subr.bf16.mxu0 %v6535_v19  ;;  %3025 = vmatprep.subr.bf16.mxu1 %v6537_v25 }
 0xb87   :  { %3014 = vmatprep.mubr.bf16.mxu0 %v6945_v18  ;;  %3055 = vmatprep.mubr.bf16.mxu1 %v6945_v18 }
 0xb89   :  { %2985 = vmatpush1.bf16.msra.mxu0 %v6539_v27  ;;  %3026 = vmatpush1.bf16.msra.mxu1 %v6541_v29 }
 0xb8a   :  { %2986 = vmatprep.subr.bf16.mxu0 %v6547_v5  ;;  %3027 = vmatprep.subr.bf16.mxu1 %v6549_v31 }
 0xb8d   :  { %2987 = vmatpush1.bf16.msra.mxu0 %v6551_v32  ;;  %3028 = vmatpush1.bf16.msra.mxu1 %v6553_v23 }
 0xb8e   :  { %2988 = vmatprep.subr.bf16.mxu0 %v6559_v34  ;;  %3029 = vmatprep.subr.bf16.mxu1 %v6561_v62 }
 0xb91   :  { %2989 = vmatpush1.bf16.msra.mxu0 %v6563_v1  ;;  %3030 = vmatpush1.bf16.msra.mxu1 %v6565_v58 }
 0xb92   :  { %2990 = vmatprep.subr.bf16.mxu0 %v6567_v39  ;;  %3031 = vmatprep.subr.bf16.mxu1 %v6569_v54 }
 0xb95   :  { %2991 = vmatpush1.bf16.msra.mxu0 %v6575_v36  ;;  %3032 = vmatpush1.bf16.msra.mxu1 %v6577_v13 }
 0xb96   :  { %2992 = vmatprep.subr.bf16.mxu0 %v6581_v60  ;;  %3033 = vmatprep.subr.bf16.mxu1 %v6583_v33 }
 0xb99   :  { %2993 = vmatpush1.bf16.msra.mxu0 %v6587_v9  ;;  %3034 = vmatpush1.bf16.msra.mxu1 %v6589_v51 }
 0xb9a   :  { %2994 = vmatprep.subr.bf16.mxu0 %v6595_v63  ;;  %3035 = vmatprep.subr.bf16.mxu1 %v6597_v6 }
 0xb9d   :  { %2995 = vmatpush1.bf16.msra.mxu0 %v6599_v57  ;;  %3036 = vmatpush1.bf16.msra.mxu1 %v6601_v2 }
 0xb9e   :  { %2996 = vmatprep.subr.bf16.mxu0 %v6603_v50  ;;  %3037 = vmatprep.subr.bf16.mxu1 %v6605_v8 }
 0xba1   :  { %2997 = vmatpush1.bf16.msra.mxu0 %v6611_v15  ;;  %3038 = vmatpush1.bf16.msra.mxu1 %v6613_v35 }
 0xba2   :  { %3094 = vmatprep.subr.bf16.mxu0 %v6523_v22  ;;  %3135 = vmatprep.subr.bf16.mxu1 %v6525_v24 }
 0xc44   :  { %v2904_v42 = vpop.f32.mrf.mxu0  ;;  %v2945_v4 = vpop.f32.mrf.mxu1 }
 0xc45   :  { %v2952_v20 = vadd.f32 %v2904_v42, %v2483_v53  ;;  %v2954_v10 = vadd.f32 %v2945_v4, %v2544_v56  ;;  %v2491_v56 = vadd.f32 %v6680_v61, %v6707_v47 }
 0xc46   :  { %v2906_v59 = vpop.f32.mrf.mxu0  ;;  %v2947_v16 = vpop.f32.mrf.mxu1 }
 0xc47   :  { %v4552_v38 = vmul.f32 -1.442695, %v2952_v20  ;;  %v2953_v46 = vadd.f32 %v2906_v59, %v2485_v17  ;;  %v4554_v12 = vmul.f32 -1.442695, %v2954_v10  ;;  %v2955_v43 = vadd.f32 %v2947_v16, %v2546_v11 }
 0xc48   :  { %v2908_v49 = vpop.f32.mrf.mxu0  ;;  %v2949_v7 = vpop.f32.mrf.mxu1 }
 0xc49   :  { %5305 = vpow2.f32 %v4552_v38  ;;  %v4553_v0 = vmul.f32 -1.442695, %v2953_v46 }
 0xc4a   :  { %v2909_v48 = vpop.f32.mrf.mxu0  ;;  %v2950_v44 = vpop.f32.mrf.mxu1 }
 0xc4b   :  { %5307 = vpow2.f32 %v4553_v0 }
 0xc4c   :  { %5309 = vpow2.f32 %v4554_v12 }
 0xc4d   :  { %5311 = vtanh.f32 %v2955_v43 }
 0xc56   :  { %v5306_v3 = vpop.eup %5305 }
 0xc57   :  { %v2965_v40 = vadd.f32 1.0, %v5306_v3 }
 0xc58   :  { %v5308_v53 = vpop.eup %5307 }
 0xc59   :  { %5313 = vrcp.f32 %v2965_v40  ;;  %v2966_v42 = vadd.f32 1.0, %v5308_v53  ;;  %v5310_v17 = vpop.eup %5309 }
 0xc5a   :  { %v5312_v20 = vpop.eup %5311  ;;  %v2967_v26 = vadd.f32 1.0, %v5310_v17 }
 0xc5b   :  { %5315 = vrcp.f32 %v2966_v42 }
 0xc5c   :  { %5317 = vrcp.f32 %v2967_v26 }
 0xc66   :  { %v5314_v59 = vpop.eup %5313 }
 0xc67   :  { %v2976_v38 = vmul.f32 %v5314_v59, %v5312_v20  ;;  %v6989_v59 = vld [vmem:[#allocation33_spill] sm:$0xff] }
 0xc68   :  { %v5316_v46 = vpop.eup %5315 }
 0xc69   :  { %v2975_v4 = vmul.f32 %v5316_v46, %v6719_v28  ;;  %v5318_v45 = vpop.eup %5317  ;;  %v2489_v28 = vadd.f32 %v6676_v14, %v6704_v37 }
 0xc6b   :  { %v6769_v49 = vadd.f32 %v2976_v38, %v2975_v4  ;;  %v2552_v38 = vadd.f32 %v6989_v59, %v6716_v52 }
 0xc6d   :  { %5319 = vtanh.f32 %v6769_v49 }
 0xc7a   :  { %v5320_v16 = vpop.eup %5319 }
 0xc7b   :  { %v2979_v7 = vmul.f32 %v5320_v16, %v5318_v45 }
 0xc7d   :  { %v6772_v0 = vpack.c.bf16 %v2979_v7, %v2979_v7 }
 0xc7f   :  { %3015 = vmatmul.mubr.bf16.vlgmr.msra.gmra.mxu0 %v6772_v0  ;;  %3056 = vmatmul.mubr.bf16.vlgmr.msra.gmra.mxu1 %v6772_v0 }
 0xc80   :  { %3095 = vmatpush1.bf16.msra.mxu0 %v6527_v30  ;;  %3136 = vmatpush1.bf16.msra.mxu1 %v6529_v21 }
 0xc81   :  { %3096 = vmatprep.subr.bf16.mxu0 %v6535_v19  ;;  %3137 = vmatprep.subr.bf16.mxu1 %v6537_v25 }
 0xc82   :  { %3126 = vmatprep.mubr.bf16.mxu0 %v6945_v18  ;;  %3167 = vmatprep.mubr.bf16.mxu1 %v6945_v18 }
 0xc84   :  { %3097 = vmatpush1.bf16.msra.mxu0 %v6539_v27  ;;  %3138 = vmatpush1.bf16.msra.mxu1 %v6541_v29 }
 0xc85   :  { %3098 = vmatprep.subr.bf16.mxu0 %v6547_v5  ;;  %3139 = vmatprep.subr.bf16.mxu1 %v6549_v31 }
 0xc88   :  { %3099 = vmatpush1.bf16.msra.mxu0 %v6551_v32  ;;  %3140 = vmatpush1.bf16.msra.mxu1 %v6553_v23 }
 0xc89   :  { %3100 = vmatprep.subr.bf16.mxu0 %v6559_v34  ;;  %3141 = vmatprep.subr.bf16.mxu1 %v6561_v62 }
 0xc8c   :  { %3101 = vmatpush1.bf16.msra.mxu0 %v6563_v1  ;;  %3142 = vmatpush1.bf16.msra.mxu1 %v6565_v58 }
 0xc8d   :  { %3102 = vmatprep.subr.bf16.mxu0 %v6567_v39  ;;  %3143 = vmatprep.subr.bf16.mxu1 %v6569_v54 }
 0xc90   :  { %3103 = vmatpush1.bf16.msra.mxu0 %v6575_v36  ;;  %3144 = vmatpush1.bf16.msra.mxu1 %v6577_v13 }
 0xc91   :  { %3104 = vmatprep.subr.bf16.mxu0 %v6581_v60  ;;  %3145 = vmatprep.subr.bf16.mxu1 %v6583_v33 }
 0xc94   :  { %3105 = vmatpush1.bf16.msra.mxu0 %v6587_v9  ;;  %3146 = vmatpush1.bf16.msra.mxu1 %v6589_v51 }
 0xc95   :  { %3106 = vmatprep.subr.bf16.mxu0 %v6595_v63  ;;  %3147 = vmatprep.subr.bf16.mxu1 %v6597_v6 }
 0xc98   :  { %3107 = vmatpush1.bf16.msra.mxu0 %v6599_v57  ;;  %3148 = vmatpush1.bf16.msra.mxu1 %v6601_v2 }
 0xc99   :  { %3108 = vmatprep.subr.bf16.mxu0 %v6603_v50  ;;  %3149 = vmatprep.subr.bf16.mxu1 %v6605_v8 }
 0xc9c   :  { %3109 = vmatpush1.bf16.msra.mxu0 %v6611_v15  ;;  %3150 = vmatpush1.bf16.msra.mxu1 %v6613_v35 }
 0xc9d   :  { %3206 = vmatprep.subr.bf16.mxu0 %v6523_v22  ;;  %3247 = vmatprep.subr.bf16.mxu1 %v6525_v24  ;;  %v6988_v24 = vld [vmem:[#allocation32_spill] sm:$0xff] }
 0xc9e   :  { %v2550_v14 = vadd.f32 %v6988_v24, %v6712_v55 }
 0xd3f   :  { %v3016_v48 = vpop.f32.mrf.mxu0  ;;  %v3057_v44 = vpop.f32.mrf.mxu1 }
 0xd40   :  { %v3064_v10 = vadd.f32 %v3016_v48, %v2489_v28  ;;  %v3066_v20 = vadd.f32 %v3057_v44, %v2550_v14 }
 0xd41   :  { %v3018_v11 = vpop.f32.mrf.mxu0  ;;  %v3059_v12 = vpop.f32.mrf.mxu1 }
 0xd42   :  { %v4555_v43 = vmul.f32 -1.442695, %v3064_v10  ;;  %v3065_v3 = vadd.f32 %v3018_v11, %v2491_v56  ;;  %v4557_v61 = vmul.f32 -1.442695, %v3066_v20  ;;  %v3067_v46 = vadd.f32 %v3059_v12, %v2552_v38 }
 0xd43   :  { %v3020_v40 = vpop.f32.mrf.mxu0  ;;  %v3061_v53 = vpop.f32.mrf.mxu1 }
 0xd44   :  { %5321 = vpow2.f32 %v4555_v43  ;;  %v4556_v42 = vmul.f32 -1.442695, %v3065_v3 }
 0xd45   :  { %v3021_v22 = vpop.f32.mrf.mxu0  ;;  %v3062_v17 = vpop.f32.mrf.mxu1 }
 0xd46   :  { %5323 = vpow2.f32 %v4556_v42 }
 0xd47   :  { %5325 = vpow2.f32 %v4557_v61 }
 0xd48   :  { %5327 = vtanh.f32 %v3067_v46  ;;  %v4985_v46 = vld [vmem:[#allocation15 + $0x70] ss:$8 sps:$4 sm:$0xff]  }
 0xd51   :  { %v5322_v26 = vpop.eup %5321 }
 0xd52   :  { %v3077_v4 = vadd.f32 1.0, %v5322_v26  ;;  %v4988_v26 = vld [vmem:[#allocation15 + $0xf0] ss:$8 sps:$4 sm:$0xff]  }
 0xd53   :  { %v5324_v45 = vpop.eup %5323 }
 0xd54   :  { %5329 = vrcp.f32 %v3077_v4  ;;  %v3078_v16 = vadd.f32 1.0, %v5324_v45  ;;  %v5326_v7 = vpop.eup %5325  ;;  %v4993_v45 = vld [vmem:[#allocation15 + $0x64] ss:$8 sps:$4 sm:$0xff]  }
 0xd55   :  { %v5328_v28 = vpop.eup %5327  ;;  %v3079_v11 = vadd.f32 1.0, %v5326_v7  ;;  %v4991_v7 = vld [vmem:[#allocation15 + $0x60] ss:$8 sps:$4 sm:$0xff]  }
 0xd56   :  { %5331 = vrcp.f32 %v3078_v16  ;;  %v4996_v16 = vld [vmem:[#allocation15 + $0xe4] ss:$8 sps:$4 sm:$0xff]  }
 0xd57   :  { %5333 = vrcp.f32 %v3079_v11  ;;  %v5000_v11 = vld [vmem:[#allocation15 + $0xd0] ss:$8 sps:$4 sm:$0xff]  }
 0xd61   :  { %v5330_v48 = vpop.eup %5329 }
 0xd62   :  { %v3088_v56 = vmul.f32 %v5330_v48, %v5328_v28  ;;  %v4994_v28 = vld [vmem:[#allocation15 + $0xe0] ss:$8 sps:$4 sm:$0xff]   ;;  %v4999_v48 = vld [vmem:[#allocation15 + $0x54] ss:$8 sps:$4 sm:$0xff]  }
 0xd63   :  { %v5332_v10 = vpop.eup %5331 }
 0xd64   :  { %v3087_v44 = vmul.f32 %v5332_v10, %v6769_v49  ;;  %v5334_v12 = vpop.eup %5333  ;;  %v4997_v10 = vld [vmem:[#allocation15 + $0x50] ss:$8 sps:$4 sm:$0xff]  }
 0xd66   :  { %v6819_v43 = vadd.f32 %v3088_v56, %v3087_v44  ;;  %v5002_v56 = vld [vmem:[#allocation15 + $0xd4] ss:$8 sps:$4 sm:$0xff]   ;;  %v5005_v44 = vld [vmem:[#allocation15 + $0x44] ss:$8 sps:$4 sm:$0xff]  }
 0xd68   :  { %5335 = vtanh.f32 %v6819_v43 }
 0xd75   :  { %v5336_v3 = vpop.eup %5335 }
 0xd76   :  { %v3091_v40 = vmul.f32 %v5336_v3, %v5334_v12  ;;  %v5003_v12 = vld [vmem:[#allocation15 + $0x40] ss:$8 sps:$4 sm:$0xff]  }
 0xd77   :  { %v5006_v3 = vld [vmem:[#allocation15 + $0xc0] ss:$8 sps:$4 sm:$0xff]  }
 0xd78   :  { %v6822_v53 = vpack.c.bf16 %v3091_v40, %v3091_v40  ;;  %v5011_v40 = vld [vmem:[#allocation15 + $0x34] ss:$8 sps:$4 sm:$0xff]  }
 0xd7a   :  { %3127 = vmatmul.mubr.bf16.vlgmr.msra.gmra.mxu0 %v6822_v53  ;;  %3168 = vmatmul.mubr.bf16.vlgmr.msra.gmra.mxu1 %v6822_v53 }
 0xd7b   :  { %3207 = vmatpush1.bf16.msra.mxu0 %v6527_v30  ;;  %3248 = vmatpush1.bf16.msra.mxu1 %v6529_v21  ;;  %v4987_v30 = vld [vmem:[#allocation15 + $0x74] ss:$8 sps:$4 sm:$0xff]  }
 0xd7c   :  { %3208 = vmatprep.subr.bf16.mxu0 %v6535_v19  ;;  %3249 = vmatprep.subr.bf16.mxu1 %v6537_v25  ;;  %v4990_v21 = vld [vmem:[#allocation15 + $0xf4] ss:$8 sps:$4 sm:$0xff]  }
 0xd7d   :  { %3238 = vmatprep.mubr.bf16.mxu0 %v6945_v18  ;;  %3279 = vmatprep.mubr.bf16.mxu1 %v6945_v18  ;;  %v6990_v19 = vld [vmem:[#allocation34_spill] sm:$0xff] }
 0xd7e   :  { %v2493_v25 = vadd.f32 %v6990_v19, %v6704_v37  ;;  %v5012_v19 = vld [vmem:[#allocation15 + $0xb0] ss:$8 sps:$4 sm:$0xff]  }
 0xd7f   :  { %3209 = vmatpush1.bf16.msra.mxu0 %v6539_v27  ;;  %3250 = vmatpush1.bf16.msra.mxu1 %v6541_v29 }
 0xd80   :  { %3210 = vmatprep.subr.bf16.mxu0 %v6547_v5  ;;  %3251 = vmatprep.subr.bf16.mxu1 %v6549_v31  ;;  %v6991_v5 = vld [vmem:[#allocation30_spill] sm:$0xff] }
 0xd81   :  { %v2495_v31 = vadd.f32 %v6991_v5, %v6707_v47  ;;  %v5018_v5 = vld [vmem:[#allocation15 + $0xa0] ss:$8 sps:$4 sm:$0xff]  }
 0xd83   :  { %3211 = vmatpush1.bf16.msra.mxu0 %v6551_v32  ;;  %3252 = vmatpush1.bf16.msra.mxu1 %v6553_v23 }
 0xd84   :  { %3212 = vmatprep.subr.bf16.mxu0 %v6559_v34  ;;  %3253 = vmatprep.subr.bf16.mxu1 %v6561_v62 }
 0xd87   :  { %3213 = vmatpush1.bf16.msra.mxu0 %v6563_v1  ;;  %3254 = vmatpush1.bf16.msra.mxu1 %v6565_v58 }
 0xd88   :  { %3214 = vmatprep.subr.bf16.mxu0 %v6567_v39  ;;  %3255 = vmatprep.subr.bf16.mxu1 %v6569_v54 }
 0xd8b   :  { %3215 = vmatpush1.bf16.msra.mxu0 %v6575_v36  ;;  %3256 = vmatpush1.bf16.msra.mxu1 %v6577_v13 }
 0xd8c   :  { %3216 = vmatprep.subr.bf16.mxu0 %v6581_v60  ;;  %3257 = vmatprep.subr.bf16.mxu1 %v6583_v33  ;;  %v6992_v60 = vld [vmem:[#allocation35_spill] sm:$0xff] }
 0xd8d   :  { %v2554_v33 = vadd.f32 %v6992_v60, %v6712_v55  ;;  %v5036_v60 = vld [vmem:[#allocation15 + $0x1f0] ss:$8 sps:$4 sm:$0xff]  }
 0xd8f   :  { %3217 = vmatpush1.bf16.msra.mxu0 %v6587_v9  ;;  %3258 = vmatpush1.bf16.msra.mxu1 %v6589_v51  ;;  %v6993_v51 = vld [vmem:[#allocation36_spill] sm:$0xff] }
 0xd90   :  { %3218 = vmatprep.subr.bf16.mxu0 %v6595_v63  ;;  %3259 = vmatprep.subr.bf16.mxu1 %v6597_v6  ;;  %v2556_v63 = vadd.f32 %v6993_v51, %v6716_v52  ;;  %v5039_v51 = vld [vmem:[#allocation15 + $0x160] ss:$8 sps:$4 sm:$0xff]  }
 0xd93   :  { %3219 = vmatpush1.bf16.msra.mxu0 %v6599_v57  ;;  %3260 = vmatpush1.bf16.msra.mxu1 %v6601_v2 }
 0xd94   :  { %3220 = vmatprep.subr.bf16.mxu0 %v6603_v50  ;;  %3261 = vmatprep.subr.bf16.mxu1 %v6605_v8 }
 0xd97   :  { %3221 = vmatpush1.bf16.msra.mxu0 %v6611_v15  ;;  %3262 = vmatpush1.bf16.msra.mxu1 %v6613_v35 }
 0xd98   :  { %3416 = vmatprep.subr.bf16.mxu0 %v4987_v30  ;;  %3568 = vmatprep.subr.bf16.mxu1 %v4990_v21  ;;  %v5014_v30 = vld [vmem:[#allocation15 + $0xb4] ss:$8 sps:$4 sm:$0xff]   ;;  %v5009_v21 = vld [vmem:[#allocation15 + $0x30] ss:$8 sps:$4 sm:$0xff]  }
 0xe3a   :  { %v3128_v27 = vpop.f32.mrf.mxu0  ;;  %v3169_v29 = vpop.f32.mrf.mxu1 }
 0xe3b   :  { %v3176_v32 = vadd.f32 %v3128_v27, %v2493_v25  ;;  %v3178_v9 = vadd.f32 %v3169_v29, %v2554_v33  ;;  %v5017_v25 = vld [vmem:[#allocation15 + $0x24] ss:$8 sps:$4 sm:$0xff]   ;;  %v5015_v29 = vld [vmem:[#allocation15 + $0x20] ss:$8 sps:$4 sm:$0xff]  }
 0xe3c   :  { %v3130_v23 = vpop.f32.mrf.mxu0  ;;  %v3171_v34 = vpop.f32.mrf.mxu1  ;;  %v5020_v27 = vld [vmem:[#allocation15 + $0xa4] ss:$8 sps:$4 sm:$0xff]  }
 0xe3d   :  { %v4558_v62 = vmul.f32 -1.442695, %v3176_v32  ;;  %v3177_v1 = vadd.f32 %v3130_v23, %v2495_v31  ;;  %v4560_v6 = vmul.f32 -1.442695, %v3178_v9  ;;  %v3179_v2 = vadd.f32 %v3171_v34, %v2556_v63  ;;  %v5023_v31 = vld [vmem:[#allocation15 + $0x14] ss:$8 sps:$4 sm:$0xff]  }
 0xe3e   :  { %v3132_v58 = vpop.f32.mrf.mxu0  ;;  %v3173_v39 = vpop.f32.mrf.mxu1  ;;  %v5026_v32 = vld [vmem:[#allocation15 + $0x94] ss:$8 sps:$4 sm:$0xff]   ;;  %v5021_v23 = vld [vmem:[#allocation15 + $0x10] ss:$8 sps:$4 sm:$0xff]   ;;  %v5041_v33 = vld [vmem:[#allocation15 + $0x164] ss:$8 sps:$4 sm:$0xff]  }
 0xe3f   :  { %5337 = vpow2.f32 %v4558_v62  ;;  %v4559_v54 = vmul.f32 -1.442695, %v3177_v1  ;;  %v5024_v34 = vld [vmem:[#allocation15 + $0x90] ss:$8 sps:$4 sm:$0xff]   ;;  %v5029_v62 = vld [vmem:[#allocation15 + $0x4] ss:$8 sps:$4 sm:$0xff]  }
 0xe40   :  { %v3133_v36 = vpop.f32.mrf.mxu0  ;;  %v3174_v13 = vpop.f32.mrf.mxu1  ;;  %v5032_v1 = vld [vmem:[#allocation15 + $0x84] ss:$8 sps:$4 sm:$0xff]   ;;  %v5027_v58 = vld [vmem:[#allocation15] ss:$8 sps:$4 sm:$0xff]  }
 0xe41   :  { %5339 = vpow2.f32 %v4559_v54  ;;  %v5030_v39 = vld [vmem:[#allocation15 + $0x80] ss:$8 sps:$4 sm:$0xff]   ;;  %v5035_v54 = vld [vmem:[#allocation15 + $0x174] ss:$8 sps:$4 sm:$0xff]   ;;  %v5033_v13 = vld [vmem:[#allocation15 + $0x170] ss:$8 sps:$4 sm:$0xff]  }
 0xe42   :  { %5341 = vpow2.f32 %v4560_v6  ;;  %v5038_v36 = vld [vmem:[#allocation15 + $0x1f4] ss:$8 sps:$4 sm:$0xff]   ;;  %v5044_v9 = vld [vmem:[#allocation15 + $0x1e4] ss:$8 sps:$4 sm:$0xff]   ;;  %v5042_v63 = vld [vmem:[#allocation15 + $0x1e0] ss:$8 sps:$4 sm:$0xff]  }
 0xe43   :  { %v5047_v6 = vld [vmem:[#allocation15 + $0x154] ss:$8 sps:$4 sm:$0xff]  }
 0xe4c   :  { %v5338_v57 = vpop.eup %5337 }
 0xe4d   :  { %v3189_v50 = vadd.f32 1.0, %v5338_v57  ;;  %v5050_v57 = vld [vmem:[#allocation15 + $0x1d4] ss:$8 sps:$4 sm:$0xff]  }
 0xe4e   :  { %v5340_v8 = vpop.eup %5339 }
 0xe4f   :  { %5343 = vrcp.f32 %v3189_v50  ;;  %v3190_v15 = vadd.f32 1.0, %v5340_v8  ;;  %v5342_v35 = vpop.eup %5341  ;;  %v5048_v50 = vld [vmem:[#allocation15 + $0x1d0] ss:$8 sps:$4 sm:$0xff]   ;;  %v5051_v8 = vld [vmem:[#allocation15 + $0x140] ss:$8 sps:$4 sm:$0xff]  }
 0xe50   :  { %5345 = vtanh.f32 %v3179_v2  ;;  %v3191_v17 = vadd.f32 1.0, %v5342_v35  ;;  %v5045_v2 = vld [vmem:[#allocation15 + $0x150] ss:$8 sps:$4 sm:$0xff]   ;;  %v5059_v35 = vld [vmem:[#allocation15 + $0x134] ss:$8 sps:$4 sm:$0xff]  }
 0xe51   :  { %5347 = vrcp.f32 %v3190_v15  ;;  %v5054_v15 = vld [vmem:[#allocation15 + $0x1c0] ss:$8 sps:$4 sm:$0xff]  }
 0xe52   :  { %5349 = vrcp.f32 %v3191_v17  ;;  %v5065_v17 = vld [vmem:[#allocation15 + $0x124] ss:$8 sps:$4 sm:$0xff]  }
 0xe5c   :  { %v5344_v49 = vpop.eup %5343 }
 0xe5d   :  { %v5346_v42 = vpop.eup %5345 }
 0xe5e   :  { %v5348_v22 = vpop.eup %5347  ;;  %v3200_v14 = vmul.f32 %v5346_v42, %v5344_v49  ;;  %v5062_v49 = vld [vmem:[#allocation15 + $0x1b4] ss:$8 sps:$4 sm:$0xff]   ;;  %v5057_v42 = vld [vmem:[#allocation15 + $0x130] ss:$8 sps:$4 sm:$0xff]  }
 0xe5f   :  { %v3199_v24 = vmul.f32 %v5348_v22, %v6819_v43  ;;  %v5350_v59 = vpop.eup %5349  ;;  %v5008_v43 = vld [vmem:[#allocation15 + $0xc4] ss:$8 sps:$4 sm:$0xff]   ;;  %v5060_v22 = vld [vmem:[#allocation15 + $0x1b0] ss:$8 sps:$4 sm:$0xff]  }
 0xe61   :  { %v6867_v20 = vadd.f32 %v3200_v14, %v3199_v24  ;;  %v5068_v24 = vld [vmem:[#allocation15 + $0x1a4] ss:$8 sps:$4 sm:$0xff]   ;;  %v5063_v14 = vld [vmem:[#allocation15 + $0x120] ss:$8 sps:$4 sm:$0xff]  }
 0xe63   :  { %5351 = vtanh.f32 %v6867_v20 }
 0xe70   :  { %v5352_v38 = vpop.eup %5351 }
 0xe71   :  { %v3203_v61 = vmul.f32 %v5352_v38, %v5350_v59  ;;  %v5066_v59 = vld [vmem:[#allocation15 + $0x1a0] ss:$8 sps:$4 sm:$0xff]   ;;  %v5071_v38 = vld [vmem:[#allocation15 + $0x114] ss:$8 sps:$4 sm:$0xff]  }
 0xe73   :  { %v6870_v4 = vpack.c.bf16 %v3203_v61, %v3203_v61  ;;  %v5074_v61 = vld [vmem:[#allocation15 + $0x194] ss:$8 sps:$4 sm:$0xff]  }
 0xe75   :  { %3239 = vmatmul.mubr.bf16.vlgmr.msra.gmra.mxu0 %v6870_v4  ;;  %3280 = vmatmul.mubr.bf16.vlgmr.msra.gmra.mxu1 %v6870_v4 }
 0xe76   :  { %3417 = vmatpush1.bf16.msra.mxu0 %v4985_v46  ;;  %3569 = vmatpush1.bf16.msra.mxu1 %v4988_v26  ;;  %v5069_v46 = vld [vmem:[#allocation15 + $0x110] ss:$8 sps:$4 sm:$0xff]  }
 0xe77   :  { %3418 = vmatprep.subr.bf16.mxu0 %v4993_v45  ;;  %3570 = vmatprep.subr.bf16.mxu1 %v4996_v16  ;;  %v5072_v26 = vld [vmem:[#allocation15 + $0x190] ss:$8 sps:$4 sm:$0xff]   ;;  %v5077_v45 = vld [vmem:[#allocation15 + $0x104] ss:$8 sps:$4 sm:$0xff]  }
 0xe78   :  { %3448 = vmatprep.mubr.bf16.mxu0 %v6945_v18  ;;  %3600 = vmatprep.mubr.bf16.mxu1 %v6945_v18  ;;  %v5080_v16 = vld [vmem:[#allocation15 + $0x184] ss:$8 sps:$4 sm:$0xff]  }
 0xe7a   :  { %3419 = vmatpush1.bf16.msra.mxu0 %v4991_v7  ;;  %3571 = vmatpush1.bf16.msra.mxu1 %v4994_v28  ;;  %v5075_v7 = vld [vmem:[#allocation15 + $0x100] ss:$8 sps:$4 sm:$0xff]  }
 0xe7b   :  { %3420 = vmatprep.subr.bf16.mxu0 %v4999_v48  ;;  %3572 = vmatprep.subr.bf16.mxu1 %v5002_v56  ;;  %v5078_v28 = vld [vmem:[#allocation15 + $0x180] ss:$8 sps:$4 sm:$0xff]   ;;  %v5083_v48 = vld [vmem:[#allocation15 + $0x274] ss:$8 sps:$4 sm:$0xff]   ;;  %v5081_v56 = vld [vmem:[#allocation15 + $0x270] ss:$8 sps:$4 sm:$0xff]  }
 0xe7e   :  { %3421 = vmatpush1.bf16.msra.mxu0 %v4997_v10  ;;  %3573 = vmatpush1.bf16.msra.mxu1 %v5000_v11  ;;  %v5086_v10 = vld [vmem:[#allocation15 + $0x264] ss:$8 sps:$4 sm:$0xff]   ;;  %v5084_v11 = vld [vmem:[#allocation15 + $0x260] ss:$8 sps:$4 sm:$0xff]  }
 0xe7f   :  { %3422 = vmatprep.subr.bf16.mxu0 %v5005_v44  ;;  %3574 = vmatprep.subr.bf16.mxu1 %v5008_v43  ;;  %v5089_v44 = vld [vmem:[#allocation15 + $0x254] ss:$8 sps:$4 sm:$0xff]   ;;  %v5087_v43 = vld [vmem:[#allocation15 + $0x250] ss:$8 sps:$4 sm:$0xff]  }
 0xe82   :  { %3423 = vmatpush1.bf16.msra.mxu0 %v5003_v12  ;;  %3575 = vmatpush1.bf16.msra.mxu1 %v5006_v3  ;;  %v5092_v12 = vld [vmem:[#allocation15 + $0x244] ss:$8 sps:$4 sm:$0xff]   ;;  %v5090_v3 = vld [vmem:[#allocation15 + $0x240] ss:$8 sps:$4 sm:$0xff]  }
 0xe83   :  { %3424 = vmatprep.subr.bf16.mxu0 %v5011_v40  ;;  %3576 = vmatprep.subr.bf16.mxu1 %v5014_v30  ;;  %v5095_v40 = vld [vmem:[#allocation15 + $0x234] ss:$8 sps:$4 sm:$0xff]  }
 0xe84   :  { %v5101_v30 = vld [vmem:[#allocation15 + $0x214] ss:$8 sps:$4 sm:$0xff]  }
 0xe86   :  { %3425 = vmatpush1.bf16.msra.mxu0 %v5009_v21  ;;  %3577 = vmatpush1.bf16.msra.mxu1 %v5012_v19  ;;  %v5099_v21 = vld [vmem:[#allocation15 + $0x210] ss:$8 sps:$4 sm:$0xff]   ;;  %v5104_v19 = vld [vmem:[#allocation15 + $0x204] ss:$8 sps:$4 sm:$0xff]  }
 0xe87   :  { %3426 = vmatprep.subr.bf16.mxu0 %v5017_v25  ;;  %3578 = vmatprep.subr.bf16.mxu1 %v5020_v27  ;;  %v5102_v25 = vld [vmem:[#allocation15 + $0x200] ss:$8 sps:$4 sm:$0xff]   ;;  %v5105_v27 = vld [vmem:[#allocation17 + $0x78] sm:$0xff]  }
 0xe8a   :  { %3427 = vmatpush1.bf16.msra.mxu0 %v5015_v29  ;;  %3579 = vmatpush1.bf16.msra.mxu1 %v5018_v5  ;;  %v5106_v29 = vld [vmem:[#allocation17 + $0x38] sm:$0xff]   ;;  %v5107_v5 = vld [vmem:[#allocation17 + $0x70] sm:$0xff]  }
 0xe8b   :  { %3428 = vmatprep.subr.bf16.mxu0 %v5023_v31  ;;  %3580 = vmatprep.subr.bf16.mxu1 %v5026_v32  ;;  %v5108_v31 = vld [vmem:[#allocation17 + $0x30] sm:$0xff]   ;;  %v5109_v32 = vld [vmem:[#allocation17 + $0x68] sm:$0xff]  }
 0xe8e   :  { %3429 = vmatpush1.bf16.msra.mxu0 %v5021_v23  ;;  %3581 = vmatpush1.bf16.msra.mxu1 %v5024_v34  ;;  %v5110_v23 = vld [vmem:[#allocation17 + $0x28] sm:$0xff]   ;;  %v6994_v34 = vld [vmem:[#allocation31_spill] sm:$0xff] }
 0xe8f   :  { %3430 = vmatprep.subr.bf16.mxu0 %v5029_v62  ;;  %3582 = vmatprep.subr.bf16.mxu1 %v5032_v1  ;;  %v2499_v62 = vadd.f32 %v6994_v34, %v6704_v37 }
 0xe92   :  { %3431 = vmatpush1.bf16.msra.mxu0 %v5027_v58  ;;  %3583 = vmatpush1.bf16.msra.mxu1 %v5030_v39  ;;  %v6995_v39 = vld [vmem:[#allocation38_spill] sm:$0xff] }
 0xe93   :  { %3709 = vmatprep.subr.bf16.mxu0 %v5035_v54  ;;  %3850 = vmatprep.subr.bf16.mxu1 %v5038_v36  ;;  %v2501_v54 = vadd.f32 %v6995_v39, %v6707_v47  ;;  %v5111_v39 = vld [vmem:[#allocation17 + $0x60] sm:$0xff]  }
 0xe95   :  { %3449 = vmatmul.mubr.bf16.vlgmr.msra.gmra.mxu0 %v6722_v41  ;;  %3601 = vmatmul.mubr.bf16.vlgmr.msra.gmra.mxu1 %v6772_v0  ;;  %v5053_v41 = vld [vmem:[#allocation15 + $0x144] ss:$8 sps:$4 sm:$0xff]  }
 0xe96   :  { %3710 = vmatpush1.bf16.msra.mxu0 %v5033_v13  ;;  %3851 = vmatpush1.bf16.msra.mxu1 %v5036_v60  ;;  %v5056_v0 = vld [vmem:[#allocation15 + $0x1c4] ss:$8 sps:$4 sm:$0xff]  }
 0xe97   :  { %3711 = vmatprep.subr.bf16.mxu0 %v5041_v33  ;;  %3852 = vmatprep.subr.bf16.mxu1 %v5044_v9 }
 0xe98   :  { %3741 = vmatprep.mubr.bf16.mxu0 %v6945_v18  ;;  %3882 = vmatprep.mubr.bf16.mxu1 %v6945_v18 }
 0xe9a   :  { %3712 = vmatpush1.bf16.msra.mxu0 %v5039_v51  ;;  %3853 = vmatpush1.bf16.msra.mxu1 %v5042_v63 }
 0xe9b   :  { %3713 = vmatprep.subr.bf16.mxu0 %v5047_v6  ;;  %3854 = vmatprep.subr.bf16.mxu1 %v5050_v57 }
 0xe9e   :  { %3714 = vmatpush1.bf16.msra.mxu0 %v5045_v2  ;;  %3855 = vmatpush1.bf16.msra.mxu1 %v5048_v50  ;;  %v6996_v50 = vld [vmem:[#allocation37_spill] sm:$0xff] }
 0xe9f   :  { %3715 = vmatprep.subr.bf16.mxu0 %v5053_v41  ;;  %3856 = vmatprep.subr.bf16.mxu1 %v5056_v0  ;;  %v2560_v37 = vadd.f32 %v6996_v50, %v6712_v55  ;;  %v6997_v0 = vld [vmem:[#allocation40_spill] sm:$0xff]  ;;  %v5122_v50 = vld [vmem:[#allocation18 + $0x30] sm:$0xff]  }
 0xea2   :  { %3716 = vmatpush1.bf16.msra.mxu0 %v5051_v8  ;;  %3857 = vmatpush1.bf16.msra.mxu1 %v5054_v15  ;;  %v2562_v8 = vadd.f32 %v6997_v0, %v6716_v52 }
 0xea3   :  { %3717 = vmatprep.subr.bf16.mxu0 %v5059_v35  ;;  %3858 = vmatprep.subr.bf16.mxu1 %v5062_v49 }
 0xea6   :  { %3718 = vmatpush1.bf16.msra.mxu0 %v5057_v42  ;;  %3859 = vmatpush1.bf16.msra.mxu1 %v5060_v22 }
 0xea7   :  { %3719 = vmatprep.subr.bf16.mxu0 %v5065_v17  ;;  %3860 = vmatprep.subr.bf16.mxu1 %v5068_v24  ;;  %v3317_v17 = vld [vmem:[%s6917_s11] sm:$0x3] }
 0xea8   :  { %v6998_v24 = vld [vmem:[#allocation28_spill] sm:$0xff] }
 0xea9   :  { %v3461_v55 = vrot.slane %v3317_v17, %v6998_v24  ;;  %v5124_v24 = vld [vmem:[#allocation18 + $0x20] sm:$0xff]  }
 0xeaa   :  { %3720 = vmatpush1.bf16.msra.mxu0 %v5063_v14  ;;  %3861 = vmatpush1.bf16.msra.mxu1 %v5066_v59  ;;  %v6999_v14 = vld [vmem:[#allocation29_spill] sm:$0xff] }
 0xeab   :  { %3721 = vmatprep.subr.bf16.mxu0 %v5071_v38  ;;  %3862 = vmatprep.subr.bf16.mxu1 %v5074_v61  ;;  %v3465_v59 = vrot.slane %v3317_v17, %v6999_v14  ;;  %v5123_v17 = vld [vmem:[#allocation18 + $0x28] sm:$0xff]   ;;  %v5126_v14 = vld [vmem:[#allocation18 + $0x10] sm:$0xff]  }
 0xeae   :  { %3722 = vmatpush1.bf16.msra.mxu0 %v5069_v46  ;;  %3863 = vmatpush1.bf16.msra.mxu1 %v5072_v26 }
 0xeaf   :  { %3723 = vmatprep.subr.bf16.mxu0 %v5077_v45  ;;  %3864 = vmatprep.subr.bf16.mxu1 %v5080_v16 }
 0xeb2   :  { %3724 = vmatpush1.bf16.msra.mxu0 %v5075_v7  ;;  %3865 = vmatpush1.bf16.msra.mxu1 %v5078_v28 }
 0xeb3   :  { %3991 = vmatprep.subr.bf16.mxu0 %v5083_v48  ;;  %4670 = vmatprep.subr.bf16.mxu1 %v5105_v27 }
 0xeb5   :  { %3742 = vmatmul.mubr.bf16.vlgmr.msra.gmra.mxu0 %v6822_v53  ;;  %3883 = vmatmul.mubr.bf16.vlgmr.msra.gmra.mxu1 %v6870_v4  ;;  %v5093_v53 = vld [vmem:[#allocation15 + $0x230] ss:$8 sps:$4 sm:$0xff]   ;;  %v5096_v4 = vld [vmem:[#allocation15 + $0x220] ss:$8 sps:$4 sm:$0xff]  }
 0xeb6   :  { %4023 = vmatprep.mubr.bf16.mxu0 %v6945_v18  ;;  %3992 = vmatpush1.bf16.msra.mxu0 %v5081_v56  ;;  %v5098_v18 = vld [vmem:[#allocation15 + $0x224] ss:$8 sps:$4 sm:$0xff]  }
 0xeb7   :  { %3993 = vmatprep.subr.bf16.mxu0 %v5086_v10  ;;  %4671 = vmatpush3.bf16.msra.mxu1 %v5106_v29 }
 0xeb8   :  { %4672 = vmatprep.subr.bf16.mxu1 %v5107_v5 }
 0xeba   :  { %3994 = vmatpush1.bf16.msra.mxu0 %v5084_v11 }
 0xebb   :  { %3995 = vmatprep.subr.bf16.mxu0 %v5089_v44  ;;  %4673 = vmatpush3.bf16.msra.mxu1 %v5108_v31 }
 0xebc   :  { %4674 = vmatprep.subr.bf16.mxu1 %v5109_v32 }
 0xebe   :  { %3996 = vmatpush1.bf16.msra.mxu0 %v5087_v43 }
 0xebf   :  { %3997 = vmatprep.subr.bf16.mxu0 %v5092_v12  ;;  %4675 = vmatpush3.bf16.msra.mxu1 %v5110_v23 }
 0xec0   :  { %4676 = vmatprep.subr.bf16.mxu1 %v5111_v39 }
 0xec2   :  { %3998 = vmatpush1.bf16.msra.mxu0 %v5090_v3 }
 0xec3   :  { %3999 = vmatprep.subr.bf16.mxu0 %v5095_v40 }
 0xec6   :  { %4000 = vmatpush1.bf16.msra.mxu0 %v5093_v53 }
 0xec7   :  { %4001 = vmatprep.subr.bf16.mxu0 %v5098_v18 }
 0xeca   :  { %4002 = vmatpush1.bf16.msra.mxu0 %v5096_v4 }
 0xecb   :  { %4003 = vmatprep.subr.bf16.mxu0 %v5101_v30 }
 0xece   :  { %4004 = vmatpush1.bf16.msra.mxu0 %v5099_v21 }
 0xecf   :  { %4005 = vmatprep.subr.bf16.mxu0 %v5104_v19 }
 0xed2   :  { %4006 = vmatpush1.bf16.msra.mxu0 %v5102_v25 }
 0xf35   :  { %v3240_v1 = vpop.f32.mrf.mxu0  ;;  %v3281_v58 = vpop.f32.mrf.mxu1 }
 0xf36   :  { %v3288_v36 = vadd.f32 %v3240_v1, %v2499_v62  ;;  %v3290_v41 = vadd.f32 %v3281_v58, %v2560_v37 }
 0xf37   :  { %v3242_v13 = vpop.f32.mrf.mxu0  ;;  %v3283_v60 = vpop.f32.mrf.mxu1 }
 0xf38   :  { %v4561_v33 = vmul.f32 -1.442695, %v3288_v36  ;;  %v3289_v9 = vadd.f32 %v3242_v13, %v2501_v54  ;;  %v4563_v47 = vmul.f32 -1.442695, %v3290_v41  ;;  %v3291_v15 = vadd.f32 %v3283_v60, %v2562_v8  ;;  %v5112_v54 = vld [vmem:[#allocation17 + $0x20] sm:$0xff]   ;;  %v5113_v36 = vld [vmem:[#allocation17 + $0x58] sm:$0xff]  }
 0xf39   :  { %v3244_v51 = vpop.f32.mrf.mxu0  ;;  %v3285_v63 = vpop.f32.mrf.mxu1  ;;  %4677 = vmatpush3.bf16.msra.mxu1 %v5112_v54  ;;  %v5114_v13 = vld [vmem:[#allocation17 + $0x18] sm:$0xff]   ;;  %v5115_v60 = vld [vmem:[#allocation17 + $0x50] sm:$0xff]  }
 0xf3a   :  { %5353 = vpow2.f32 %v4561_v33  ;;  %v4562_v6 = vmul.f32 -1.442695, %v3289_v9  ;;  %4678 = vmatprep.subr.bf16.mxu1 %v5113_v36  ;;  %v5116_v33 = vld [vmem:[#allocation17 + $0x10] sm:$0xff]   ;;  %v5117_v9 = vld [vmem:[#allocation17 + $0x48] sm:$0xff]   ;;  %v5119_v63 = vld [vmem:[#allocation17 + $0x40] sm:$0xff]  }
 0xf3b   :  { %v3245_v57 = vpop.f32.mrf.mxu0  ;;  %v3286_v2 = vpop.f32.mrf.mxu1  ;;  %v5118_v51 = vld [vmem:[#allocation17 + $0x8] sm:$0xff]  }
 0xf3c   :  { %5355 = vpow2.f32 %v4562_v6  ;;  %v5120_v6 = vld [vmem:[#allocation17] sm:$0xff]   ;;  %v5121_v57 = vld [vmem:[#allocation18 + $0x38] sm:$0xff]   ;;  %v5653_v2 = vmov 0.0  }
 0xf3d   :  { %5357 = vpow2.f32 %v4563_v47  ;;  %4679 = vmatpush3.bf16.msra.mxu1 %v5114_v13  ;;  %4701 = vmatprep.subr.bf16.mxu0 %v5653_v2 }
 0xf3e   :  { %5359 = vtanh.f32 %v3291_v15  ;;  %4680 = vmatprep.subr.bf16.mxu1 %v5115_v60 }
 0xf41   :  { %4681 = vmatpush3.bf16.msra.mxu1 %v5116_v33 }
 0xf42   :  { %4682 = vmatprep.subr.bf16.mxu1 %v5117_v9 }
 0xf45   :  { %4683 = vmatpush3.bf16.msra.mxu1 %v5118_v51 }
 0xf46   :  { %4684 = vmatprep.subr.bf16.mxu1 %v5119_v63 }
 0xf47   :  { %v5354_v35 = vpop.eup %5353 }
 0xf48   :  { %v3301_v49 = vadd.f32 1.0, %v5354_v35 }
 0xf49   :  { %v5356_v42 = vpop.eup %5355  ;;  %4685 = vmatpush3.bf16.msra.mxu1 %v5120_v6 }
 0xf4a   :  { %5361 = vrcp.f32 %v3301_v49  ;;  %v3302_v22 = vadd.f32 1.0, %v5356_v42  ;;  %v5358_v38 = vpop.eup %5357 }
 0xf4b   :  { %v5360_v46 = vpop.eup %5359  ;;  %v3303_v11 = vadd.f32 1.0, %v5358_v38  ;;  %v5128_v38 = vld [vmem:[#allocation18] sm:$0xff]  }
 0xf4c   :  { %5363 = vrcp.f32 %v3302_v22 }
 0xf4d   :  { %5365 = vrcp.f32 %v3303_v11 }
 0xf55   :  { %v3450_v52 = vpop.f32.mrf.mxu0  ;;  %v3602_v61 = vpop.f32.mrf.mxu1 }
 0xf56   :  { %v3468_v26 = vadd.f32 %v3461_v55, %v3450_v52  ;;  %v5125_v55 = vld [vmem:[#allocation18 + $0x18] sm:$0xff]  }
 0xf57   :  { %v5362_v45 = vpop.eup %5361  ;;  %v3452_v16 = vpop.f32.mrf.mxu0 }
 0xf58   :  { %v3604_v7 = vpop.f32.mrf.mxu1  ;;  %v3312_v28 = vmul.f32 %v5362_v45, %v5360_v46  ;;  %v3609_v48 = vadd.f32 %v3602_v61, %v3468_v26  ;;  %v3469_v56 = vadd.f32 %v3465_v59, %v3452_v16  ;;  %v5127_v59 = vld [vmem:[#allocation18 + $0x8] sm:$0xff]  }
 0xf59   :  { %v5364_v10 = vpop.eup %5363  ;;  %v3454_v44 = vpop.f32.mrf.mxu0  ;;  %v4644_v61 = vld [vmem:[%s6919_s13] ss:$0 sm:$0xff]  ;;  %s5602_s13 = scalar_lea.vmem %s4334_s30, 128 }
 0xf5a   :  { %v3606_v43 = vpop.f32.mrf.mxu1  ;;  %v3311_v12 = vmul.f32 %v5364_v10, %v6867_v20  ;;  %v3610_v3 = vadd.f32 %v3604_v7, %v3469_v56  ;;  %v5366_v4 = vpop.eup %5365  ;;  %v4661_v56 = vld [vmem:[%s6921_s15] ss:$0 sm:$0xff]  ;;  %p5603_p8 = scmp.ne.s32.totalorder %s4334_s30, %s5602_s13  ;;  %p5608_p10 = scmp.lt.s32.totalorder %s5602_s13, %s5602_s13 }
 0xf5b   :  { %v3455_v40 = vpop.f32.mrf.mxu0 }
 0xf5c   :  { %v3607_v53 = vpop.f32.mrf.mxu1  ;;  %v3313_v18 = vadd.f32 %v3312_v28, %v3311_v12  ;;  %p5609_p11 = por %p5608_p10, %p5607_p9 }
 0xf5e   :  { %5367 = vtanh.f32 %v3313_v18  ;;  %p5610_p12 = pnand %p5609_p11, %p5603_p8 }
 0xf6b   :  { %v5368_v30 = vpop.eup %5367 }
 0xf6c   :  { %v3315_v21 = vmul.f32 %v5368_v30, %v5366_v4 }
 0xf6e   :  { %v3894_v19 = vpack.c.bf16 %v3315_v21, %v3315_v21 }
 0xf70   :  { %4024 = vmatmul.mubr.bf16.vlgmr.msra.gmra.mxu0 %v3894_v19 }
 0xf71   :  { %4702 = vmatpush3.bf16.msra.mxu0 %v5121_v57  ;;  %4717 = vmatprep.mubr.msk.bf16.mxu0 %vm5654_vm2, %v5653_v2 }
 0xf72   :  { %4703 = vmatprep.subr.bf16.mxu0 %v5653_v2 }
 0xf75   :  { %v3743_v25 = vpop.f32.mrf.mxu0  ;;  %v3884_v27 = vpop.f32.mrf.mxu1  ;;  %4704 = vmatpush3.bf16.msra.mxu0 %v5122_v50 }
 0xf76   :  { %v3750_v29 = vadd.f32 %v3743_v25, %v3609_v48  ;;  %4705 = vmatprep.subr.bf16.mxu0 %v5653_v2 }
 0xf77   :  { %v3745_v5 = vpop.f32.mrf.mxu0  ;;  %v3886_v31 = vpop.f32.mrf.mxu1 }
 0xf78   :  { %v3891_v32 = vadd.f32 %v3884_v27, %v3750_v29  ;;  %v3751_v23 = vadd.f32 %v3745_v5, %v3610_v3 }
 0xf79   :  { %v3747_v34 = vpop.f32.mrf.mxu0  ;;  %v3888_v20 = vpop.f32.mrf.mxu1  ;;  %4706 = vmatpush3.bf16.msra.mxu0 %v5123_v17 }
 0xf7a   :  { %v3892_v62 = vadd.f32 %v3886_v31, %v3751_v23  ;;  %4707 = vmatprep.subr.bf16.mxu0 %v5653_v2 }
 0xf7b   :  { %v3748_v1 = vpop.f32.mrf.mxu0  ;;  %v3889_v58 = vpop.f32.mrf.mxu1 }
 0xf7d   :  { %4708 = vmatpush3.bf16.msra.mxu0 %v5124_v24 }
 0xf7e   :  { %4709 = vmatprep.subr.bf16.mxu0 %v5653_v2 }
 0xf81   :  { %4710 = vmatpush3.bf16.msra.mxu0 %v5125_v55 }
 0xf82   :  { %4711 = vmatprep.subr.bf16.mxu0 %v5653_v2 }
 0xf85   :  { %4712 = vmatpush3.bf16.msra.mxu0 %v5126_v14 }
 0xf86   :  { %4713 = vmatprep.subr.bf16.mxu0 %v5653_v2 }
 0xf89   :  { %4714 = vmatpush3.bf16.msra.mxu0 %v5127_v59 }
 0xf8a   :  { %4715 = vmatprep.subr.bf16.mxu0 %v5653_v2 }
 0xf8d   :  { %4716 = vmatpush3.bf16.msra.mxu0 %v5128_v38 }
0x1030   :  { %v4025_v37 = vpop.f32.mrf.mxu0 }
0x1031   :  { %v4032_v41 = vadd.f32 %v4025_v37, %v3891_v32 }
0x1032   :  { %v4027_v0 = vpop.f32.mrf.mxu0 }
0x1033   :  { %v4033_v8 = vadd.f32 %v4027_v0, %v3892_v62  ;;  %5369 = vtanh.f32 %v4032_v41 }
0x1034   :  { %v4029_v47 = vpop.f32.mrf.mxu0 }
0x1035   :  { %5371 = vtanh.f32 %v4033_v8 }
0x1036   :  { %v4030_v15 = vpop.f32.mrf.mxu0 }
0x1040   :  { %v5370_v35 = vpop.eup %5369 }
0x1041   :  { %v4036_v22 = vpack.c.bf16 %v5370_v35, %v5370_v35 }
0x1042   :  { %v5372_v49 = vpop.eup %5371 }
0x1043   :  { %v4037_v42 = vpack.c.bf16 %v5372_v49, %v5372_v49 }
0x1045   :  { %4205 = vmatprep.mubr.bf16.mxu1 %v4037_v42 }
0x1046   :  { %4206 = vmatmul.mubr.bf16.vlgmr.msra.gmra.mxu1 %v4036_v22 }
0x1106   :  { %v4686_v52 = vpop.f32.mrf.mxu1 }
0x1108   :  { %v4687_v46 = vpop.f32.mrf.mxu1 }
0x1109   :  { %v4688_v26 = vadd.f32 %v4687_v46, %v4686_v52 }
0x110a   :  { %v4689_v45 = vpop.f32.mrf.mxu1 }
0x110b   :  { %v4208_v16 = vadd.f32 %v4688_v26, %v4644_v61 }
0x110c   :  { %v4690_v7 = vpop.f32.mrf.mxu1 }
0x110d   :  { %5373 = vtanh.f32 %v4208_v16 }
0x111a   :  { %v5374_v28 = vpop.eup %5373 }
0x111b   :  { %v4214_v48 = vpack.c.bf16 %v5374_v28, %v5374_v28 }
0x111d   :  { %4718 = vmatmul.mubr.bf16.vlgmr.msra.gmra.mxu0 %v4214_v48 }
0x11dd   :  { %v4320_v10 = vpop.f32.mrf.mxu0 }
0x11de   :  { %v4321_v11 = vadd.f32 %v4661_v56, %v4320_v10 }
0x11df   :  { %v4719_v44 = vpop.f32.mrf.mxu0 }
0x11e0   :  { %4326 = vst [vmem:[#allocation20] sm:$0xff] %v4321_v11 }
0x11e1   :  { %v4323_v43 = vpop.f32.mrf.mxu0 }
0x11e2   :  { %5613 = shalt.err (!%p5610_p12)
}
0x11e3   :  { %4336 = dma.vmem_to_hbm [thread:$0]  %s4334_s30, 128, %s6922_s16, [#allocation5]   ;;  %v4720_v12 = vpop.f32.mrf.mxu0 }
0x11e4   :  { %5634 = dma.done.wait [#allocation5], 128  }
0x11e5   :  { %5635 = vsyncadd [#allocation5], 4294967168 }
0x11e6   :  { %4340 = vsyncpa [#allocation4], 1 }
0x11e7   :  { %4341 = vsyncpa [#allocation7], 1 }
0x11e8   :  { %4342 = vsyncpa [#allocation10], 1 }
0x11e9   :  { %4343 = vsyncpa [#allocation13], 1 }
0x11ea   :  { %4344 = vsyncpa [#allocation16], 1 }
0x11eb   :  { %4345 = vsyncpa [#allocation19], 1 }
0x11ec   :  { %4346 = vsyncpa [#allocation5], 1 }

</bundles_post_ra>
